<compile_context>
chip_gen: v7x
topology: tpu7x:2x2x1
jax: 0.10.0
libtpu: 0.0.40
codegen_flags: <defaults>
</compile_context>

<pallas_src>
import functools
import math

import jax
import jax.numpy as jnp
from jax.experimental import pallas as pl
from jax.experimental.pallas import tpu as pltpu


def _pick_tile(n, target):
    """Largest divisor of n that is <= min(target, n//2) (keeps >=2 row blocks)."""
    cap = max(1, min(target, n // 2 if n >= 2 else n))
    t = cap
    while n % t:
        t -= 1
    return t


# -----------------------------------------------------------------------------
# Pallas kernels
# -----------------------------------------------------------------------------
def _conv3x3_kernel(*refs, cins, W, TH, Cout, act):
    """Fused 3x3 conv (pad=1) over several channel-split inputs, one MXU dot.

    refs = [mid_0, top_0, bot_0, ..., mid_{n-1}, top_{n-1}, bot_{n-1}, w, bias, out]
      mid_i : (TH, W, Cin_i) row window                     (f32)
      top_i : (1,  W, Cin_i) row r0-1 (clamped; zeroed here at the top edge)
      bot_i : (1,  W, Cin_i) row r0+TH (clamped; zeroed here at the bottom edge)
      w     : (9*sum(Cin), Cout) bf16, input-major / tap-major / channel-minor
      bias  : (1, Cout) f32
      out   : (TH, W, Cout) row tile
    """
    n = len(cins)
    o_ref = refs[-1]
    b_ref = refs[-2]
    w_ref = refs[-3]

    r = pl.program_id(1)
    keep_top = jnp.where(r == 0, 0.0, 1.0).astype(jnp.bfloat16)
    keep_bot = jnp.where(r == pl.num_programs(1) - 1, 0.0, 1.0).astype(jnp.bfloat16)

    patches = []
    for i, Cin in enumerate(cins):
        mid_ref, top_ref, bot_ref = refs[3 * i], refs[3 * i + 1], refs[3 * i + 2]
        mid = mid_ref[...].astype(jnp.bfloat16)                 # (TH, W, Cin)
        top = top_ref[...].astype(jnp.bfloat16) * keep_top      # (1,  W, Cin)
        bot = bot_ref[...].astype(jnp.bfloat16) * keep_bot      # (1,  W, Cin)
        if TH > 1:
            win_top = jnp.concatenate([top, mid[:TH - 1]], axis=0)   # rows r0-1..r0+TH-2
            win_bot = jnp.concatenate([mid[1:], bot], axis=0)        # rows r0+1..r0+TH
        else:
            win_top, win_bot = top, bot
        rows = (win_top, mid, win_bot)

        zcol = jnp.zeros((TH, 1, Cin), jnp.bfloat16)
        for dy in range(3):
            base = rows[dy]
            for dx in range(3):
                if dx == 0:      # input column x-1
                    p = jnp.concatenate([zcol, base[:, :W - 1, :]], axis=1)
                elif dx == 2:    # input column x+1
                    p = jnp.concatenate([base[:, 1:, :], zcol], axis=1)
                else:
                    p = base
                patches.append(p)

    K = 9 * sum(cins)
    lhs = jnp.concatenate(patches, axis=-1).reshape(TH * W, K)   # bf16 im2col LHS
    acc = jnp.dot(lhs, w_ref[...], preferred_element_type=jnp.float32)
    acc = acc + b_ref[...].astype(jnp.float32)

    if act == "leaky":
        acc = jnp.where(acc >= 0.0, acc, 0.2 * acc)
    elif act == "sigmoid":
        # EUP handles both exp and the approximate reciprocal; divide stays off VALU.
        acc = pl.reciprocal(1.0 + jnp.exp(-acc), approx=True)
    elif act == "clamp255":      # fused final post-processing
        acc = jnp.clip(acc, 0.0, 1.0) * 255.0
    o_ref[...] = acc.reshape(TH, W, Cout).astype(o_ref.dtype)


def _downsample_kernel(*refs, cins, factor):
    """Bilinear (align_corners=False) /2 or /4 downsample of several inputs.

    Each input's result is written into contiguous channel slices of the single
    (THo, Wo, sum(C)) output block (one lane-dense store per step).
    """
    o_ref = refs[-1]
    parts = []
    for i, C in enumerate(cins):
        x = refs[i][...].astype(jnp.float32)
        TH, W, _ = x.shape
        THo, Wo = TH // factor, W // factor
        xr = x.reshape(THo, factor, Wo, factor, C)
        taps = ((0, 0), (0, 1), (1, 0), (1, 1)) if factor == 2 else ((1, 1), (1, 2), (2, 1), (2, 2))
        acc = xr[:, taps[0][0], :, taps[0][1], :]
        for (a, b) in taps[1:]:
            acc = acc + xr[:, a, :, b, :]
        parts.append(acc * 0.25)
    out = parts[0] if len(parts) == 1 else jnp.concatenate(parts, axis=-1)
    o_ref[...] = out.astype(o_ref.dtype)


def _splat_prep_kernel(img_ref, z_ref, o_ref, *, zscale, C):
    """softsplat 'soft' input: [img*exp(clip(t*Z)), exp(clip(t*Z))] (t folded in)."""
    z = jnp.clip(z_ref[...].astype(jnp.float32) * zscale, -20.0, 20.0)
    e = jnp.exp(z)                                              # (TH, W, 1)
    num = img_ref[...].astype(jnp.float32) * e
    o_ref[...] = jnp.concatenate([num, e], axis=-1)


def _splat_norm_kernel(a_ref, o_ref, *, C):
    """Normalize the splatted accumulator: out = num * 1/(den + 1e-7) (EUP rcp)."""
    a = a_ref[...].astype(jnp.float32)
    num = a[..., :C]
    den = a[..., C:C + 1]
    o_ref[...] = (num * pl.reciprocal(den + 1e-7, approx=True)).astype(o_ref.dtype)


# -----------------------------------------------------------------------------
# Pallas wrappers
# -----------------------------------------------------------------------------
def conv3x3(inputs, layer, act=None, th=8):
    """3x3 conv over the channel-concatenation of `inputs` (no actual concat).

    inputs: list of (B,H,W,Cin_i) f32
    layer : {"w": [(9*Cin_i, Cout) bf16 per input], "b": (1,Cout) f32}
    """
    ws, bias = layer["w"], layer["b"]
    B, H, W, _ = inputs[0].shape
    cins = [int(x.shape[-1]) for x in inputs]
    Cout = int(bias.shape[-1])
    TH = _pick_tile(H, th)
    grid = (B, H // TH)

    # single im2col weight matrix (input-major, tap-major, channel-minor)
    w_cat = jnp.concatenate(ws, axis=0) if len(ws) > 1 else ws[0]
    K = 9 * sum(cins)

    kernel = functools.partial(_conv3x3_kernel, cins=tuple(cins), W=W, TH=TH,
                               Cout=Cout, act=act)

    in_specs, args = [], []
    for x, ci in zip(inputs, cins):
        # row window + clamped single-row halos (VMEM stays O(TH*W*C))
        in_specs.append(pl.BlockSpec((None, TH, W, ci),
                                     lambda b, r: (b, r, 0, 0)))
        in_specs.append(pl.BlockSpec((None, 1, W, ci),
                                     lambda b, r: (b, jnp.maximum(r * TH - 1, 0), 0, 0)))
        in_specs.append(pl.BlockSpec((None, 1, W, ci),
                                     lambda b, r: (b, jnp.minimum(r * TH + TH, H - 1), 0, 0)))
        args += [x, x, x]
    in_specs.append(pl.BlockSpec((K, Cout), lambda b, r: (0, 0)))
    in_specs.append(pl.BlockSpec((1, Cout), lambda b, r: (0, 0)))
    args += [w_cat, bias]

    flops = 2 * B * H * W * K * Cout
    bytes_accessed = (4 * B * H * W * (sum(cins) * (1 + 2.0 / TH) + Cout)
                      + 2 * K * Cout)

    return pl.pallas_call(
        kernel,
        out_shape=jax.ShapeDtypeStruct((B, H, W, Cout), jnp.float32),
        grid=grid,
        in_specs=in_specs,
        out_specs=pl.BlockSpec((None, TH, W, Cout), lambda b, r: (b, r, 0, 0)),
        compiler_params=pltpu.CompilerParams(
            dimension_semantics=("parallel", "parallel")),
        cost_estimate=pl.CostEstimate(flops=flops, transcendentals=0,
                                      bytes_accessed=int(bytes_accessed)),
    )(*args)


def downsample_multi(inputs, factor, th=32):
    """Bilinear downsample (scale_factor=1/factor, align_corners=False).

    Several inputs are downsampled in one call; results are channel-concatenated
    in the output (lane-denser stores, fewer kernel launches).
    """
    B, H, W, _ = inputs[0].shape
    cins = [int(x.shape[-1]) for x in inputs]
    Ho, Wo = H // factor, W // factor
    THo = _pick_tile(Ho, th)
    Ctot = sum(cins)
    kernel = functools.partial(_downsample_kernel, cins=tuple(cins), factor=factor)
    in_specs = [pl.BlockSpec((None, THo * factor, W, c), lambda b, r: (b, r, 0, 0))
                for c in cins]
    return pl.pallas_call(
        kernel,
        out_shape=jax.ShapeDtypeStruct((B, Ho, Wo, Ctot), jnp.float32),
        grid=(B, Ho // THo),
        in_specs=in_specs,
        out_specs=pl.BlockSpec((None, THo, Wo, Ctot), lambda b, r: (b, r, 0, 0)),
        compiler_params=pltpu.CompilerParams(
            dimension_semantics=("parallel", "parallel")),
    )(*inputs)


def splat_prep(img, z, zscale, th=32):
    B, H, W, C = img.shape
    TH = _pick_tile(H, th)
    kernel = functools.partial(_splat_prep_kernel, zscale=float(zscale), C=C)
    return pl.pallas_call(
        kernel,
        out_shape=jax.ShapeDtypeStruct((B, H, W, C + 1), jnp.float32),
        grid=(B, H // TH),
        in_specs=[pl.BlockSpec((None, TH, W, C), lambda b, r: (b, r, 0, 0)),
                  pl.BlockSpec((None, TH, W, 1), lambda b, r: (b, r, 0, 0))],
        out_specs=pl.BlockSpec((None, TH, W, C + 1), lambda b, r: (b, r, 0, 0)),
        compiler_params=pltpu.CompilerParams(
            dimension_semantics=("parallel", "parallel")),
    )(img, z)


def splat_norm(acc, C, th=32):
    B, H, W, Cp1 = acc.shape
    TH = _pick_tile(H, th)
    kernel = functools.partial(_splat_norm_kernel, C=C)
    return pl.pallas_call(
        kernel,
        out_shape=jax.ShapeDtypeStruct((B, H, W, C), jnp.float32),
        grid=(B, H // TH),
        in_specs=[pl.BlockSpec((None, TH, W, Cp1), lambda b, r: (b, r, 0, 0))],
        out_specs=pl.BlockSpec((None, TH, W, C), lambda b, r: (b, r, 0, 0)),
        compiler_params=pltpu.CompilerParams(
            dimension_semantics=("parallel", "parallel")),
    )(acc)


# -----------------------------------------------------------------------------
# Softmax splatting (forward warp).  exp-weighting and normalization are Pallas;
# the data-dependent bilinear scatter-add stays in XLA as a single scatter with
# a flattened linear index (best TPU lowering).
# -----------------------------------------------------------------------------
def _softsplat_sum(ten_in, flow, flow_scale):
    # TODO(synk): data-dependent forward scatter-add (softsplat) has no clean
    # BlockSpec formulation; kept as one fused f32 XLA scatter-add.
    B, H, W, C = ten_in.shape
    ten_in = ten_in.astype(jnp.float32)
    fx = flow[..., 0].astype(jnp.float32) * flow_scale
    fy = flow[..., 1].astype(jnp.float32) * flow_scale
    gx = jnp.arange(W, dtype=jnp.float32)[None, None, :] + fx
    gy = jnp.arange(H, dtype=jnp.float32)[None, :, None] + fy
    x0 = jnp.floor(gx)
    y0 = jnp.floor(gy)
    xs, ys, ws = [], [], []
    for oy, ox in ((0, 0), (0, 1), (1, 0), (1, 1)):
        xi = x0 + ox
        yi = y0 + oy
        w = (1.0 - jnp.abs(gx - xi)) * (1.0 - jnp.abs(gy - yi))
        valid = (xi >= 0) & (xi < W) & (yi >= 0) & (yi < H)
        ws.append(jnp.where(valid, w, 0.0))
        xs.append(jnp.clip(xi, 0, W - 1).astype(jnp.int32))
        ys.append(jnp.clip(yi, 0, H - 1).astype(jnp.int32))
    xc = jnp.stack(xs, axis=-1)                               # (B, H, W, 4)
    yc = jnp.stack(ys, axis=-1)
    wgt = jnp.stack(ws, axis=-1)
    bidx = jnp.arange(B, dtype=jnp.int32)[:, None, None, None]
    lin = (bidx * H + yc) * W + xc                            # (B, H, W, 4) linear index
    vals = ten_in[:, :, :, None, :] * wgt[..., None]          # (B, H, W, 4, C)
    out = jnp.zeros((B * H * W, C), jnp.float32)
    out = out.at[lin.reshape(-1)].add(vals.reshape(-1, C))
    return out.reshape(B, H, W, C)


def warp_soft(img, flow, metric, *, flow_scale, z_scale):
    """warp(..., strMode='soft') with the timestep scaling folded in."""
    C = img.shape[-1]
    ten_in = splat_prep(img, metric, z_scale)        # Pallas: [img*exp(t*Z), exp(t*Z)]
    acc = _softsplat_sum(ten_in, flow, flow_scale)   # XLA scatter-add (f32)
    return splat_norm(acc, C)                        # Pallas: normalize (EUP rcp)


# -----------------------------------------------------------------------------
# Stand-in sub-networks (pretrained architectures are external to this module).
# Each conv layer: list of per-input channel counts -> output channels.
# -----------------------------------------------------------------------------
_C1, _C2, _C3 = 8, 16, 32
_LAYERS = {
    "fe1": ([3], _C1), "fe2": ([_C1], _C2), "fe3": ([_C2], _C3),
    "fl1": ([3, 3], 8), "fl2": ([8], 2),
    "mn":  ([3, 3, 2, 2], 2),
    "if":  ([3, 3, 1], 3),
    "g3":  ([_C3, _C3], _C2),
    "g2":  ([_C2, _C2, _C2], _C1),
    "g1":  ([3, 3, 3, _C1, _C1, _C1], 3),
}


def init_params(key):
    params = {}
    for name, (cins, cout) in _LAYERS.items():
        ws = []
        fan = 9.0 * sum(cins)
        for cin in cins:
            key, kw = jax.random.split(key)
            w = jax.random.normal(kw, (9, cin, cout), jnp.float32) / math.sqrt(fan)
            # im2col layout (tap-major, then channel), bf16 for the MXU
            ws.append(w.reshape(9 * cin, cout).astype(jnp.bfloat16))
        key, kb = jax.random.split(key)
        b = jax.random.normal(kb, (1, cout), jnp.float32) * 0.01
        params[name] = {"w": ws, "b": b}
    return params


# -----------------------------------------------------------------------------
# GMFSS forward (model_type='union', scale=1, ensemble=False)
# -----------------------------------------------------------------------------
def gmfss_forward(params, img0, img1, timestep, height, width):
    t = float(timestep)
    s0, s1 = t, 1.0 - t
    B = img0.shape[0]

    # NCHW (PyTorch convention) -> NHWC for the kernels
    x0 = jnp.transpose(img0, (0, 2, 3, 1))
    x1 = jnp.transpose(img1, (0, 2, 3, 1))

    # ---- reuse() ----
    # both frames batched on axis 0 -> one kernel launch per shared-weight stage
    xh = downsample_multi([jnp.concatenate([x0, x1], axis=0)], 2)     # (2B, H/2, W/2, 3)
    x0h, x1h = xh[:B], xh[B:]

    f1 = conv3x3([xh], params["fe1"], act="leaky")
    f2 = conv3x3([downsample_multi([f1], 2)], params["fe2"], act="leaky")
    f3 = conv3x3([downsample_multi([f2], 2)], params["fe3"], act="leaky")
    feat11, feat21 = f1[:B], f1[B:]
    feat12, feat22 = f2[:B], f2[B:]
    feat13, feat23 = f3[:B], f3[B:]

    xr = jnp.concatenate([x1h, x0h], axis=0)                          # reversed frame order
    h = conv3x3([xh, xr], params["fl1"], act="leaky")                 # both flow directions
    flows = conv3x3([h], params["fl2"])
    flow01, flow10 = flows[:B], flows[B:]

    m = conv3x3([x0h, x1h, flow01, flow10], params["mn"])
    metric0, metric1 = m[..., 0:1], m[..., 1:2]

    # ---- forward() ----  (F1t = t*flow01, Z1t = t*metric0, ... folded into kernels)
    I1t = warp_soft(x0h, flow01, metric0, flow_scale=s0, z_scale=s0)
    I2t = warp_soft(x1h, flow10, metric1, flow_scale=s1, z_scale=s1)

    # IFNet stand-in: the constant-timestep plane contributes t*sum(w_t) per output
    # channel, folded into the bias (no full-resolution tmap tensor / DMA stream).
    if_ws = params["if"]["w"]
    if_bias = params["if"]["b"] + t * jnp.sum(if_ws[2].astype(jnp.float32),
                                              axis=0, keepdims=True)
    rife = conv3x3([x0h, x1h], {"w": if_ws[:2], "b": if_bias}, act="sigmoid")

    feat1t1 = warp_soft(feat11, flow01, metric0, flow_scale=s0, z_scale=s0)
    feat2t1 = warp_soft(feat21, flow10, metric1, flow_scale=s1, z_scale=s1)

    # fused /2 and /4 downsamples of flows + metrics (2 calls instead of 8)
    fm_d = downsample_multi([flow01, flow10, m], 2)
    fm_dd = downsample_multi([flow01, flow10, m], 4)
    f01_d, f10_d = fm_d[..., 0:2], fm_d[..., 2:4]
    m0_d, m1_d = fm_d[..., 4:5], fm_d[..., 5:6]
    f01_dd, f10_dd = fm_dd[..., 0:2], fm_dd[..., 2:4]
    m0_dd, m1_dd = fm_dd[..., 4:5], fm_dd[..., 5:6]

    feat1t2 = warp_soft(feat12, f01_d, m0_d, flow_scale=0.5 * s0, z_scale=s0)
    feat2t2 = warp_soft(feat22, f10_d, m1_d, flow_scale=0.5 * s1, z_scale=s1)
    feat1t3 = warp_soft(feat13, f01_dd, m0_dd, flow_scale=0.25 * s0, z_scale=s0)
    feat2t3 = warp_soft(feat23, f10_dd, m1_dd, flow_scale=0.25 * s1, z_scale=s1)

    # gridnet stand-in (union model type); channel concats become multi-input convs
    x3 = conv3x3([feat1t3, feat2t3], params["g3"], act="leaky")
    # TODO(synk): the nearest 2x upsample could be fused into the consuming conv's
    # in-kernel patch build (coarse row = fine row // 2); kept as a cheap XLA repeat.
    x3u = jnp.repeat(jnp.repeat(x3, 2, axis=1), 2, axis=2)
    x2 = conv3x3([feat1t2, feat2t2, x3u], params["g2"], act="leaky")
    x2u = jnp.repeat(jnp.repeat(x2, 2, axis=1), 2, axis=2)
    out = conv3x3([I1t, rife, I2t, feat1t1, feat2t1, x2u], params["g1"],
                  act="clamp255")                   # clamp(0,1)*255 fused in epilogue

    out = out[:, :height, :width, :]
    return out[0]                                   # (height, width, 3)


# -----------------------------------------------------------------------------
if __name__ == "__main__":
    key = jax.random.PRNGKey(0)
    k0, k1, kp = jax.random.split(key, 3)

    B, C, H, W = 1, 3, 32, 32            # small synthetic shapes
    img0 = jax.random.uniform(k0, (B, C, H, W), jnp.float32)
    img1 = jax.random.uniform(k1, (B, C, H, W), jnp.float32)
    timestep = 0.5
    params = init_params(kp)

    out = gmfss_forward(params, img0, img1, timestep, height=H // 2, width=W // 2)
    out = jax.block_until_ready(out)
    assert out.shape == (H // 2, W // 2, 3), out.shape
    assert out.dtype == jnp.float32
    print("KERNEL_OK")
</pallas_src>

<mosaic_0001>
module attributes {stable_mosaic.version = 11 : i64} {
  func.func @_downsample_kernel(%arg0: i32, %arg1: i32, %arg2: memref<1x16x32x3xf32, #tpu.memory_space<vmem>>, %arg3: memref<1x8x16x3xf32, #tpu.memory_space<vmem>>) attributes {dimension_semantics = [#tpu.dimension_semantics<parallel>, #tpu.dimension_semantics<parallel>], iteration_bounds = array<i64: 2, 2>, scalar_prefetch = 0 : i64, scratch_operands = 0 : i64, tpu.core_type = #tpu.core_type<tc>, window_params = [{transform_indices = @transform_0, window_bounds = array<i64: 1, 16, 32, 3>}, {transform_indices = @transform_1, window_bounds = array<i64: 1, 8, 16, 3>}]} {
    %c0 = arith.constant 0 : index
    %c0_0 = arith.constant 0 : index
    %c0_1 = arith.constant 0 : index
    %c0_2 = arith.constant 0 : index
    %0 = vector.load %arg2[%c0, %c0_0, %c0_1, %c0_2] : memref<1x16x32x3xf32, #tpu.memory_space<vmem>>, vector<1x16x32x3xf32>
    %1 = vector.shape_cast %0 : vector<1x16x32x3xf32> to vector<16x32x3xf32>
    %2 = vector.shape_cast %1 : vector<16x32x3xf32> to vector<8x2x16x2x3xf32>
    %3 = vector.extract_strided_slice %2 {offsets = [0, 0, 0, 0, 0], sizes = [8, 1, 16, 1, 3], strides = [1, 1, 1, 1, 1]} : vector<8x2x16x2x3xf32> to vector<8x1x16x1x3xf32>
    %4 = vector.shape_cast %3 : vector<8x1x16x1x3xf32> to vector<8x16x3xf32>
    %5 = vector.extract_strided_slice %2 {offsets = [0, 0, 0, 1, 0], sizes = [8, 1, 16, 1, 3], strides = [1, 1, 1, 1, 1]} : vector<8x2x16x2x3xf32> to vector<8x1x16x1x3xf32>
    %6 = vector.shape_cast %5 : vector<8x1x16x1x3xf32> to vector<8x16x3xf32>
    %7 = arith.addf %4, %6 : vector<8x16x3xf32>
    %8 = vector.extract_strided_slice %2 {offsets = [0, 1, 0, 0, 0], sizes = [8, 1, 16, 1, 3], strides = [1, 1, 1, 1, 1]} : vector<8x2x16x2x3xf32> to vector<8x1x16x1x3xf32>
    %9 = vector.shape_cast %8 : vector<8x1x16x1x3xf32> to vector<8x16x3xf32>
    %10 = arith.addf %7, %9 : vector<8x16x3xf32>
    %11 = vector.extract_strided_slice %2 {offsets = [0, 1, 0, 1, 0], sizes = [8, 1, 16, 1, 3], strides = [1, 1, 1, 1, 1]} : vector<8x2x16x2x3xf32> to vector<8x1x16x1x3xf32>
    %12 = vector.shape_cast %11 : vector<8x1x16x1x3xf32> to vector<8x16x3xf32>
    %13 = arith.addf %10, %12 : vector<8x16x3xf32>
    %cst = arith.constant 2.500000e-01 : f32
    %14 = vector.broadcast %cst : f32 to vector<8x16x3xf32>
    %15 = arith.mulf %13, %14 : vector<8x16x3xf32>
    %c0_3 = arith.constant 0 : index
    %c0_4 = arith.constant 0 : index
    %c0_5 = arith.constant 0 : index
    %c0_6 = arith.constant 0 : index
    %16 = vector.load %arg3[%c0_3, %c0_4, %c0_5, %c0_6] : memref<1x8x16x3xf32, #tpu.memory_space<vmem>>, vector<1x8x16x3xf32>
    %17 = vector.shape_cast %16 : vector<1x8x16x3xf32> to vector<8x16x3xf32>
    %18 = vector.shape_cast %15 : vector<8x16x3xf32> to vector<1x8x16x3xf32>
    tpu.vector_store %arg3[%c0_3, %c0_4, %c0_5, %c0_6], %18 {strides = array<i32>} : memref<1x8x16x3xf32, #tpu.memory_space<vmem>>, vector<1x8x16x3xf32>,
    return
  }
  func.func @transform_0(%arg0: i32, %arg1: i32) -> (i32, i32, i32, i32) {
    %c0_i32 = arith.constant 0 : i32
    %c0_i32_0 = arith.constant 0 : i32
    %c0_i32_1 = arith.constant 0 : i32
    return %arg0, %arg1, %c0_i32, %c0_i32_0 : i32, i32, i32, i32
  }
  func.func @transform_1(%arg0: i32, %arg1: i32) -> (i32, i32, i32, i32) {
    %c0_i32 = arith.constant 0 : i32
    %c0_i32_0 = arith.constant 0 : i32
    %c0_i32_1 = arith.constant 0 : i32
    return %arg0, %arg1, %c0_i32, %c0_i32_0 : i32, i32, i32, i32
  }
}

</mosaic_0001>

<bundles_post_ra>
// kernel: tpu_custom_call.1
= control target key start
LH: loop header
LB: loop body
LE: loop exit
PB: predicated region body
PF: predicated region fallthrough
CT: control target
= control target key end

     0   :  { %s4231_s6 = smov 0   ;;  %s4233_s7 = smov 0   ;;  %s8497_s0 = inlined_call_operand.vmem [shape: f32[2,32,32,3], index: 0, kind: input, shape index: {}]   ;;  %s8498_s1 = inlined_call_operand.vmem [shape: f32[2,16,16,3], index: 1, kind: output, shape index: {}]  }
   0x1   :  { %s4235_s8 = smov 0   ;;  %s4237_s9 = smov 0  }
   0x2   :  { %s4239_s10 = smov 0  }
   0x3 LB: > { %s20_s11 = sadd.s32 1, %s4210_s8  ;;  %s23_s12 = sadd.s32 1, %s4214_s9  ;;  %s4218_s10 = sphi %s4239_s10, %s11_s10   ;;  %s4214_s9 = sphi %s4237_s9, %s10795_s9   ;;  %s4210_s8 = sphi %s4235_s8, %s10794_s8   ;;  %s4206_s7 = sphi %s4233_s7, %s10793_s7   ;;  %s4202_s6 = sphi %s4231_s6, %s10792_s6  }
   0x4   : > { %p21_p0 = scmp.ge.s32.totalorder %s20_s11, 2  ;;  %p3808_p1 = scmp.ge.s32.totalorder %s4218_s10, 1 }
   0x5   : > { %p109_p2 = scmp.lt.s32.totalorder %s4218_s10, 5 }
   0x6   : > { %s10797_s11 = smov (%p21_p0, %s20_s11), 0  ;;  %s10799_s12 = smov (!%p21_p0, %s23_s12), %s4214_s9 }
   0x7   : > { %p110_p3 = pnand %p3808_p1, %p109_p2  ;;  %p25_p4 = scmp.ge.s32.totalorder %s10799_s12, 2 }
   0x9   : > { %s10801_s12 = smov (%p25_p4, %s10799_s12), 0  ;;  %113 = sbr.rel (%p110_p3) target bundleno = 536 (0x218), region = 24 }
  0x10   : > { %s3809_s13 = sshll.u32 %s4202_s6, 4  ;;  %p140_p5 = scmp.lt.s32.totalorder %s4206_s7, 1  ;;  %v293_v0 = vlaneseq  ;;  %v4220_v1 = vmov 1983009808   ;;  %vm3553_vm0 = vcmask 1041409   ;;  %vm3555_vm1 = vcmask 1042434  }
  0x11   : > { %p142_p6 = scmp.lt.s32.totalorder %s3809_s13, 31  ;;  %v291_v2 = vunpack.c.l.s4 %v4220_v1  ;;  %vm3557_vm2 = vcmask 1043459   ;;  %vm3559_vm3 = vcmask 1044484   ;;  %vm3561_vm4 = vcmask 1045509   ;;  %s3813_s21 = sshll.u32 %s4202_s6, 3 }
  0x12   : > { %s10803_s7 = smov (!%p140_p5, %s4206_s7), 1  ;;  %v4266_v4 = vshrl.u32 %v293_v0, 7  ;;  %vm3563_vm5 = vcmask 1046534   ;;  %vm3565_vm6 = vcmask 1047559   ;;  %p8107_p7 = scmp.lt.s32.totalorder %s3813_s21, 15  ;;  %vm3688_vm7 = vcmask 23552  }
  0x13   : > { %s10805_s13 = smov (!%p142_p6, %s3809_s13), 31  ;;  %v292_v3 = vunpack.c.0.s8 %v291_v2  ;;  %s3811_s14 = sshll.u32 %s10803_s7, 7 }
  0x14   : > { %8940 = vst [vmem:[#allocation2_spill] sm:$0xff] %v4266_v4  ;;  %s3810_s15 = sshll.u32 %s10805_s13, 2  ;;  %s10807_s21 = smov (!%p8107_p7, %s3813_s21), 15 }
  0x15   : > { %s146_s16 = sadd.s32 %s3811_s14, %s3810_s15  ;;  %v4270_v5 = vsub.s32 %v292_v3, %v4266_v4  ;;  %s3814_s23 = sshll.u32 %s10807_s21, 1 }
  0x16   : > { %s3812_s17 = sshll.u32 %s146_s16, 3  ;;  %s3815_s24 = sshll.u32 %s10803_s7, 5 }
  0x17   : > { %s4275_s20 = scalar_lea.vmem %s8497_s0, %s3812_s17  ;;  %s157_s25 = sadd.s32 %s3815_s24, %s3814_s23 }
  0x18   : > { %v161_v6 = vld [vmem:[%s4275_s20] sm:$0xff]  ;;  %v162_v7 = vld [vmem:[%s4275_s20 + $0x8] sm:$0xff]  ;;  %v163_v8 = vld [vmem:[%s4275_s20 + $0x10] sm:$0xff]  ;;  %s3816_s26 = sshll.u32 %s157_s25, 3 }
  0x19   : > { %v164_v9 = vld [vmem:[%s4275_s20 + $0x18] sm:$0xff]  ;;  %v289_v10 = vcombine.high %v161_v6, %v161_v6  ;;  %v306_v11 = vcombine.high %v162_v7, %v162_v7  ;;  %v165_v12 = vld [vmem:[%s4275_s20 + $0x20] sm:$0xff]  ;;  %v4283_v13 = vrot.slane %v161_v6, %v4270_v5  ;;  %v323_v14 = vcombine.high %v163_v8, %v163_v8  ;;  %v166_v16 = vld [vmem:[%s4275_s20 + $0x28] sm:$0xff]  ;;  %s159_s29 = scalar_lea.vmem %s8498_s1, %s3816_s26 }
  0x1a   : > { %v340_v15 = vcombine.high %v164_v9, %v164_v9  ;;  %v4287_v17 = vrot.slane %v162_v7, %v4270_v5  ;;  %v4290_v18 = vrot.slane %v163_v8, %v4270_v5  ;;  %v167_v19 = vld [vmem:[%s4275_s20 + $0x30] sm:$0xff]  ;;  %v4300_v22 = vrot.slane %v164_v9, %v4270_v5  ;;  %v168_v23 = vld [vmem:[%s4275_s20 + $0x38] sm:$0xff]  ;;  %v169_v27 = vld [vmem:[%s4275_s20 + $0x40] sm:$0xff] }
  0x1b   : > { %v4294_v20 = vrot.slane %v289_v10, %v4270_v5  ;;  %v4297_v21 = vrot.slane %v306_v11, %v4270_v5  ;;  %v4304_v24 = vrot.slane %v323_v14, %v4270_v5  ;;  %v357_v26 = vcombine.high %v165_v12, %v165_v12  ;;  %v170_v36 = vld [vmem:[%s4275_s20 + $0x48] sm:$0xff]  ;;  %v171_v41 = vld [vmem:[%s4275_s20 + $0x50] sm:$0xff]  ;;  %v172_v46 = vld [vmem:[%s4275_s20 + $0x58] sm:$0xff] }
  0x1c   : > { %v4307_v25 = vrot.slane %v340_v15, %v4270_v5  ;;  %v4312_v28 = vcombine.high %v4283_v13, %v4283_v13  ;;  %v4315_v29 = vrot.slane %v165_v12, %v4270_v5  ;;  %v374_v30 = vcombine.high %v166_v16, %v166_v16  ;;  %v173_v51 = vld [vmem:[%s4275_s20 + $0x60] sm:$0xff]  ;;  %v174_v56 = vld [vmem:[%s4275_s20 + $0x68] sm:$0xff]  ;;  %v175_v1 = vld [vmem:[%s4275_s20 + $0x70] sm:$0xff] }
  0x1d   : > { %v4318_v31 = vrot.slane %v166_v16, %v4270_v5  ;;  %v4322_v32 = vcombine.high %v4287_v17, %v4287_v17  ;;  %v4326_v33 = vcombine.high %v4290_v18, %v4290_v18  ;;  %v4329_v34 = vrot.slane %v357_v26, %v4270_v5  ;;  %v176_v8 = vld [vmem:[%s4275_s20 + $0x78] sm:$0xff]  ;;  %v177_v14 = vld [vmem:[%s4275_s20 + $0x80] sm:$0xff]  ;;  %v178_v26 = vld [vmem:[%s4275_s20 + $0x88] sm:$0xff] }
  0x1e   : > { %8941 = vst [vmem:[#allocation3_spill] sm:$0xff] %v4315_v29  ;;  %v391_v35 = vcombine.high %v167_v19, %v167_v19  ;;  %v4334_v37 = vcombine.high %v4294_v20, %v4294_v20  ;;  %v4338_v38 = vcombine.high %v4297_v21, %v4297_v21  ;;  %v4342_v39 = vcombine.high %v4300_v22, %v4300_v22 }
  0x1f   : > { %8942 = vst [vmem:[#allocation4_spill] sm:$0xff] %v4318_v31  ;;  %8943 = vst [vmem:[#allocation5_spill] sm:$0xff] %v4329_v34  ;;  %v408_v40 = vcombine.high %v168_v23, %v168_v23  ;;  %v4347_v42 = vcombine.high %v4304_v24, %v4304_v24  ;;  %v4351_v43 = vcombine.high %v4307_v25, %v4307_v25 }
  0x20   : > { %v4354_v44 = vrot.slane %v167_v19, %v4270_v5  ;;  %v425_v45 = vcombine.high %v169_v27, %v169_v27  ;;  %v4359_v47 = vcombine.high %v4315_v29, %v4315_v29  ;;  %v4362_v48 = vrot.slane %v374_v30, %v4270_v5  ;;  %v188_v29 = vld [vmem:[%s4275_s20 + $0xd8] sm:$0xff] }
  0x21   : > { %v4366_v49 = vcombine.high %v4318_v31, %v4318_v31  ;;  %v4369_v50 = vrot.slane %v168_v23, %v4270_v5  ;;  %v4374_v52 = vcombine.high %v4329_v34, %v4329_v34  ;;  %v4377_v53 = vrot.slane %v391_v35, %v4270_v5 }
  0x22   : > { %8944 = vst [vmem:[#allocation6_spill] sm:$0xff] %v4354_v44  ;;  %8945 = vst [vmem:[#allocation7_spill] sm:$0xff] %v4359_v47  ;;  %v4380_v54 = vrot.slane %v408_v40, %v4270_v5  ;;  %v442_v55 = vcombine.high %v170_v36, %v170_v36  ;;  %v4384_v57 = vrot.slane %v169_v27, %v4270_v5 }
  0x23   : > { %8946 = vst [vmem:[#allocation8_spill] sm:$0xff] %v4362_v48  ;;  %8947 = vst [vmem:[#allocation9_spill] sm:$0xff] %v4366_v49  ;;  %v4387_v58 = vrot.slane %v425_v45, %v4270_v5  ;;  %v4390_v59 = vrot.slane %v170_v36, %v4270_v5  ;;  %v459_v60 = vcombine.high %v171_v41, %v171_v41 }
  0x24   : > { %8948 = vst [vmem:[#allocation10_spill] sm:$0xff] %v4369_v50  ;;  %8949 = vst [vmem:[#allocation11_spill] sm:$0xff] %v4374_v52  ;;  %v4394_v61 = vcombine.high %v4354_v44, %v4354_v44  ;;  %v4397_v62 = vrot.slane %v442_v55, %v4270_v5  ;;  %v4400_v63 = vrot.slane %v171_v41, %v4270_v5  ;;  %v179_v55 = vld [vmem:[%s4275_s20 + $0x90] sm:$0xff] }
  0x25   : > { %8950 = vst [vmem:[#allocation12_spill] sm:$0xff] %v4377_v53  ;;  %8951 = vst [vmem:[#allocation13_spill] sm:$0xff] %v4380_v54  ;;  %v476_v0 = vcombine.high %v172_v46, %v172_v46  ;;  %v4405_v2 = vcombine.high %v4362_v48, %v4362_v48  ;;  %v4408_v3 = vrot.slane %v459_v60, %v4270_v5  ;;  %v187_v52 = vld [vmem:[%s4275_s20 + $0xd0] sm:$0xff] }
  0x26   : > { %8952 = vst [vmem:[#allocation14_spill] sm:$0xff] %v4394_v61  ;;  %v4411_v6 = vrot.slane %v172_v46, %v4270_v5  ;;  %v493_v7 = vcombine.high %v173_v51, %v173_v51  ;;  %v4416_v9 = vcombine.high %v4377_v53, %v4377_v53  ;;  %v4420_v10 = vcombine.high %v4369_v50, %v4369_v50  ;;  %v181_v50 = vld [vmem:[%s4275_s20 + $0xa0] sm:$0xff]  ;;  %v182_v53 = vld [vmem:[%s4275_s20 + $0xa8] sm:$0xff] }
  0x27   : > { %8953 = vst [vmem:[#allocation15_spill] sm:$0xff] %v4405_v2  ;;  %v4424_v11 = vcombine.high %v4380_v54, %v4380_v54  ;;  %v510_v12 = vcombine.high %v174_v56, %v174_v56  ;;  %v4429_v15 = vcombine.high %v4384_v57, %v4384_v57  ;;  %v4433_v16 = vcombine.high %v4387_v58, %v4387_v58 }
  0x28   : > { %8954 = vst [vmem:[#allocation16_spill] sm:$0xff] %v4416_v9  ;;  %8955 = vst [vmem:[#allocation17_spill] sm:$0xff] %v4420_v10  ;;  %v4437_v19 = vcombine.high %v4390_v59, %v4390_v59  ;;  %v4440_v23 = vrot.slane %v476_v0, %v4270_v5  ;;  %v4445_v27 = vcombine.high %v4397_v62, %v4397_v62 }
  0x29   : > { %8956 = vst [vmem:[#allocation18_spill] sm:$0xff] %v4424_v11  ;;  %v4449_v30 = vcombine.high %v4400_v63, %v4400_v63  ;;  %v4452_v35 = vrot.slane %v173_v51, %v4270_v5  ;;  %v527_v36 = vcombine.high %v175_v1, %v175_v1  ;;  %v4456_v40 = vcombine.high %v4408_v3, %v4408_v3  ;;  %v180_v11 = vld [vmem:[%s4275_s20 + $0x98] sm:$0xff] }
  0x2a   : > { %v4460_v41 = vcombine.high %v4411_v6, %v4411_v6  ;;  %v4463_v45 = vrot.slane %v493_v7, %v4270_v5  ;;  %v544_v46 = vcombine.high %v176_v8, %v176_v8  ;;  %v4467_v60 = vrot.slane %v174_v56, %v4270_v5 }
  0x2b   : > { %8957 = vst [vmem:[#allocation19_spill] sm:$0xff] %v4452_v35  ;;  %v4470_v51 = vrot.slane %v510_v12, %v4270_v5  ;;  %v4473_v0 = vrot.slane %v175_v1, %v4270_v5  ;;  %v561_v4 = vcombine.high %v177_v14, %v177_v14  ;;  %v4478_v54 = vcombine.high %v4440_v23, %v4440_v23 }
  0x2c   : > { %8958 = vst [vmem:[#allocation20_spill] sm:$0xff] %v4463_v45  ;;  %8959 = vst [vmem:[#allocation21_spill] sm:$0xff] %v4467_v60  ;;  %v4481_v7 = vrot.slane %v527_v36, %v4270_v5  ;;  %v4484_v10 = vrot.slane %v176_v8, %v4270_v5  ;;  %v578_v56 = vcombine.high %v178_v26, %v178_v26 }
  0x2d   : > { %8960 = vst [vmem:[#allocation22_spill] sm:$0xff] %v4470_v51  ;;  %8961 = vst [vmem:[#allocation23_spill] sm:$0xff] %v4473_v0  ;;  %v4489_v12 = vcombine.high %v4452_v35, %v4452_v35  ;;  %v4492_v1 = vrot.slane %v544_v46, %v4270_v5  ;;  %v4495_v9 = vrot.slane %v177_v14, %v4270_v5 }
  0x2e   : > { %8962 = vst [vmem:[#allocation24_spill] sm:$0xff] %v4481_v7  ;;  %8963 = vst [vmem:[#allocation25_spill] sm:$0xff] %v4484_v10  ;;  %v4498_v36 = vrot.slane %v561_v4, %v4270_v5  ;;  %v4503_v8 = vcombine.high %v4463_v45, %v4463_v45  ;;  %v4506_v61 = vrot.slane %v178_v26, %v4270_v5  ;;  %v183_v26 = vld [vmem:[%s4275_s20 + $0xb0] sm:$0xff] }
  0x2f   : > { %8964 = vst [vmem:[#allocation26_spill] sm:$0xff] %v4489_v12  ;;  %8965 = vst [vmem:[#allocation27_spill] sm:$0xff] %v4492_v1  ;;  %v4509_v12 = vrot.slane %v578_v56, %v4270_v5  ;;  %v595_v46 = vcombine.high %v179_v55, %v179_v55  ;;  %v4513_v14 = vcombine.high %v4467_v60, %v4467_v60  ;;  %v186_v60 = vld [vmem:[%s4275_s20 + $0xc8] sm:$0xff] }
  0x30   : > { %8966 = vst [vmem:[#allocation28_spill] sm:$0xff] %v4498_v36  ;;  %8967 = vst [vmem:[#allocation29_spill] sm:$0xff] %v4503_v8  ;;  %v4517_v4 = vcombine.high %v4470_v51, %v4470_v51  ;;  %v4521_v45 = vcombine.high %v4473_v0, %v4473_v0  ;;  %v612_v8 = vcombine.high %v180_v11, %v180_v11 }
  0x31   : > { %8968 = vst [vmem:[#allocation30_spill] sm:$0xff] %v4506_v61  ;;  %8969 = vst [vmem:[#allocation31_spill] sm:$0xff] %v4509_v12  ;;  %v4526_v56 = vcombine.high %v4481_v7, %v4481_v7  ;;  %v4530_v35 = vcombine.high %v4484_v10, %v4484_v10  ;;  %v629_v51 = vcombine.high %v181_v50, %v181_v50 }
  0x32   : > { %8970 = vst [vmem:[#allocation32_spill] sm:$0xff] %v4513_v14  ;;  %8971 = vst [vmem:[#allocation33_spill] sm:$0xff] %v4517_v4  ;;  %v4533_v14 = vrot.slane %v179_v55, %v4270_v5  ;;  %v184_v4 = vld [vmem:[%s4275_s20 + $0xb8] sm:$0xff]  ;;  %v4538_v0 = vcombine.high %v4492_v1, %v4492_v1  ;;  %v646_v10 = vcombine.high %v182_v53, %v182_v53 }
  0x33   : > { %8972 = vst [vmem:[#allocation34_spill] sm:$0xff] %v4521_v45  ;;  %8973 = vst [vmem:[#allocation35_spill] sm:$0xff] %v4526_v56  ;;  %v4542_v45 = vcombine.high %v4495_v9, %v4495_v9  ;;  %v4546_v56 = vcombine.high %v4498_v36, %v4498_v36  ;;  %v4551_v55 = vcombine.high %v4506_v61, %v4506_v61 }
  0x34   : > { %8974 = vst [vmem:[#allocation36_spill] sm:$0xff] %v4530_v35  ;;  %8975 = vst [vmem:[#allocation37_spill] sm:$0xff] %v4533_v14  ;;  %v185_v35 = vld [vmem:[%s4275_s20 + $0xc0] sm:$0xff]  ;;  %v4555_v7 = vcombine.high %v4509_v12, %v4509_v12  ;;  %v4561_v1 = vrot.slane %v180_v11, %v4270_v5  ;;  %v4565_v44 = vrot.slane %v612_v8, %v4270_v5 }
  0x35   : > { %8976 = vst [vmem:[#allocation38_spill] sm:$0xff] %v4538_v0  ;;  %8977 = vst [vmem:[#allocation39_spill] sm:$0xff] %v4546_v56  ;;  %v4558_v0 = vrot.slane %v595_v46, %v4270_v5  ;;  %v4568_v2 = vrot.slane %v181_v50, %v4270_v5  ;;  %v4571_v48 = vrot.slane %v629_v51, %v4270_v5 }
  0x36   : > { %8978 = vst [vmem:[#allocation40_spill] sm:$0xff] %v4551_v55  ;;  %8979 = vst [vmem:[#allocation41_spill] sm:$0xff] %v4555_v7  ;;  %v663_v49 = vcombine.high %v183_v26, %v183_v26  ;;  %v4575_v46 = vcombine.high %v4533_v14, %v4533_v14  ;;  %v4578_v31 = vrot.slane %v182_v53, %v4270_v5 }
  0x37   : > { %8980 = vst [vmem:[#allocation42_spill] sm:$0xff] %v4558_v0  ;;  %8981 = vst [vmem:[#allocation43_spill] sm:$0xff] %v4561_v1  ;;  %v4581_v11 = vrot.slane %v646_v10, %v4270_v5  ;;  %v680_v8 = vcombine.high %v184_v4, %v184_v4  ;;  %v4585_v50 = vrot.slane %v183_v26, %v4270_v5 }
  0x38   : > { %8982 = vst [vmem:[#allocation44_spill] sm:$0xff] %v4565_v44  ;;  %8983 = vst [vmem:[#allocation45_spill] sm:$0xff] %v4568_v2  ;;  %v4588_v51 = vrot.slane %v663_v49, %v4270_v5  ;;  %v4591_v34 = vrot.slane %v184_v4, %v4270_v5  ;;  %v697_v47 = vcombine.high %v185_v35, %v185_v35  ;;  %v189_v49 = vld [vmem:[%s4275_s20 + $0xe0] sm:$0xff] }
  0x39   : > { %8984 = vst [vmem:[#allocation46_spill] sm:$0xff] %v4571_v48  ;;  %8985 = vst [vmem:[#allocation47_spill] sm:$0xff] %v4575_v46  ;;  %v4596_v53 = vcombine.high %v4558_v0, %v4558_v0  ;;  %v4600_v10 = vcombine.high %v4561_v1, %v4561_v1  ;;  %v4603_v46 = vrot.slane %v680_v8, %v4270_v5  ;;  %v190_v8 = vld [vmem:[%s4275_s20 + $0xe8] sm:$0xff] }
  0x3a   : > { %8986 = vst [vmem:[#allocation48_spill] sm:$0xff] %v4578_v31  ;;  %8987 = vst [vmem:[#allocation49_spill] sm:$0xff] %v4581_v11  ;;  %v714_v26 = vcombine.high %v186_v60, %v186_v60  ;;  %v4608_v4 = vcombine.high %v4565_v44, %v4565_v44  ;;  %v4612_v14 = vcombine.high %v4568_v2, %v4568_v2 }
  0x3b   : > { %8988 = vst [vmem:[#allocation50_spill] sm:$0xff] %v4585_v50  ;;  %8989 = vst [vmem:[#allocation51_spill] sm:$0xff] %v4588_v51  ;;  %v4624_v1 = vcombine.high %v4578_v31, %v4578_v31  ;;  %v4631_v2 = vrot.slane %v697_v47, %v4270_v5  ;;  %v748_v31 = vcombine.high %v188_v29, %v188_v29 }
  0x3c   : > { %8990 = vst [vmem:[#allocation52_spill] sm:$0xff] %v4591_v34  ;;  %8991 = vst [vmem:[#allocation53_spill] sm:$0xff] %v4596_v53  ;;  %v4616_v53 = vcombine.high %v4571_v48, %v4571_v48  ;;  %v4648_v47 = vcombine.high %v4603_v46, %v4603_v46 }
  0x3d   : > { %8992 = vst [vmem:[#allocation54_spill] sm:$0xff] %v4600_v10  ;;  %8993 = vst [vmem:[#allocation55_spill] sm:$0xff] %v4603_v46  ;;  %v4619_v10 = vrot.slane %v185_v35, %v4270_v5  ;;  %v4639_v35 = vcombine.high %v4588_v51, %v4588_v51  ;;  %v192_v51 = vld [vmem:[%s4275_s20 + $0xf8] sm:$0xff]  ;;  %v193_v46 = vld [vmem:[%s4275_s20 + $0x100] sm:$0xff]  ;;  %v4676_v48 = vrot.slane %v748_v31, %v4270_v5 }
  0x3e   : > { %8994 = vst [vmem:[#allocation56_spill] sm:$0xff] %v4608_v4  ;;  %8995 = vst [vmem:[#allocation57_spill] sm:$0xff] %v4612_v14  ;;  %v4628_v4 = vcombine.high %v4581_v11, %v4581_v11  ;;  %v731_v14 = vcombine.high %v187_v52, %v187_v52  ;;  %v4651_v11 = vrot.slane %v186_v60, %v4270_v5 }
  0x3f   : > { %8996 = vst [vmem:[#allocation58_spill] sm:$0xff] %v4616_v53  ;;  %8997 = vst [vmem:[#allocation59_spill] sm:$0xff] %v4619_v10  ;;  %v4635_v53 = vcombine.high %v4585_v50, %v4585_v50  ;;  %v765_v50 = vcombine.high %v189_v49, %v189_v49  ;;  %v4670_v60 = vcombine.high %v4631_v2, %v4631_v2 }
  0x40   : > { %8998 = vst [vmem:[#allocation60_spill] sm:$0xff] %v4624_v1  ;;  %8999 = vst [vmem:[#allocation61_spill] sm:$0xff] %v4628_v4  ;;  %v4643_v1 = vcombine.high %v4591_v34, %v4591_v34  ;;  %v191_v4 = vld [vmem:[%s4275_s20 + $0xf0] sm:$0xff]  ;;  %v4665_v34 = vrot.slane %v731_v14, %v4270_v5  ;;  %v4693_v31 = vcombine.high %v4651_v11, %v4651_v11 }
  0x41   : > { %9000 = vst [vmem:[#allocation62_spill] sm:$0xff] %v4631_v2  ;;  %9001 = vst [vmem:[#allocation63_spill] sm:$0xff] %v4635_v53  ;;  %v4654_v53 = vrot.slane %v714_v26, %v4270_v5  ;;  %v4673_v26 = vrot.slane %v188_v29, %v4270_v5  ;;  %v4683_v14 = vrot.slane %v765_v50, %v4270_v5 }
  0x42   : > { %9002 = vst [vmem:[#allocation64_spill] sm:$0xff] %v4639_v35  ;;  %9003 = vst [vmem:[#allocation65_spill] sm:$0xff] %v4643_v1  ;;  %v4659_v35 = vcombine.high %v4619_v10, %v4619_v10  ;;  %v4662_v1 = vrot.slane %v187_v52, %v4270_v5  ;;  %v4679_v52 = vrot.slane %v189_v49, %v4270_v5 }
  0x43   : > { %9004 = vst [vmem:[#allocation66_spill] sm:$0xff] %v4648_v47  ;;  %9005 = vst [vmem:[#allocation67_spill] sm:$0xff] %v4651_v11  ;;  %v782_v47 = vcombine.high %v190_v8, %v190_v8  ;;  %v4686_v10 = vrot.slane %v190_v8, %v4270_v5  ;;  %v799_v29 = vcombine.high %v191_v4, %v191_v4  ;;  %v195_v8 = vld [vmem:[%s4275_s20 + $0x110] sm:$0xff] }
  0x44   : > { %9006 = vst [vmem:[#allocation68_spill] sm:$0xff] %v4654_v53  ;;  %9007 = vst [vmem:[#allocation69_spill] sm:$0xff] %v4659_v35  ;;  %v194_v35 = vld [vmem:[%s4275_s20 + $0x108] sm:$0xff]  ;;  %v4697_v49 = vcombine.high %v4654_v53, %v4654_v53  ;;  %v816_v50 = vcombine.high %v192_v51, %v192_v51  ;;  %v4709_v44 = vcombine.high %v4665_v34, %v4665_v34  ;;  %v196_v53 = vld [vmem:[%s4275_s20 + $0x118] sm:$0xff] }
  0x45   : > { %9008 = vst [vmem:[#allocation70_spill] sm:$0xff] %v4662_v1  ;;  %9009 = vst [vmem:[#allocation71_spill] sm:$0xff] %v4665_v34  ;;  %v4689_v2 = vrot.slane %v782_v47, %v4270_v5  ;;  %v4705_v47 = vcombine.high %v4662_v1, %v4662_v1  ;;  %v833_v11 = vcombine.high %v193_v46, %v193_v46 }
  0x46   : > { %9010 = vst [vmem:[#allocation72_spill] sm:$0xff] %v4670_v60  ;;  %9011 = vst [vmem:[#allocation73_spill] sm:$0xff] %v4673_v26  ;;  %v4700_v60 = vrot.slane %v191_v4, %v4270_v5  ;;  %v4717_v4 = vcombine.high %v4673_v26, %v4673_v26  ;;  %v850_v34 = vcombine.high %v194_v35, %v194_v35  ;;  %v201_v26 = vld [vmem:[%s4275_s20 + $0x140] sm:$0xff] }
  0x47   : > { %9012 = vst [vmem:[#allocation74_spill] sm:$0xff] %v4676_v48  ;;  %9013 = vst [vmem:[#allocation75_spill] sm:$0xff] %v4679_v52  ;;  %v4734_v1 = vcombine.high %v4686_v10, %v4686_v10 }
  0x48   : > { %9014 = vst [vmem:[#allocation76_spill] sm:$0xff] %v4683_v14  ;;  %9015 = vst [vmem:[#allocation77_spill] sm:$0xff] %v4686_v10 }
  0x49   : > { %9016 = vst [vmem:[#allocation78_spill] sm:$0xff] %v4689_v2  ;;  %9017 = vst [vmem:[#allocation79_spill] sm:$0xff] %v4693_v31  ;;  %v4712_v31 = vrot.slane %v799_v29, %v4270_v5  ;;  %v4730_v29 = vcombine.high %v4683_v14, %v4683_v14  ;;  %v4749_v14 = vrot.slane %v816_v50, %v4270_v5 }
  0x4a   : > { %9018 = vst [vmem:[#allocation80_spill] sm:$0xff] %v4697_v49  ;;  %9019 = vst [vmem:[#allocation81_spill] sm:$0xff] %v4700_v60  ;;  %v4721_v49 = vcombine.high %v4676_v48, %v4676_v48  ;;  %v4766_v50 = vrot.slane %v850_v34, %v4270_v5 }
  0x4b   : > { %9020 = vst [vmem:[#allocation82_spill] sm:$0xff] %v4705_v47  ;;  %9021 = vst [vmem:[#allocation83_spill] sm:$0xff] %v4709_v44  ;;  %v4725_v47 = vcombine.high %v4679_v52, %v4679_v52  ;;  %v197_v44 = vld [vmem:[%s4275_s20 + $0x120] sm:$0xff]  ;;  %v4746_v52 = vcombine.high %v4700_v60, %v4700_v60  ;;  %v884_v60 = vcombine.high %v196_v53, %v196_v53 }
  0x4c   : > { %9022 = vst [vmem:[#allocation84_spill] sm:$0xff] %v4712_v31  ;;  %9023 = vst [vmem:[#allocation85_spill] sm:$0xff] %v4717_v4  ;;  %v4738_v4 = vcombine.high %v4689_v2, %v4689_v2  ;;  %v4762_v2 = vrot.slane %v194_v35, %v4270_v5  ;;  %v4780_v35 = vrot.slane %v196_v53, %v4270_v5 }
  0x4d   : > { %9024 = vst [vmem:[#allocation86_spill] sm:$0xff] %v4721_v49  ;;  %9025 = vst [vmem:[#allocation87_spill] sm:$0xff] %v4725_v47  ;;  %v4741_v49 = vrot.slane %v192_v51, %v4270_v5  ;;  %v198_v47 = vld [vmem:[%s4275_s20 + $0x128] sm:$0xff]  ;;  %v4759_v51 = vrot.slane %v833_v11, %v4270_v5  ;;  %v4783_v48 = vrot.slane %v884_v60, %v4270_v5 }
  0x4e   : > { %9026 = vst [vmem:[#allocation88_spill] sm:$0xff] %v4730_v29  ;;  %9027 = vst [vmem:[#allocation89_spill] sm:$0xff] %v4734_v1  ;;  %v4752_v29 = vrot.slane %v193_v46, %v4270_v5  ;;  %v867_v1 = vcombine.high %v195_v8, %v195_v8  ;;  %v4769_v46 = vrot.slane %v195_v8, %v4270_v5  ;;  %v202_v60 = vld [vmem:[%s4275_s20 + $0x148] sm:$0xff] }
  0x4f   : > { %9028 = vst [vmem:[#allocation90_spill] sm:$0xff] %v4738_v4  ;;  %9029 = vst [vmem:[#allocation91_spill] sm:$0xff] %v4741_v49  ;;  %v4756_v4 = vcombine.high %v4712_v31, %v4712_v31  ;;  %v901_v31 = vcombine.high %v197_v44, %v197_v44  ;;  %v4777_v11 = vcombine.high %v4741_v49, %v4741_v49 }
  0x50   : > { %9030 = vst [vmem:[#allocation92_spill] sm:$0xff] %v4746_v52  ;;  %9031 = vst [vmem:[#allocation93_spill] sm:$0xff] %v4749_v14  ;;  %v199_v52 = vld [vmem:[%s4275_s20 + $0x130] sm:$0xff]  ;;  %v4772_v10 = vrot.slane %v867_v1, %v4270_v5  ;;  %v918_v34 = vcombine.high %v198_v47, %v198_v47  ;;  %v4788_v8 = vcombine.high %v4749_v14, %v4749_v14 }
  0x51   : > { %9032 = vst [vmem:[#allocation94_spill] sm:$0xff] %v4752_v29  ;;  %9033 = vst [vmem:[#allocation95_spill] sm:$0xff] %v4756_v4  ;;  %v200_v4 = vld [vmem:[%s4275_s20 + $0x138] sm:$0xff]  ;;  %v4792_v1 = vcombine.high %v4752_v29, %v4752_v29  ;;  %v4795_v49 = vrot.slane %v197_v44, %v4270_v5  ;;  %v4798_v53 = vrot.slane %v901_v31, %v4270_v5 }
  0x52   : > { %9034 = vst [vmem:[#allocation96_spill] sm:$0xff] %v4759_v51  ;;  %9035 = vst [vmem:[#allocation97_spill] sm:$0xff] %v4762_v2  ;;  %v4807_v14 = vcombine.high %v4762_v2, %v4762_v2  ;;  %v4814_v44 = vcombine.high %v4766_v50, %v4766_v50  ;;  %v4818_v31 = vcombine.high %v4769_v46, %v4769_v46 }
  0x53   : > { %9036 = vst [vmem:[#allocation98_spill] sm:$0xff] %v4766_v50  ;;  %9037 = vst [vmem:[#allocation99_spill] sm:$0xff] %v4769_v46  ;;  %v4831_v2 = vcombine.high %v4783_v48, %v4783_v48  ;;  %v969_v46 = vcombine.high %v201_v26, %v201_v26  ;;  %v207_v50 = vld [vmem:[%s4275_s20 + $0x170] sm:$0xff] }
  0x54   : > { %9038 = vst [vmem:[#allocation100_spill] sm:$0xff] %v4772_v10  ;;  %9039 = vst [vmem:[#allocation101_spill] sm:$0xff] %v4777_v11  ;;  %v4803_v11 = vcombine.high %v4759_v51, %v4759_v51  ;;  %v952_v51 = vcombine.high %v200_v4, %v200_v4 }
  0x55   : > { %9040 = vst [vmem:[#allocation102_spill] sm:$0xff] %v4780_v35  ;;  %9041 = vst [vmem:[#allocation103_spill] sm:$0xff] %v4783_v48  ;;  %v205_v48 = vld [vmem:[%s4275_s20 + $0x160] sm:$0xff] }
  0x56   : > { %9042 = vst [vmem:[#allocation104_spill] sm:$0xff] %v4788_v8  ;;  %9043 = vst [vmem:[#allocation105_spill] sm:$0xff] %v4792_v1  ;;  %v4810_v8 = vrot.slane %v198_v47, %v4270_v5  ;;  %v935_v1 = vcombine.high %v199_v52, %v199_v52  ;;  %v4827_v47 = vcombine.high %v4780_v35, %v4780_v35 }
  0x57   : > { %9044 = vst [vmem:[#allocation106_spill] sm:$0xff] %v4795_v49  ;;  %9045 = vst [vmem:[#allocation107_spill] sm:$0xff] %v4798_v53  ;;  %v4846_v35 = vrot.slane %v199_v52, %v4270_v5  ;;  %v4864_v52 = vrot.slane %v201_v26, %v4270_v5 }
  0x58   : > { %9046 = vst [vmem:[#allocation108_spill] sm:$0xff] %v4803_v11  ;;  %9047 = vst [vmem:[#allocation109_spill] sm:$0xff] %v4807_v14  ;;  %v4822_v11 = vcombine.high %v4772_v10, %v4772_v10  ;;  %v203_v14 = vld [vmem:[%s4275_s20 + $0x150] sm:$0xff]  ;;  %v4839_v10 = vcombine.high %v4795_v49, %v4795_v49  ;;  %v4857_v49 = vrot.slane %v200_v4, %v4270_v5 }
  0x59   : > { %9048 = vst [vmem:[#allocation110_spill] sm:$0xff] %v4810_v8  ;;  %9049 = vst [vmem:[#allocation111_spill] sm:$0xff] %v4814_v44  ;;  %v4834_v44 = vrot.slane %v918_v34, %v4270_v5  ;;  %v4851_v34 = vcombine.high %v4810_v8, %v4810_v8  ;;  %v4870_v8 = vrot.slane %v202_v60, %v4270_v5 }
  0x5a   : > { %9050 = vst [vmem:[#allocation112_spill] sm:$0xff] %v4818_v31  ;;  %9051 = vst [vmem:[#allocation113_spill] sm:$0xff] %v4822_v11  ;;  %v204_v31 = vld [vmem:[%s4275_s20 + $0x158] sm:$0xff]  ;;  %v4843_v11 = vcombine.high %v4798_v53, %v4798_v53  ;;  %v4860_v53 = vrot.slane %v952_v51, %v4270_v5  ;;  %v4880_v51 = vrot.slane %v203_v14, %v4270_v5 }
  0x5b   : > { %9052 = vst [vmem:[#allocation114_spill] sm:$0xff] %v4827_v47  ;;  %9053 = vst [vmem:[#allocation115_spill] sm:$0xff] %v4831_v2  ;;  %v986_v47 = vcombine.high %v202_v60, %v202_v60  ;;  %v4854_v2 = vrot.slane %v935_v1, %v4270_v5  ;;  %v1003_v1 = vcombine.high %v203_v14, %v203_v14 }
  0x5c   : > { %9054 = vst [vmem:[#allocation116_spill] sm:$0xff] %v4834_v44  ;;  %9055 = vst [vmem:[#allocation117_spill] sm:$0xff] %v4839_v10  ;;  %v4867_v10 = vrot.slane %v969_v46, %v4270_v5  ;;  %v4874_v4 = vcombine.high %v4834_v44, %v4834_v44  ;;  %v1020_v26 = vcombine.high %v204_v31, %v204_v31  ;;  %v208_v44 = vld [vmem:[%s4275_s20 + $0x178] sm:$0xff] }
  0x5d   : > { %9056 = vst [vmem:[#allocation118_spill] sm:$0xff] %v4843_v11  ;;  %9057 = vst [vmem:[#allocation119_spill] sm:$0xff] %v4846_v35  ;;  %v206_v11 = vld [vmem:[%s4275_s20 + $0x168] sm:$0xff]  ;;  %v4885_v46 = vcombine.high %v4846_v35, %v4846_v35  ;;  %v4888_v60 = vrot.slane %v1003_v1, %v4270_v5  ;;  %v4891_v29 = vrot.slane %v204_v31, %v4270_v5 }
  0x5e   : > { %9058 = vst [vmem:[#allocation120_spill] sm:$0xff] %v4851_v34  ;;  %9059 = vst [vmem:[#allocation121_spill] sm:$0xff] %v4854_v2  ;;  %v4877_v34 = vrot.slane %v986_v47, %v4270_v5  ;;  %v4896_v47 = vcombine.high %v4854_v2, %v4854_v2  ;;  %v4900_v14 = vcombine.high %v4857_v49, %v4857_v49 }
  0x5f   : > { %9060 = vst [vmem:[#allocation122_spill] sm:$0xff] %v4857_v49  ;;  %9061 = vst [vmem:[#allocation123_spill] sm:$0xff] %v4860_v53  ;;  %v4904_v35 = vcombine.high %v4860_v53, %v4860_v53  ;;  %v1054_v1 = vcombine.high %v206_v11, %v206_v11  ;;  %v4909_v31 = vcombine.high %v4864_v52, %v4864_v52 }
  0x60   : > { %9062 = vst [vmem:[#allocation124_spill] sm:$0xff] %v4864_v52  ;;  %9063 = vst [vmem:[#allocation125_spill] sm:$0xff] %v4867_v10  ;;  %v4913_v0 = vcombine.high %v4867_v10, %v4867_v10  ;;  %v4925_v53 = vcombine.high %v4877_v34, %v4877_v34  ;;  %v4929_v49 = vcombine.high %v4880_v51, %v4880_v51  ;;  %v213_v10 = vld [vmem:[%s4275_s20 + $0x1a0] sm:$0xff] }
  0x61   : > { %9064 = vst [vmem:[#allocation126_spill] sm:$0xff] %v4870_v8  ;;  %9065 = vst [vmem:[#allocation127_spill] sm:$0xff] %v4874_v4  ;;  %v1037_v4 = vcombine.high %v205_v48, %v205_v48  ;;  %v4932_v2 = vrot.slane %v205_v48, %v4270_v5  ;;  %v4950_v48 = vrot.slane %v1054_v1, %v4270_v5 }
  0x62   : > { %9066 = vst [vmem:[#allocation128_spill] sm:$0xff] %v4877_v34  ;;  %9067 = vst [vmem:[#allocation129_spill] sm:$0xff] %v4880_v51  ;;  %v211_v51 = vld [vmem:[%s4275_s20 + $0x190] sm:$0xff] }
  0x63   : > { %9068 = vst [vmem:[#allocation130_spill] sm:$0xff] %v4885_v46  ;;  %9069 = vst [vmem:[#allocation131_spill] sm:$0xff] %v4888_v60  ;;  %v209_v46 = vld [vmem:[%s4275_s20 + $0x180] sm:$0xff]  ;;  %v4943_v34 = vrot.slane %v1037_v4, %v4270_v5  ;;  %v4969_v1 = vcombine.high %v4932_v2, %v4932_v2 }
  0x64   : > { %9070 = vst [vmem:[#allocation132_spill] sm:$0xff] %v4891_v29  ;;  %9071 = vst [vmem:[#allocation133_spill] sm:$0xff] %v4896_v47  ;;  %v4917_v47 = vcombine.high %v4870_v8, %v4870_v8  ;;  %v4953_v8 = vrot.slane %v207_v50, %v4270_v5 }
  0x65   : > { %9072 = vst [vmem:[#allocation134_spill] sm:$0xff] %v4900_v14  ;;  %9073 = vst [vmem:[#allocation135_spill] sm:$0xff] %v4904_v35  ;;  %v4920_v14 = vrot.slane %v1020_v26, %v4270_v5  ;;  %v210_v35 = vld [vmem:[%s4275_s20 + $0x188] sm:$0xff]  ;;  %v4940_v26 = vcombine.high %v4891_v29, %v4891_v29  ;;  %v4964_v29 = vrot.slane %v208_v44, %v4270_v5 }
  0x66   : > { %9074 = vst [vmem:[#allocation136_spill] sm:$0xff] %v4909_v31  ;;  %9075 = vst [vmem:[#allocation137_spill] sm:$0xff] %v4913_v0  ;;  %v1071_v0 = vcombine.high %v207_v50, %v207_v50  ;;  %v4975_v31 = vrot.slane %v209_v46, %v4270_v5 }
  0x67   : > { %9076 = vst [vmem:[#allocation138_spill] sm:$0xff] %v4917_v47  ;;  %9077 = vst [vmem:[#allocation139_spill] sm:$0xff] %v4920_v14  ;;  %v4936_v47 = vcombine.high %v4888_v60, %v4888_v60  ;;  %v212_v60 = vld [vmem:[%s4275_s20 + $0x198] sm:$0xff] }
  0x68   : > { %9078 = vst [vmem:[#allocation140_spill] sm:$0xff] %v4925_v53  ;;  %9079 = vst [vmem:[#allocation141_spill] sm:$0xff] %v4929_v49  ;;  %v1088_v53 = vcombine.high %v208_v44, %v208_v44  ;;  %v4947_v49 = vrot.slane %v206_v11, %v4270_v5  ;;  %v4961_v4 = vrot.slane %v1071_v0, %v4270_v5 }
  0x69   : > { %9080 = vst [vmem:[#allocation142_spill] sm:$0xff] %v4932_v2  ;;  %9081 = vst [vmem:[#allocation143_spill] sm:$0xff] %v4936_v47  ;;  %v1105_v47 = vcombine.high %v209_v46, %v209_v46  ;;  %v1122_v11 = vcombine.high %v210_v35, %v210_v35  ;;  %v4983_v44 = vcombine.high %v4943_v34, %v4943_v34 }
  0x6a   : > { %9082 = vst [vmem:[#allocation144_spill] sm:$0xff] %v4940_v26  ;;  %9083 = vst [vmem:[#allocation145_spill] sm:$0xff] %v4943_v34  ;;  %v4958_v26 = vcombine.high %v4920_v14, %v4920_v14  ;;  %v4972_v50 = vrot.slane %v1088_v53, %v4270_v5  ;;  %v4986_v14 = vrot.slane %v210_v35, %v4270_v5  ;;  %v215_v35 = vld [vmem:[%s4275_s20 + $0x1b0] sm:$0xff] }
  0x6b   : > { %9084 = vst [vmem:[#allocation146_spill] sm:$0xff] %v4947_v49  ;;  %9085 = vst [vmem:[#allocation147_spill] sm:$0xff] %v4950_v48  ;;  %v4978_v0 = vrot.slane %v1105_v47, %v4270_v5  ;;  %v1139_v53 = vcombine.high %v211_v51, %v211_v51  ;;  %v4993_v46 = vcombine.high %v4947_v49, %v4947_v49  ;;  %v218_v49 = vld [vmem:[%s4275_s20 + $0x1c8] sm:$0xff] }
  0x6c   : > { %9086 = vst [vmem:[#allocation148_spill] sm:$0xff] %v4953_v8  ;;  %9087 = vst [vmem:[#allocation149_spill] sm:$0xff] %v4958_v26  ;;  %v214_v26 = vld [vmem:[%s4275_s20 + $0x1a8] sm:$0xff]  ;;  %v4997_v47 = vcombine.high %v4950_v48, %v4950_v48  ;;  %v5001_v34 = vcombine.high %v4953_v8, %v4953_v8  ;;  %v5010_v2 = vcombine.high %v4964_v29, %v4964_v29 }
  0x6d   : > { %9088 = vst [vmem:[#allocation150_spill] sm:$0xff] %v4961_v4  ;;  %9089 = vst [vmem:[#allocation151_spill] sm:$0xff] %v4964_v29  ;;  %v1173_v48 = vcombine.high %v213_v10, %v213_v10  ;;  %v5018_v8 = vcombine.high %v4972_v50, %v4972_v50  ;;  %v1190_v29 = vcombine.high %v214_v26, %v214_v26 }
  0x6e   : > { %9090 = vst [vmem:[#allocation152_spill] sm:$0xff] %v4969_v1  ;;  %9091 = vst [vmem:[#allocation153_spill] sm:$0xff] %v4972_v50  ;;  %v4989_v1 = vrot.slane %v1122_v11, %v4270_v5  ;;  %v5006_v11 = vcombine.high %v4961_v4, %v4961_v4  ;;  %v5041_v50 = vrot.slane %v212_v60, %v4270_v5 }
  0x6f   : > { %9092 = vst [vmem:[#allocation154_spill] sm:$0xff] %v4975_v31  ;;  %9093 = vst [vmem:[#allocation155_spill] sm:$0xff] %v4978_v0 }
  0x70   : > { %9094 = vst [vmem:[#allocation156_spill] sm:$0xff] %v4983_v44  ;;  %9095 = vst [vmem:[#allocation157_spill] sm:$0xff] %v4986_v14  ;;  %v1156_v44 = vcombine.high %v212_v60, %v212_v60  ;;  %v5035_v4 = vcombine.high %v4989_v1, %v4989_v1  ;;  %v5061_v60 = vrot.slane %v1190_v29, %v4270_v5 }
  0x71   : > { %9096 = vst [vmem:[#allocation158_spill] sm:$0xff] %v4989_v1  ;;  %9097 = vst [vmem:[#allocation159_spill] sm:$0xff] %v4993_v46  ;;  %v5013_v46 = vrot.slane %v211_v51, %v4270_v5  ;;  %v5031_v51 = vcombine.high %v4986_v14, %v4986_v14  ;;  %v1207_v1 = vcombine.high %v215_v35, %v215_v35  ;;  %v219_v14 = vld [vmem:[%s4275_s20 + $0x1d0] sm:$0xff] }
  0x72   : > { %9098 = vst [vmem:[#allocation160_spill] sm:$0xff] %v4997_v47  ;;  %9099 = vst [vmem:[#allocation161_spill] sm:$0xff] %v5001_v34  ;;  %v216_v47 = vld [vmem:[%s4275_s20 + $0x1b8] sm:$0xff]  ;;  %v5022_v34 = vcombine.high %v4975_v31, %v4975_v31  ;;  %v5080_v29 = vcombine.high %v5041_v50, %v5041_v50 }
  0x73   : > { %9100 = vst [vmem:[#allocation162_spill] sm:$0xff] %v5006_v11  ;;  %9101 = vst [vmem:[#allocation163_spill] sm:$0xff] %v5010_v2  ;;  %v5026_v11 = vcombine.high %v4978_v0, %v4978_v0  ;;  %v217_v2 = vld [vmem:[%s4275_s20 + $0x1c0] sm:$0xff]  ;;  %v5048_v0 = vrot.slane %v213_v10, %v4270_v5  ;;  %v5065_v10 = vrot.slane %v215_v35, %v4270_v5 }
  0x74   : > { %9102 = vst [vmem:[#allocation164_spill] sm:$0xff] %v5013_v46  ;;  %9103 = vst [vmem:[#allocation165_spill] sm:$0xff] %v5018_v8  ;;  %v5038_v8 = vrot.slane %v1139_v53, %v4270_v5  ;;  %v5055_v53 = vcombine.high %v5013_v46, %v5013_v46  ;;  %v1241_v46 = vcombine.high %v217_v2, %v217_v2 }
  0x75   : > { %9104 = vst [vmem:[#allocation166_spill] sm:$0xff] %v5022_v34  ;;  %9105 = vst [vmem:[#allocation167_spill] sm:$0xff] %v5026_v11  ;;  %v5045_v11 = vrot.slane %v1156_v44, %v4270_v5  ;;  %v1224_v44 = vcombine.high %v216_v47, %v216_v47  ;;  %v5071_v34 = vrot.slane %v216_v47, %v4270_v5 }
  0x76   : > { %9106 = vst [vmem:[#allocation168_spill] sm:$0xff] %v5031_v51  ;;  %9107 = vst [vmem:[#allocation169_spill] sm:$0xff] %v5035_v4  ;;  %v5051_v51 = vrot.slane %v1173_v48, %v4270_v5  ;;  %v5058_v4 = vrot.slane %v214_v26, %v4270_v5  ;;  %v5068_v48 = vrot.slane %v1207_v1, %v4270_v5  ;;  %v221_v1 = vld [vmem:[%s4275_s20 + $0x1e0] sm:$0xff] }
  0x77   : > { %9108 = vst [vmem:[#allocation170_spill] sm:$0xff] %v5038_v8  ;;  %9109 = vst [vmem:[#allocation171_spill] sm:$0xff] %v5041_v50  ;;  %v5076_v26 = vcombine.high %v5038_v8, %v5038_v8  ;;  %v5083_v31 = vrot.slane %v1224_v44, %v4270_v5  ;;  %v1258_v35 = vcombine.high %v218_v49, %v218_v49  ;;  %v222_v44 = vld [vmem:[%s4275_s20 + $0x1e8] sm:$0xff] }
  0x78   : > { %9110 = vst [vmem:[#allocation172_spill] sm:$0xff] %v5045_v11  ;;  %9111 = vst [vmem:[#allocation173_spill] sm:$0xff] %v5048_v0  ;;  %v5088_v47 = vcombine.high %v5045_v11, %v5045_v11  ;;  %v5092_v52 = vcombine.high %v5048_v0, %v5048_v0  ;;  %v5104_v50 = vcombine.high %v5058_v4, %v5058_v4 }
  0x79   : > { %9112 = vst [vmem:[#allocation174_spill] sm:$0xff] %v5051_v51  ;;  %9113 = vst [vmem:[#allocation175_spill] sm:$0xff] %v5055_v53  ;;  %v220_v53 = vld [vmem:[%s4275_s20 + $0x1d8] sm:$0xff]  ;;  %v5111_v0 = vrot.slane %v1241_v46, %v4270_v5  ;;  %v5131_v46 = vrot.slane %v218_v49, %v4270_v5 }
  0x7a   : > { %9114 = vst [vmem:[#allocation176_spill] sm:$0xff] %v5058_v4  ;;  %9115 = vst [vmem:[#allocation177_spill] sm:$0xff] %v5061_v60  ;;  %v5123_v4 = vcombine.high %v5071_v34, %v5071_v34 }
  0x7b   : > { %9116 = vst [vmem:[#allocation178_spill] sm:$0xff] %v5065_v10  ;;  %9117 = vst [vmem:[#allocation179_spill] sm:$0xff] %v5068_v48  ;;  %v5149_v49 = vcombine.high %v5111_v0, %v5111_v0 }
  0x7c   : > { %9118 = vst [vmem:[#allocation180_spill] sm:$0xff] %v5071_v34  ;;  %9119 = vst [vmem:[#allocation181_spill] sm:$0xff] %v5076_v26  ;;  %v5096_v26 = vcombine.high %v5051_v51, %v5051_v51  ;;  %v223_v51 = vld [vmem:[%s4275_s20 + $0x1f0] sm:$0xff] }
  0x7d   : > { %9120 = vst [vmem:[#allocation182_spill] sm:$0xff] %v5080_v29  ;;  %9121 = vst [vmem:[#allocation183_spill] sm:$0xff] %v5083_v31  ;;  %v5099_v29 = vrot.slane %v217_v2, %v4270_v5  ;;  %v5119_v2 = vcombine.high %v5068_v48, %v5068_v48  ;;  %v5158_v48 = vrot.slane %v221_v1, %v4270_v5  ;;  %v9219_v56 = vld [vmem:[#allocation168_spill] sm:$0xff] }
  0x7e   : > { %9122 = vst [vmem:[#allocation184_spill] sm:$0xff] %v5088_v47  ;;  %9123 = vst [vmem:[#allocation185_spill] sm:$0xff] %v5092_v52  ;;  %v5108_v47 = vcombine.high %v5061_v60, %v5061_v60  ;;  %v1275_v52 = vcombine.high %v219_v14, %v219_v14  ;;  %v224_v60 = vld [vmem:[%s4275_s20 + $0x1f8] sm:$0xff] }
  0x7f   : > { %9124 = vst [vmem:[#allocation186_spill] sm:$0xff] %v5096_v26  ;;  %9125 = vst [vmem:[#allocation187_spill] sm:$0xff] %v5099_v29  ;;  %v5115_v26 = vcombine.high %v5065_v10, %v5065_v10  ;;  %v5134_v10 = vrot.slane %v1258_v35, %v4270_v5  ;;  %v5152_v35 = vrot.slane %v220_v53, %v4270_v5 }
  0x80   : > { %9126 = vst [vmem:[#allocation188_spill] sm:$0xff] %v5104_v50  ;;  %9127 = vst [vmem:[#allocation189_spill] sm:$0xff] %v5108_v47  ;;  %v1292_v50 = vcombine.high %v220_v53, %v220_v53  ;;  %v5128_v47 = vcombine.high %v5083_v31, %v5083_v31  ;;  %v5145_v34 = vrot.slane %v1275_v52, %v4270_v5  ;;  %v9223_v7 = vld [vmem:[#allocation175_spill] sm:$0xff] }
  0x81   : > { %9128 = vst [vmem:[#allocation190_spill] sm:$0xff] %v5111_v0  ;;  %9129 = vst [vmem:[#allocation191_spill] sm:$0xff] %v5115_v26  ;;  %v1309_v26 = vcombine.high %v221_v1, %v221_v1  ;;  %v1326_v31 = vcombine.high %v222_v44, %v222_v44  ;;  %v5164_v52 = vrot.slane %v222_v44, %v4270_v5 }
  0x82   : > { %9130 = vst [vmem:[#allocation192_spill] sm:$0xff] %v5119_v2  ;;  %9131 = vst [vmem:[#allocation193_spill] sm:$0xff] %v5123_v4  ;;  %v5139_v2 = vcombine.high %v5099_v29, %v5099_v29  ;;  %v5142_v4 = vrot.slane %v219_v14, %v4270_v5  ;;  %v1343_v0 = vcombine.high %v223_v51, %v223_v51 }
  0x83   : > { %9132 = vst [vmem:[#allocation194_spill] sm:$0xff] %v5128_v47  ;;  %9133 = vst [vmem:[#allocation195_spill] sm:$0xff] %v5131_v46  ;;  %v5155_v47 = vrot.slane %v1292_v50, %v4270_v5  ;;  %v5161_v14 = vrot.slane %v1309_v26, %v4270_v5  ;;  %v5171_v53 = vcombine.high %v5131_v46, %v5131_v46 }
  0x84   : > { %9134 = vst [vmem:[#allocation196_spill] sm:$0xff] %v5139_v2  ;;  %9135 = vst [vmem:[#allocation197_spill] sm:$0xff] %v5149_v49  ;;  %v5167_v2 = vrot.slane %v1326_v31, %v4270_v5  ;;  %v5175_v50 = vcombine.high %v5134_v10, %v5134_v10  ;;  %v5178_v1 = vrot.slane %v223_v51, %v4270_v5 }
  0x85   : > { %9136 = vst [vmem:[#allocation198_spill] sm:$0xff] %v5158_v48  ;;  %9137 = vst [vmem:[#allocation199_spill] sm:$0xff] %v5161_v14  ;;  %v1360_v26 = vcombine.high %v224_v60, %v224_v60  ;;  %v5182_v44 = vcombine.high %v5142_v4, %v5142_v4  ;;  %v5186_v31 = vcombine.high %v5145_v34, %v5145_v34  ;;  %v9227_v36 = vld [vmem:[#allocation184_spill] sm:$0xff] }
  0x86   : > { %9138 = vst [vmem:[#allocation200_spill] sm:$0xff] %v5164_v52  ;;  %9139 = vst [vmem:[#allocation201_spill] sm:$0xff] %v5167_v2  ;;  %v5189_v49 = vrot.slane %v1343_v0, %v4270_v5  ;;  %v5200_v51 = vcombine.high %v5155_v47, %v5155_v47  ;;  %v5211_v0 = vcombine.high %v5161_v14, %v5161_v14  ;;  %v9226_v14 = vld [vmem:[#allocation182_spill] sm:$0xff] }
  0x87   : > { %9140 = vst [vmem:[#allocation202_spill] sm:$0xff] %v5171_v53  ;;  %9141 = vst [vmem:[#allocation203_spill] sm:$0xff] %v5175_v50  ;;  %v5192_v53 = vrot.slane %v224_v60, %v4270_v5  ;;  %v5196_v50 = vcombine.high %v5152_v35, %v5152_v35  ;;  %v5215_v60 = vcombine.high %v5164_v52, %v5164_v52 }
  0x88   : > { %9142 = vst [vmem:[#allocation204_spill] sm:$0xff] %v5178_v1  ;;  %9143 = vst [vmem:[#allocation205_spill] sm:$0xff] %v5182_v44  ;;  %v5204_v44 = vcombine.high %v5158_v48, %v5158_v48  ;;  %v9217_v48 = vld [vmem:[#allocation167_spill] sm:$0xff]  ;;  %v9236_v46 = vmov %v5200_v51 }
  0x89   : > { %9144 = vst [vmem:[#allocation206_spill] sm:$0xff] %v5186_v31  ;;  %9145 = vst [vmem:[#allocation207_spill] sm:$0xff] %v5189_v49  ;;  %v5207_v31 = vrot.slane %v1360_v26, %v4270_v5  ;;  %v5228_v5 = vcombine.high %v5189_v49, %v5189_v49  ;;  %v9241_v26 = vrot.slane %v4287_v17, 9 }
  0x8a   : > { %9146 = vst [vmem:[#allocation208_spill] sm:$0xff] %v5192_v53  ;;  %9147 = vst [vmem:[#allocation209_spill] sm:$0xff] %v5196_v50  ;;  %v5219_v50 = vcombine.high %v5167_v2, %v5167_v2  ;;  %v9224_v2 = vld [vmem:[#allocation181_spill] sm:$0xff] }
  0x8b   : > { %9148 = vst [vmem:[#allocation210_spill] sm:$0xff] %v5200_v51  ;;  %9149 = vst [vmem:[#allocation211_spill] sm:$0xff] %v5204_v44  ;;  %v5224_v44 = vcombine.high %v5178_v1, %v5178_v1  ;;  %v9228_v61 = vld [vmem:[#allocation196_spill] sm:$0xff]  ;;  %v9230_v12 = vld [vmem:[#allocation197_spill] sm:$0xff]  ;;  %v9239_v51 = vrot.slane %v4294_v20, 9 }
  0x8c   : > { %9150 = vst [vmem:[#allocation212_spill] sm:$0xff] %v5207_v31  ;;  %9151 = vst [vmem:[#allocation213_spill] sm:$0xff] %v5211_v0  ;;  %v9237_v0 = vrot.slane %v4283_v13, 9 }
  0x8d   : > { %9152 = vst [vmem:[#allocation214_spill] sm:$0xff] %v5215_v60  ;;  %9153 = vst [vmem:[#allocation215_spill] sm:$0xff] %v5219_v50  ;;  %v5234_v60 = vcombine.high %v5192_v53, %v5192_v53  ;;  %v5238_v50 = vcombine.high %v5207_v31, %v5207_v31  ;;  %v9213_v31 = vld [vmem:[#allocation149_spill] sm:$0xff]  ;;  %v9238_v53 = vrot.slane %v4312_v28, 9 }
  0x8e   : > { %9154 = vst [vmem:[#allocation216_spill] sm:$0xff] %v5224_v44  ;;  %9155 = vst [vmem:[#allocation217_spill] sm:$0xff] %v5228_v5  ;;  %v9231_v8 = vld [vmem:[#allocation202_spill] sm:$0xff]  ;;  %v9232_v52 = vld [vmem:[#allocation203_spill] sm:$0xff]  ;;  %v5368_v49 = vadd.f32 %v9237_v0, %v4283_v13  ;;  %v5378_v44 = vadd.f32 %v9239_v51, %v4294_v20  ;;  %v9240_v5 = vrot.slane %v4334_v37, 9  ;;  %v5388_v13 = vadd.f32 %v9241_v26, %v4287_v17 }
  0x8f   : > { %9156 = vst [vmem:[#allocation218_spill] sm:$0xff] %v5234_v60  ;;  %9157 = vst [vmem:[#allocation219_spill] sm:$0xff] %v5238_v50  ;;  %v9233_v11 = vld [vmem:[#allocation205_spill] sm:$0xff]  ;;  %v5373_v60 = vadd.f32 %v9238_v53, %v4312_v28  ;;  %v9242_v0 = vrot.slane %v4322_v32, 9  ;;  %v9243_v53 = vrot.slane %v4297_v21, 9  ;;  %v9244_v51 = vrot.slane %v4338_v38, 9 }
  0x90   : > { %v9234_v29 = vld [vmem:[#allocation206_spill] sm:$0xff]  ;;  %v5383_v1 = vadd.f32 %v9240_v5, %v4334_v37  ;;  %v9245_v5 = vrot.slane %v4290_v18, 9  ;;  %v9246_v26 = vrot.slane %v4326_v33, 9 }
  0x91   : > { %v9235_v55 = vld [vmem:[#allocation209_spill] sm:$0xff]  ;;  %v5393_v28 = vadd.f32 %v9242_v0, %v4322_v32  ;;  %v5398_v20 = vadd.f32 %v9243_v53, %v4297_v21  ;;  %v5403_v37 = vadd.f32 %v9244_v51, %v4338_v38  ;;  %v9247_v0 = vrot.slane %v4304_v24, 9 }
  0x92   : > { %v5408_v17 = vadd.f32 %v9245_v5, %v4290_v18  ;;  %v5413_v32 = vadd.f32 %v9246_v26, %v4326_v33  ;;  %v9248_v53 = vrot.slane %v4347_v42, 9  ;;  %v9249_v51 = vrot.slane %v4300_v22, 9 }
  0x93   : > { %v5418_v21 = vadd.f32 %v9247_v0, %v4304_v24  ;;  %v9250_v5 = vrot.slane %v4342_v39, 9  ;;  %v9251_v26 = vrot.slane %v4307_v25, 9  ;;  %v9252_v0 = vrot.slane %v4351_v43, 9 }
  0x94   : > { %v5423_v38 = vadd.f32 %v9248_v53, %v4347_v42  ;;  %v5428_v18 = vadd.f32 %v9249_v51, %v4300_v22  ;;  %v9253_v53 = vrot.slane %v4384_v57, 9  ;;  %v9254_v51 = vrot.slane %v4429_v15, 9 }
  0x95   : > { %v5433_v33 = vadd.f32 %v9250_v5, %v4342_v39  ;;  %v5438_v24 = vadd.f32 %v9251_v26, %v4307_v25  ;;  %v5443_v42 = vadd.f32 %v9252_v0, %v4351_v43  ;;  %v9255_v5 = vrot.slane %v4387_v58, 9 }
  0x96   : > { %v5448_v22 = vadd.f32 %v9253_v53, %v4384_v57  ;;  %v5453_v39 = vadd.f32 %v9254_v51, %v4429_v15  ;;  %v9256_v26 = vrot.slane %v4433_v16, 9  ;;  %v9257_v0 = vrot.slane %v4390_v59, 9 }
  0x97   : > { %v5458_v25 = vadd.f32 %v9255_v5, %v4387_v58  ;;  %v9258_v53 = vrot.slane %v4437_v19, 9  ;;  %v9259_v51 = vrot.slane %v4397_v62, 9  ;;  %v9260_v5 = vrot.slane %v4445_v27, 9 }
  0x98   : > { %v5463_v43 = vadd.f32 %v9256_v26, %v4433_v16  ;;  %v5468_v57 = vadd.f32 %v9257_v0, %v4390_v59  ;;  %v9261_v26 = vrot.slane %v4400_v63, 9  ;;  %v9262_v0 = vrot.slane %v4449_v30, 9 }
  0x99   : > { %v5473_v15 = vadd.f32 %v9258_v53, %v4437_v19  ;;  %v5478_v58 = vadd.f32 %v9259_v51, %v4397_v62  ;;  %v5483_v16 = vadd.f32 %v9260_v5, %v4445_v27  ;;  %v9263_v53 = vrot.slane %v4408_v3, 9 }
  0x9a   : > { %v5488_v59 = vadd.f32 %v9261_v26, %v4400_v63  ;;  %v5493_v19 = vadd.f32 %v9262_v0, %v4449_v30  ;;  %v9264_v51 = vrot.slane %v4456_v40, 9  ;;  %v9265_v5 = vrot.slane %v4411_v6, 9 }
  0x9b   : > { %v5498_v62 = vadd.f32 %v9263_v53, %v4408_v3  ;;  %v9266_v26 = vrot.slane %v4460_v41, 9  ;;  %v9267_v0 = vrot.slane %v4440_v23, 9  ;;  %v9269_v53 = vrot.slane %v4478_v54, 9 }
  0x9c   : > { %v5503_v27 = vadd.f32 %v9264_v51, %v4456_v40  ;;  %v5508_v63 = vadd.f32 %v9265_v5, %v4411_v6  ;;  %v9271_v51 = vrot.slane %v4495_v9, 9  ;;  %v9273_v5 = vrot.slane %v4542_v45, 9 }
  0x9d   : > { %v5513_v30 = vadd.f32 %v9266_v26, %v4460_v41  ;;  %v5518_v3 = vadd.f32 %v9267_v0, %v4440_v23  ;;  %v5523_v40 = vadd.f32 %v9269_v53, %v4478_v54  ;;  %v9275_v26 = vld [vmem:[#allocation28_spill] sm:$0xff]  ;;  %v9278_v0 = vld [vmem:[#allocation39_spill] sm:$0xff]  ;;  %v9281_v53 = vld [vmem:[#allocation30_spill] sm:$0xff] }
  0x9e   : > { %v5528_v6 = vadd.f32 %v9271_v51, %v4495_v9  ;;  %v5533_v41 = vadd.f32 %v9273_v5, %v4542_v45  ;;  %v9276_v50 = vrot.slane %v9275_v26, 9  ;;  %v9284_v51 = vld [vmem:[#allocation40_spill] sm:$0xff]  ;;  %v9287_v5 = vld [vmem:[#allocation31_spill] sm:$0xff] }
  0x9f   : > { %9268 = vst [vmem:[#allocation149_spill] sm:$0xff] %v5518_v3  ;;  %9270 = vst [vmem:[#allocation167_spill] sm:$0xff] %v5523_v40  ;;  %v9279_v3 = vrot.slane %v9278_v0, 9  ;;  %v9282_v40 = vrot.slane %v9281_v53, 9 }
  0xa0   : > { %9272 = vst [vmem:[#allocation168_spill] sm:$0xff] %v5528_v6  ;;  %9274 = vst [vmem:[#allocation175_spill] sm:$0xff] %v5533_v41  ;;  %v5538_v23 = vadd.f32 %v9276_v50, %v9275_v26  ;;  %v9285_v6 = vrot.slane %v9284_v51, 9  ;;  %v9288_v41 = vrot.slane %v9287_v5, 9  ;;  %v9290_v26 = vld [vmem:[#allocation41_spill] sm:$0xff] }
  0xa1   : > { %v5543_v54 = vadd.f32 %v9279_v3, %v9278_v0  ;;  %v5548_v9 = vadd.f32 %v9282_v40, %v9281_v53  ;;  %v9293_v0 = vld [vmem:[#allocation37_spill] sm:$0xff]  ;;  %v9296_v53 = vld [vmem:[#allocation47_spill] sm:$0xff] }
  0xa2   : > { %9277 = vst [vmem:[#allocation181_spill] sm:$0xff] %v5538_v23  ;;  %v5553_v45 = vadd.f32 %v9285_v6, %v9284_v51  ;;  %v5558_v50 = vadd.f32 %v9288_v41, %v9287_v5  ;;  %v9291_v23 = vrot.slane %v9290_v26, 9  ;;  %v9299_v51 = vld [vmem:[#allocation42_spill] sm:$0xff]  ;;  %v9302_v5 = vld [vmem:[#allocation53_spill] sm:$0xff] }
  0xa3   : > { %9280 = vst [vmem:[#allocation182_spill] sm:$0xff] %v5543_v54  ;;  %9283 = vst [vmem:[#allocation184_spill] sm:$0xff] %v5548_v9  ;;  %v9294_v54 = vrot.slane %v9293_v0, 9  ;;  %v9297_v9 = vrot.slane %v9296_v53, 9 }
  0xa4   : > { %9286 = vst [vmem:[#allocation196_spill] sm:$0xff] %v5553_v45  ;;  %9289 = vst [vmem:[#allocation197_spill] sm:$0xff] %v5558_v50  ;;  %v5563_v3 = vadd.f32 %v9291_v23, %v9290_v26  ;;  %v9300_v45 = vrot.slane %v9299_v51, 9  ;;  %v9303_v50 = vrot.slane %v9302_v5, 9  ;;  %v9305_v26 = vld [vmem:[#allocation43_spill] sm:$0xff] }
  0xa5   : > { %v5568_v40 = vadd.f32 %v9294_v54, %v9293_v0  ;;  %v5573_v6 = vadd.f32 %v9297_v9, %v9296_v53  ;;  %v9308_v0 = vld [vmem:[#allocation54_spill] sm:$0xff]  ;;  %v9311_v53 = vld [vmem:[#allocation44_spill] sm:$0xff] }
  0xa6   : > { %9292 = vst [vmem:[#allocation202_spill] sm:$0xff] %v5563_v3  ;;  %v5578_v41 = vadd.f32 %v9300_v45, %v9299_v51  ;;  %v5583_v23 = vadd.f32 %v9303_v50, %v9302_v5  ;;  %v9306_v3 = vrot.slane %v9305_v26, 9  ;;  %v9314_v51 = vld [vmem:[#allocation56_spill] sm:$0xff]  ;;  %v9317_v5 = vld [vmem:[#allocation59_spill] sm:$0xff] }
  0xa7   : > { %9295 = vst [vmem:[#allocation203_spill] sm:$0xff] %v5568_v40  ;;  %9298 = vst [vmem:[#allocation205_spill] sm:$0xff] %v5573_v6  ;;  %v9309_v40 = vrot.slane %v9308_v0, 9  ;;  %v9312_v6 = vrot.slane %v9311_v53, 9 }
  0xa8   : > { %9301 = vst [vmem:[#allocation206_spill] sm:$0xff] %v5578_v41  ;;  %9304 = vst [vmem:[#allocation209_spill] sm:$0xff] %v5583_v23  ;;  %v5588_v54 = vadd.f32 %v9306_v3, %v9305_v26  ;;  %v9315_v41 = vrot.slane %v9314_v51, 9  ;;  %v9318_v23 = vrot.slane %v9317_v5, 9  ;;  %v9320_v26 = vld [vmem:[#allocation69_spill] sm:$0xff] }
  0xa9   : > { %v5593_v9 = vadd.f32 %v9309_v40, %v9308_v0  ;;  %v5598_v45 = vadd.f32 %v9312_v6, %v9311_v53  ;;  %v9323_v0 = vld [vmem:[#allocation62_spill] sm:$0xff]  ;;  %v9326_v53 = vld [vmem:[#allocation72_spill] sm:$0xff] }
  0xaa   : > { %9307 = vst [vmem:[#allocation210_spill] sm:$0xff] %v5588_v54  ;;  %v5603_v50 = vadd.f32 %v9315_v41, %v9314_v51  ;;  %v5608_v3 = vadd.f32 %v9318_v23, %v9317_v5  ;;  %v9321_v54 = vrot.slane %v9320_v26, 9  ;;  %v9329_v51 = vld [vmem:[#allocation67_spill] sm:$0xff] }
  0xab   : > { %9310 = vst [vmem:[#allocation28_spill] sm:$0xff] %v5593_v9  ;;  %9313 = vst [vmem:[#allocation39_spill] sm:$0xff] %v5598_v45  ;;  %v9324_v9 = vrot.slane %v9323_v0, 9  ;;  %v9327_v45 = vrot.slane %v9326_v53, 9  ;;  %v9332_v5 = vld [vmem:[#allocation79_spill] sm:$0xff] }
  0xac   : > { %9316 = vst [vmem:[#allocation30_spill] sm:$0xff] %v5603_v50  ;;  %9319 = vst [vmem:[#allocation40_spill] sm:$0xff] %v5608_v3  ;;  %v5613_v40 = vadd.f32 %v9321_v54, %v9320_v26  ;;  %v9330_v50 = vrot.slane %v9329_v51, 9  ;;  %v9333_v3 = vrot.slane %v9332_v5, 9  ;;  %v9335_v26 = vld [vmem:[#allocation68_spill] sm:$0xff] }
  0xad   : > { %v5618_v6 = vadd.f32 %v9324_v9, %v9323_v0  ;;  %v5623_v41 = vadd.f32 %v9327_v45, %v9326_v53  ;;  %v9338_v0 = vld [vmem:[#allocation80_spill] sm:$0xff]  ;;  %v9341_v53 = vld [vmem:[#allocation70_spill] sm:$0xff] }
  0xae   : > { %9322 = vst [vmem:[#allocation31_spill] sm:$0xff] %v5613_v40  ;;  %v5628_v23 = vadd.f32 %v9330_v50, %v9329_v51  ;;  %v5633_v54 = vadd.f32 %v9333_v3, %v9332_v5  ;;  %v9336_v40 = vrot.slane %v9335_v26, 9  ;;  %v9344_v51 = vld [vmem:[#allocation82_spill] sm:$0xff]  ;;  %v9347_v5 = vld [vmem:[#allocation71_spill] sm:$0xff] }
  0xaf   : > { %9325 = vst [vmem:[#allocation41_spill] sm:$0xff] %v5618_v6  ;;  %9328 = vst [vmem:[#allocation37_spill] sm:$0xff] %v5623_v41  ;;  %v9339_v6 = vrot.slane %v9338_v0, 9  ;;  %v9342_v41 = vrot.slane %v9341_v53, 9 }
  0xb0   : > { %9331 = vst [vmem:[#allocation47_spill] sm:$0xff] %v5628_v23  ;;  %9334 = vst [vmem:[#allocation42_spill] sm:$0xff] %v5633_v54  ;;  %v5638_v9 = vadd.f32 %v9336_v40, %v9335_v26  ;;  %v9345_v23 = vrot.slane %v9344_v51, 9  ;;  %v9348_v54 = vrot.slane %v9347_v5, 9  ;;  %v9350_v26 = vld [vmem:[#allocation83_spill] sm:$0xff] }
  0xb1   : > { %v5643_v45 = vadd.f32 %v9339_v6, %v9338_v0  ;;  %v5648_v50 = vadd.f32 %v9342_v41, %v9341_v53  ;;  %v9353_v0 = vld [vmem:[#allocation73_spill] sm:$0xff] }
  0xb2   : > { %9337 = vst [vmem:[#allocation53_spill] sm:$0xff] %v5638_v9  ;;  %v5653_v3 = vadd.f32 %v9345_v23, %v9344_v51  ;;  %v5658_v40 = vadd.f32 %v9348_v54, %v9347_v5  ;;  %v9351_v9 = vrot.slane %v9350_v26, 9  ;;  %v9356_v53 = vld [vmem:[#allocation85_spill] sm:$0xff]  ;;  %v9359_v51 = vld [vmem:[#allocation74_spill] sm:$0xff] }
  0xb3   : > { %9340 = vst [vmem:[#allocation43_spill] sm:$0xff] %v5643_v45  ;;  %9343 = vst [vmem:[#allocation54_spill] sm:$0xff] %v5648_v50  ;;  %v9354_v45 = vrot.slane %v9353_v0, 9  ;;  %v9357_v50 = vrot.slane %v9356_v53, 9  ;;  %v9362_v5 = vld [vmem:[#allocation86_spill] sm:$0xff] }
  0xb4   : > { %9346 = vst [vmem:[#allocation44_spill] sm:$0xff] %v5653_v3  ;;  %9349 = vst [vmem:[#allocation56_spill] sm:$0xff] %v5658_v40  ;;  %v5663_v6 = vadd.f32 %v9351_v9, %v9350_v26  ;;  %v9360_v3 = vrot.slane %v9359_v51, 9  ;;  %v9363_v40 = vrot.slane %v9362_v5, 9  ;;  %v9365_v26 = vld [vmem:[#allocation94_spill] sm:$0xff] }
  0xb5   : > { %v5668_v41 = vadd.f32 %v9354_v45, %v9353_v0  ;;  %v5673_v23 = vadd.f32 %v9357_v50, %v9356_v53  ;;  %v9368_v0 = vld [vmem:[#allocation105_spill] sm:$0xff]  ;;  %v9371_v53 = vld [vmem:[#allocation96_spill] sm:$0xff] }
  0xb6   : > { %9352 = vst [vmem:[#allocation59_spill] sm:$0xff] %v5663_v6  ;;  %v5678_v54 = vadd.f32 %v9360_v3, %v9359_v51  ;;  %v5683_v9 = vadd.f32 %v9363_v40, %v9362_v5  ;;  %v9366_v6 = vrot.slane %v9365_v26, 9  ;;  %v9374_v51 = vld [vmem:[#allocation108_spill] sm:$0xff]  ;;  %v9377_v5 = vld [vmem:[#allocation97_spill] sm:$0xff] }
  0xb7   : > { %9355 = vst [vmem:[#allocation69_spill] sm:$0xff] %v5668_v41  ;;  %9358 = vst [vmem:[#allocation62_spill] sm:$0xff] %v5673_v23  ;;  %v9369_v41 = vrot.slane %v9368_v0, 9  ;;  %v9372_v23 = vrot.slane %v9371_v53, 9 }
  0xb8   : > { %9361 = vst [vmem:[#allocation72_spill] sm:$0xff] %v5678_v54  ;;  %9364 = vst [vmem:[#allocation67_spill] sm:$0xff] %v5683_v9  ;;  %v5688_v45 = vadd.f32 %v9366_v6, %v9365_v26  ;;  %v9375_v54 = vrot.slane %v9374_v51, 9  ;;  %v9378_v9 = vrot.slane %v9377_v5, 9  ;;  %v9380_v26 = vld [vmem:[#allocation109_spill] sm:$0xff] }
  0xb9   : > { %v5693_v50 = vadd.f32 %v9369_v41, %v9368_v0  ;;  %v5698_v3 = vadd.f32 %v9372_v23, %v9371_v53  ;;  %v9383_v0 = vld [vmem:[#allocation98_spill] sm:$0xff]  ;;  %v9386_v53 = vld [vmem:[#allocation111_spill] sm:$0xff] }
  0xba   : > { %9367 = vst [vmem:[#allocation79_spill] sm:$0xff] %v5688_v45  ;;  %v5703_v40 = vadd.f32 %v9375_v54, %v9374_v51  ;;  %v5708_v6 = vadd.f32 %v9378_v9, %v9377_v5  ;;  %v9381_v45 = vrot.slane %v9380_v26, 9  ;;  %v9389_v51 = vld [vmem:[#allocation99_spill] sm:$0xff]  ;;  %v9392_v5 = vld [vmem:[#allocation112_spill] sm:$0xff] }
  0xbb   : > { %9370 = vst [vmem:[#allocation68_spill] sm:$0xff] %v5693_v50  ;;  %9373 = vst [vmem:[#allocation80_spill] sm:$0xff] %v5698_v3  ;;  %v9384_v50 = vrot.slane %v9383_v0, 9  ;;  %v9387_v3 = vrot.slane %v9386_v53, 9 }
  0xbc   : > { %9376 = vst [vmem:[#allocation70_spill] sm:$0xff] %v5703_v40  ;;  %9379 = vst [vmem:[#allocation82_spill] sm:$0xff] %v5708_v6  ;;  %v5713_v41 = vadd.f32 %v9381_v45, %v9380_v26  ;;  %v9390_v40 = vrot.slane %v9389_v51, 9  ;;  %v9393_v6 = vrot.slane %v9392_v5, 9  ;;  %v9395_v26 = vld [vmem:[#allocation100_spill] sm:$0xff] }
  0xbd   : > { %v5718_v23 = vadd.f32 %v9384_v50, %v9383_v0  ;;  %v5723_v54 = vadd.f32 %v9387_v3, %v9386_v53  ;;  %v9398_v0 = vld [vmem:[#allocation113_spill] sm:$0xff]  ;;  %v9401_v53 = vld [vmem:[#allocation102_spill] sm:$0xff] }
  0xbe   : > { %9382 = vst [vmem:[#allocation71_spill] sm:$0xff] %v5713_v41  ;;  %v5728_v9 = vadd.f32 %v9390_v40, %v9389_v51  ;;  %v5733_v45 = vadd.f32 %v9393_v6, %v9392_v5  ;;  %v9396_v41 = vrot.slane %v9395_v26, 9  ;;  %v9404_v51 = vld [vmem:[#allocation114_spill] sm:$0xff]  ;;  %v9407_v5 = vld [vmem:[#allocation103_spill] sm:$0xff] }
  0xbf   : > { %9385 = vst [vmem:[#allocation83_spill] sm:$0xff] %v5718_v23  ;;  %9388 = vst [vmem:[#allocation73_spill] sm:$0xff] %v5723_v54  ;;  %v9399_v23 = vrot.slane %v9398_v0, 9  ;;  %v9402_v54 = vrot.slane %v9401_v53, 9 }
  0xc0   : > { %9391 = vst [vmem:[#allocation85_spill] sm:$0xff] %v5728_v9  ;;  %9394 = vst [vmem:[#allocation74_spill] sm:$0xff] %v5733_v45  ;;  %v5738_v50 = vadd.f32 %v9396_v41, %v9395_v26  ;;  %v9405_v9 = vrot.slane %v9404_v51, 9  ;;  %v9408_v45 = vrot.slane %v9407_v5, 9  ;;  %v9410_v26 = vld [vmem:[#allocation115_spill] sm:$0xff] }
  0xc1   : > { %v5743_v3 = vadd.f32 %v9399_v23, %v9398_v0  ;;  %v5748_v40 = vadd.f32 %v9402_v54, %v9401_v53  ;;  %v9413_v0 = vld [vmem:[#allocation124_spill] sm:$0xff] }
  0xc2   : > { %9397 = vst [vmem:[#allocation86_spill] sm:$0xff] %v5738_v50  ;;  %v5753_v6 = vadd.f32 %v9405_v9, %v9404_v51  ;;  %v5758_v41 = vadd.f32 %v9408_v45, %v9407_v5  ;;  %v9411_v50 = vrot.slane %v9410_v26, 9  ;;  %v9416_v53 = vld [vmem:[#allocation136_spill] sm:$0xff]  ;;  %v9419_v51 = vld [vmem:[#allocation125_spill] sm:$0xff] }
  0xc3   : > { %9400 = vst [vmem:[#allocation94_spill] sm:$0xff] %v5743_v3  ;;  %9403 = vst [vmem:[#allocation105_spill] sm:$0xff] %v5748_v40  ;;  %v9414_v3 = vrot.slane %v9413_v0, 9  ;;  %v9417_v40 = vrot.slane %v9416_v53, 9  ;;  %v9422_v5 = vld [vmem:[#allocation137_spill] sm:$0xff] }
  0xc4   : > { %9406 = vst [vmem:[#allocation96_spill] sm:$0xff] %v5753_v6  ;;  %9409 = vst [vmem:[#allocation108_spill] sm:$0xff] %v5758_v41  ;;  %v5763_v23 = vadd.f32 %v9411_v50, %v9410_v26  ;;  %v9420_v6 = vrot.slane %v9419_v51, 9  ;;  %v9423_v41 = vrot.slane %v9422_v5, 9  ;;  %v9425_v26 = vld [vmem:[#allocation126_spill] sm:$0xff] }
  0xc5   : > { %v5768_v54 = vadd.f32 %v9414_v3, %v9413_v0  ;;  %v5773_v9 = vadd.f32 %v9417_v40, %v9416_v53  ;;  %v9428_v0 = vld [vmem:[#allocation138_spill] sm:$0xff]  ;;  %v9431_v53 = vld [vmem:[#allocation128_spill] sm:$0xff] }
  0xc6   : > { %9412 = vst [vmem:[#allocation97_spill] sm:$0xff] %v5763_v23  ;;  %v5778_v45 = vadd.f32 %v9420_v6, %v9419_v51  ;;  %v5783_v50 = vadd.f32 %v9423_v41, %v9422_v5  ;;  %v9426_v23 = vrot.slane %v9425_v26, 9  ;;  %v9434_v51 = vld [vmem:[#allocation140_spill] sm:$0xff]  ;;  %v9437_v5 = vld [vmem:[#allocation129_spill] sm:$0xff] }
  0xc7   : > { %9415 = vst [vmem:[#allocation109_spill] sm:$0xff] %v5768_v54  ;;  %9418 = vst [vmem:[#allocation98_spill] sm:$0xff] %v5773_v9  ;;  %v9429_v54 = vrot.slane %v9428_v0, 9  ;;  %v9432_v9 = vrot.slane %v9431_v53, 9 }
  0xc8   : > { %9421 = vst [vmem:[#allocation111_spill] sm:$0xff] %v5778_v45  ;;  %9424 = vst [vmem:[#allocation99_spill] sm:$0xff] %v5783_v50  ;;  %v5788_v3 = vadd.f32 %v9426_v23, %v9425_v26  ;;  %v9435_v45 = vrot.slane %v9434_v51, 9  ;;  %v9438_v50 = vrot.slane %v9437_v5, 9  ;;  %v9440_v26 = vld [vmem:[#allocation141_spill] sm:$0xff] }
  0xc9   : > { %v5793_v40 = vadd.f32 %v9429_v54, %v9428_v0  ;;  %v5798_v6 = vadd.f32 %v9432_v9, %v9431_v53  ;;  %v9443_v0 = vld [vmem:[#allocation131_spill] sm:$0xff] }
  0xca   : > { %9427 = vst [vmem:[#allocation112_spill] sm:$0xff] %v5788_v3  ;;  %v5803_v41 = vadd.f32 %v9435_v45, %v9434_v51  ;;  %v5808_v23 = vadd.f32 %v9438_v50, %v9437_v5  ;;  %v9441_v3 = vrot.slane %v9440_v26, 9  ;;  %v9445_v53 = vld [vmem:[#allocation143_spill] sm:$0xff]  ;;  %v9448_v51 = vld [vmem:[#allocation132_spill] sm:$0xff] }
  0xcb   : > { %9430 = vst [vmem:[#allocation100_spill] sm:$0xff] %v5793_v40  ;;  %9433 = vst [vmem:[#allocation113_spill] sm:$0xff] %v5798_v6  ;;  %v9444_v40 = vrot.slane %v9443_v0, 9  ;;  %v9446_v6 = vrot.slane %v9445_v53, 9  ;;  %v9451_v5 = vld [vmem:[#allocation144_spill] sm:$0xff] }
  0xcc   : > { %9436 = vst [vmem:[#allocation102_spill] sm:$0xff] %v5803_v41  ;;  %9439 = vst [vmem:[#allocation114_spill] sm:$0xff] %v5808_v23  ;;  %v5813_v54 = vadd.f32 %v9441_v3, %v9440_v26  ;;  %v9449_v41 = vrot.slane %v9448_v51, 9  ;;  %v9452_v23 = vrot.slane %v9451_v5, 9  ;;  %v9454_v26 = vld [vmem:[#allocation139_spill] sm:$0xff] }
  0xcd   : > { %v5818_v9 = vadd.f32 %v9444_v40, %v9443_v0  ;;  %v5823_v45 = vadd.f32 %v9446_v6, %v9445_v53  ;;  %v9456_v0 = vrot.slane %v9213_v31, 9  ;;  %v9458_v53 = vld [vmem:[#allocation154_spill] sm:$0xff] }
  0xce   : > { %9442 = vst [vmem:[#allocation103_spill] sm:$0xff] %v5813_v54  ;;  %v5828_v50 = vadd.f32 %v9449_v41, %v9448_v51  ;;  %v5833_v3 = vadd.f32 %v9452_v23, %v9451_v5  ;;  %v9455_v54 = vrot.slane %v9454_v26, 9  ;;  %v9460_v51 = vld [vmem:[#allocation166_spill] sm:$0xff]  ;;  %v9463_v5 = vld [vmem:[#allocation155_spill] sm:$0xff] }
  0xcf   : > { %9447 = vst [vmem:[#allocation115_spill] sm:$0xff] %v5823_v45  ;;  %v5843_v6 = vadd.f32 %v9456_v0, %v9213_v31  ;;  %v9459_v45 = vrot.slane %v9458_v53, 9  ;;  %v9468_v0 = vld [vmem:[#allocation157_spill] sm:$0xff] }
  0xd0   : > { %9450 = vst [vmem:[#allocation124_spill] sm:$0xff] %v5828_v50  ;;  %9453 = vst [vmem:[#allocation136_spill] sm:$0xff] %v5833_v3  ;;  %v5838_v40 = vadd.f32 %v9455_v54, %v9454_v26  ;;  %v9461_v50 = vrot.slane %v9460_v51, 9  ;;  %v9464_v3 = vrot.slane %v9463_v5, 9  ;;  %v9466_v26 = vrot.slane %v9217_v48, 9 }
  0xd1   : > { %9457 = vst [vmem:[#allocation125_spill] sm:$0xff] %v5843_v6  ;;  %v5848_v41 = vadd.f32 %v9459_v45, %v9458_v53  ;;  %v9469_v6 = vrot.slane %v9468_v0, 9  ;;  %v9470_v53 = vrot.slane %v9219_v56, 9 }
  0xd2   : > { %v5853_v23 = vadd.f32 %v9461_v50, %v9460_v51  ;;  %v5858_v54 = vadd.f32 %v9464_v3, %v9463_v5  ;;  %v5863_v31 = vadd.f32 %v9466_v26, %v9217_v48  ;;  %v9472_v51 = vld [vmem:[#allocation158_spill] sm:$0xff]  ;;  %v9474_v5 = vld [vmem:[#allocation169_spill] sm:$0xff]  ;;  %v9477_v26 = vld [vmem:[#allocation164_spill] sm:$0xff] }
  0xd3   : > { %v5868_v45 = vadd.f32 %v9469_v6, %v9468_v0  ;;  %v5873_v50 = vadd.f32 %v9470_v53, %v9219_v56  ;;  %v9479_v0 = vrot.slane %v9223_v7, 9  ;;  %v9481_v53 = vld [vmem:[#allocation170_spill] sm:$0xff] }
  0xd4   : > { %9462 = vst [vmem:[#allocation137_spill] sm:$0xff] %v5853_v23  ;;  %9465 = vst [vmem:[#allocation126_spill] sm:$0xff] %v5858_v54  ;;  %v9473_v23 = vrot.slane %v9472_v51, 9  ;;  %v9475_v54 = vrot.slane %v9474_v5, 9 }
  0xd5   : > { %9467 = vst [vmem:[#allocation138_spill] sm:$0xff] %v5863_v31  ;;  %9471 = vst [vmem:[#allocation128_spill] sm:$0xff] %v5873_v50  ;;  %v9478_v31 = vrot.slane %v9477_v26, 9  ;;  %v5893_v56 = vadd.f32 %v9479_v0, %v9223_v7  ;;  %v9482_v50 = vrot.slane %v9481_v53, 9  ;;  %v9489_v0 = vld [vmem:[#allocation172_spill] sm:$0xff] }
  0xd6   : > { %v5878_v3 = vadd.f32 %v9473_v23, %v9472_v51  ;;  %v5883_v48 = vadd.f32 %v9475_v54, %v9474_v5  ;;  %v9483_v51 = vrot.slane %v9224_v2, 9  ;;  %v9485_v5 = vld [vmem:[#allocation171_spill] sm:$0xff] }
  0xd7   : > { %v5888_v6 = vadd.f32 %v9478_v31, %v9477_v26  ;;  %9480 = vst [vmem:[#allocation129_spill] sm:$0xff] %v5893_v56  ;;  %v5898_v23 = vadd.f32 %v9482_v50, %v9481_v53  ;;  %v9487_v26 = vrot.slane %v9226_v14, 9  ;;  %v9490_v56 = vrot.slane %v9489_v0, 9 }
  0xd8   : > { %9476 = vst [vmem:[#allocation140_spill] sm:$0xff] %v5883_v48  ;;  %v5903_v54 = vadd.f32 %v9483_v51, %v9224_v2  ;;  %v9486_v48 = vrot.slane %v9485_v5, 9  ;;  %v9491_v53 = vrot.slane %v9227_v36, 9  ;;  %v9493_v51 = vld [vmem:[#allocation187_spill] sm:$0xff] }
  0xd9   : > { %v5913_v7 = vadd.f32 %v9487_v26, %v9226_v14  ;;  %v5918_v50 = vadd.f32 %v9490_v56, %v9489_v0  ;;  %v9496_v26 = vld [vmem:[#allocation190_spill] sm:$0xff]  ;;  %v9498_v0 = vrot.slane %v9230_v12, 9 }
  0xda   : > { %9484 = vst [vmem:[#allocation141_spill] sm:$0xff] %v5903_v54  ;;  %v5908_v31 = vadd.f32 %v9486_v48, %v9485_v5  ;;  %v5923_v2 = vadd.f32 %v9491_v53, %v9227_v36  ;;  %v9494_v54 = vrot.slane %v9493_v51, 9  ;;  %v9495_v5 = vrot.slane %v9228_v61, 9  ;;  %v9499_v53 = vld [vmem:[#allocation195_spill] sm:$0xff] }
  0xdb   : > { %9488 = vst [vmem:[#allocation131_spill] sm:$0xff] %v5913_v7  ;;  %v9497_v7 = vrot.slane %v9496_v26, 9  ;;  %v5943_v36 = vadd.f32 %v9498_v0, %v9230_v12  ;;  %v9504_v0 = vrot.slane %v5142_v4, 9 }
  0xdc   : > { %9492 = vst [vmem:[#allocation143_spill] sm:$0xff] %v5923_v2  ;;  %v5928_v48 = vadd.f32 %v9494_v54, %v9493_v51  ;;  %v5933_v14 = vadd.f32 %v9495_v5, %v9228_v61  ;;  %v9500_v2 = vrot.slane %v9499_v53, 9  ;;  %v9501_v51 = vrot.slane %v9231_v8, 9 }
  0xdd   : > { %v5938_v56 = vadd.f32 %v9497_v7, %v9496_v26  ;;  %v9502_v5 = vrot.slane %v5134_v10, 9  ;;  %v9503_v26 = vrot.slane %v9232_v52, 9 }
  0xde   : > { %v5948_v54 = vadd.f32 %v9500_v2, %v9499_v53  ;;  %v5953_v61 = vadd.f32 %v9501_v51, %v9231_v8  ;;  %v5968_v2 = vadd.f32 %v9504_v0, %v5142_v4  ;;  %v9505_v53 = vrot.slane %v9233_v11, 9 }
  0xdf   : > { %v5958_v7 = vadd.f32 %v9502_v5, %v5134_v10  ;;  %v5963_v12 = vadd.f32 %v9503_v26, %v9232_v52  ;;  %v9506_v51 = vrot.slane %v5145_v34, 9  ;;  %v9507_v5 = vrot.slane %v9234_v29, 9 }
  0xe0   : > { %v5973_v8 = vadd.f32 %v9505_v53, %v9233_v11  ;;  %v9509_v26 = vrot.slane %v5152_v35, 9  ;;  %v9510_v0 = vrot.slane %v9235_v55, 9  ;;  %v9512_v53 = vrot.slane %v5155_v47, 9 }
  0xe1   : > { %v5978_v10 = vadd.f32 %v9506_v51, %v5145_v34  ;;  %v5983_v52 = vadd.f32 %v9507_v5, %v9234_v29  ;;  %v9513_v51 = vrot.slane %v9236_v46, 9  ;;  %v9514_v5 = vld [vmem:[#allocation3_spill] sm:$0xff] }
  0xe2   : > { %v5988_v4 = vadd.f32 %v9509_v26, %v5152_v35  ;;  %v5993_v11 = vadd.f32 %v9510_v0, %v9235_v55  ;;  %v5998_v34 = vadd.f32 %v9512_v53, %v5155_v47  ;;  %v9516_v35 = vld [vmem:[#allocation7_spill] sm:$0xff]  ;;  %v9518_v55 = vld [vmem:[#allocation5_spill] sm:$0xff]  ;;  %v9522_v53 = vld [vmem:[#allocation4_spill] sm:$0xff] }
  0xe3   : > { %9508 = vst [vmem:[#allocation132_spill] sm:$0xff] %v5983_v52  ;;  %v6003_v29 = vadd.f32 %v9513_v51, %v9236_v46  ;;  %v6007_v52 = vadd.f32 %v5368_v49, %v9514_v5  ;;  %v6011_v26 = vadd.f32 %v5373_v60, %v9516_v35  ;;  %v6015_v0 = vadd.f32 %v5378_v44, %v9518_v55  ;;  %v9524_v51 = vld [vmem:[#allocation9_spill] sm:$0xff] }
  0xe4   : > { %9511 = vst [vmem:[#allocation144_spill] sm:$0xff] %v5993_v11  ;;  %v9520_v11 = vld [vmem:[#allocation11_spill] sm:$0xff]  ;;  %v6023_v46 = vadd.f32 %v5388_v13, %v9522_v53  ;;  %v6027_v49 = vadd.f32 %v5393_v28, %v9524_v51 }
  0xe5   : > { %9515 = vst [vmem:[#allocation139_spill] sm:$0xff] %v6007_v52  ;;  %9517 = vst [vmem:[#allocation154_spill] sm:$0xff] %v6011_v26  ;;  %v6019_v47 = vadd.f32 %v5383_v1, %v9520_v11  ;;  %v9526_v52 = vld [vmem:[#allocation8_spill] sm:$0xff]  ;;  %v9528_v26 = vld [vmem:[#allocation15_spill] sm:$0xff] }
  0xe6   : > { %9519 = vst [vmem:[#allocation166_spill] sm:$0xff] %v6015_v0  ;;  %9523 = vst [vmem:[#allocation157_spill] sm:$0xff] %v6023_v46  ;;  %v6031_v60 = vadd.f32 %v5398_v20, %v9526_v52  ;;  %v6035_v44 = vadd.f32 %v5403_v37, %v9528_v26  ;;  %v9530_v0 = vld [vmem:[#allocation6_spill] sm:$0xff]  ;;  %v9534_v46 = vld [vmem:[#allocation12_spill] sm:$0xff] }
  0xe7   : > { %9521 = vst [vmem:[#allocation155_spill] sm:$0xff] %v6019_v47  ;;  %9525 = vst [vmem:[#allocation158_spill] sm:$0xff] %v6027_v49  ;;  %v6039_v1 = vadd.f32 %v5408_v17, %v9530_v0  ;;  %v9532_v47 = vld [vmem:[#allocation14_spill] sm:$0xff]  ;;  %v6047_v28 = vadd.f32 %v5418_v21, %v9534_v46  ;;  %v9536_v49 = vld [vmem:[#allocation16_spill] sm:$0xff] }
  0xe8   : > { %9527 = vst [vmem:[#allocation169_spill] sm:$0xff] %v6031_v60  ;;  %9529 = vst [vmem:[#allocation164_spill] sm:$0xff] %v6035_v44  ;;  %v6043_v13 = vadd.f32 %v5413_v32, %v9532_v47  ;;  %v6051_v20 = vadd.f32 %v5423_v38, %v9536_v49  ;;  %v9538_v60 = vld [vmem:[#allocation10_spill] sm:$0xff]  ;;  %v9540_v44 = vld [vmem:[#allocation17_spill] sm:$0xff] }
  0xe9   : > { %9531 = vst [vmem:[#allocation170_spill] sm:$0xff] %v6039_v1  ;;  %9535 = vst [vmem:[#allocation172_spill] sm:$0xff] %v6047_v28  ;;  %v6055_v37 = vadd.f32 %v5428_v18, %v9538_v60  ;;  %v6059_v17 = vadd.f32 %v5433_v33, %v9540_v44  ;;  %v9542_v1 = vld [vmem:[#allocation13_spill] sm:$0xff]  ;;  %v9546_v28 = vld [vmem:[#allocation19_spill] sm:$0xff] }
  0xea   : > { %9533 = vst [vmem:[#allocation171_spill] sm:$0xff] %v6043_v13  ;;  %9537 = vst [vmem:[#allocation187_spill] sm:$0xff] %v6051_v20  ;;  %v6063_v32 = vadd.f32 %v5438_v24, %v9542_v1  ;;  %v9544_v13 = vld [vmem:[#allocation18_spill] sm:$0xff]  ;;  %v6071_v38 = vadd.f32 %v5448_v22, %v9546_v28  ;;  %v9911_v28 = vld [vmem:[#allocation163_spill] sm:$0xff] }
  0xeb   : > { %9539 = vst [vmem:[#allocation190_spill] sm:$0xff] %v6055_v37  ;;  %9541 = vst [vmem:[#allocation195_spill] sm:$0xff] %v6059_v17  ;;  %v6067_v21 = vadd.f32 %v5443_v42, %v9544_v13  ;;  %v9548_v20 = vld [vmem:[#allocation26_spill] sm:$0xff]  ;;  %v9550_v37 = vld [vmem:[#allocation20_spill] sm:$0xff] }
  0xec   : > { %9543 = vst [vmem:[#allocation3_spill] sm:$0xff] %v6063_v32  ;;  %9547 = vst [vmem:[#allocation5_spill] sm:$0xff] %v6071_v38  ;;  %v6075_v18 = vadd.f32 %v5453_v39, %v9548_v20  ;;  %v6079_v33 = vadd.f32 %v5458_v25, %v9550_v37  ;;  %v9552_v17 = vld [vmem:[#allocation29_spill] sm:$0xff]  ;;  %v9558_v38 = vld [vmem:[#allocation22_spill] sm:$0xff] }
  0xed   : > { %9545 = vst [vmem:[#allocation7_spill] sm:$0xff] %v6067_v21  ;;  %v6083_v24 = vadd.f32 %v5463_v43, %v9552_v17  ;;  %v9554_v32 = vld [vmem:[#allocation21_spill] sm:$0xff]  ;;  %v9556_v21 = vld [vmem:[#allocation32_spill] sm:$0xff]  ;;  %v6095_v39 = vadd.f32 %v5478_v58, %v9558_v38  ;;  %v9894_v37 = vld [vmem:[#allocation130_spill] sm:$0xff] }
  0xee   : > { %9549 = vst [vmem:[#allocation11_spill] sm:$0xff] %v6075_v18  ;;  %9551 = vst [vmem:[#allocation4_spill] sm:$0xff] %v6079_v33  ;;  %v6087_v42 = vadd.f32 %v5468_v57, %v9554_v32  ;;  %v6091_v22 = vadd.f32 %v5473_v15, %v9556_v21  ;;  %v9560_v18 = vld [vmem:[#allocation33_spill] sm:$0xff]  ;;  %v9562_v33 = vld [vmem:[#allocation23_spill] sm:$0xff] }
  0xef   : > { %9553 = vst [vmem:[#allocation9_spill] sm:$0xff] %v6083_v24  ;;  %9559 = vst [vmem:[#allocation6_spill] sm:$0xff] %v6095_v39  ;;  %v6099_v25 = vadd.f32 %v5483_v16, %v9560_v18  ;;  %v6103_v43 = vadd.f32 %v5488_v59, %v9562_v33  ;;  %v9564_v24 = vld [vmem:[#allocation34_spill] sm:$0xff]  ;;  %v9570_v39 = vld [vmem:[#allocation25_spill] sm:$0xff] }
  0xf0   : > { %9555 = vst [vmem:[#allocation8_spill] sm:$0xff] %v6087_v42  ;;  %9557 = vst [vmem:[#allocation15_spill] sm:$0xff] %v6091_v22  ;;  %v6107_v57 = vadd.f32 %v5493_v19, %v9564_v24  ;;  %v9566_v42 = vld [vmem:[#allocation24_spill] sm:$0xff]  ;;  %v9568_v22 = vld [vmem:[#allocation35_spill] sm:$0xff]  ;;  %v6119_v16 = vadd.f32 %v5508_v63, %v9570_v39 }
  0xf1   : > { %9561 = vst [vmem:[#allocation14_spill] sm:$0xff] %v6099_v25  ;;  %9563 = vst [vmem:[#allocation12_spill] sm:$0xff] %v6103_v43  ;;  %v6111_v15 = vadd.f32 %v5498_v62, %v9566_v42  ;;  %v6115_v58 = vadd.f32 %v5503_v27, %v9568_v22  ;;  %v9572_v25 = vld [vmem:[#allocation36_spill] sm:$0xff]  ;;  %v9574_v43 = vld [vmem:[#allocation27_spill] sm:$0xff] }
  0xf2   : > { %9565 = vst [vmem:[#allocation16_spill] sm:$0xff] %v6107_v57  ;;  %9571 = vst [vmem:[#allocation220_spill] sm:$0xff] %v6119_v16  ;;  %v6123_v59 = vadd.f32 %v5513_v30, %v9572_v25  ;;  %v9575_v33 = vld [vmem:[#allocation149_spill] sm:$0xff]  ;;  %v9577_v57 = vld [vmem:[#allocation38_spill] sm:$0xff] }
  0xf3   : > { %9567 = vst [vmem:[#allocation10_spill] sm:$0xff] %v6111_v15  ;;  %9569 = vst [vmem:[#allocation17_spill] sm:$0xff] %v6115_v58  ;;  %v6127_v19 = vadd.f32 %v9575_v33, %v9574_v43  ;;  %v9578_v24 = vld [vmem:[#allocation167_spill] sm:$0xff]  ;;  %v9580_v15 = vld [vmem:[#allocation45_spill] sm:$0xff] }
  0xf4   : > { %9573 = vst [vmem:[#allocation221_spill] sm:$0xff] %v6123_v59  ;;  %v6131_v62 = vadd.f32 %v9578_v24, %v9577_v57  ;;  %v9581_v42 = vld [vmem:[#allocation168_spill] sm:$0xff]  ;;  %v9583_v58 = vld [vmem:[#allocation57_spill] sm:$0xff]  ;;  %v9584_v22 = vld [vmem:[#allocation175_spill] sm:$0xff] }
  0xf5   : > { %9576 = vst [vmem:[#allocation149_spill] sm:$0xff] %v6127_v19  ;;  %v6135_v27 = vadd.f32 %v9581_v42, %v9580_v15  ;;  %v6139_v63 = vadd.f32 %v9584_v22, %v9583_v58  ;;  %v9586_v16 = vld [vmem:[#allocation46_spill] sm:$0xff]  ;;  %v9587_v39 = vld [vmem:[#allocation181_spill] sm:$0xff]  ;;  %v9592_v19 = vld [vmem:[#allocation48_spill] sm:$0xff] }
  0xf6   : > { %9579 = vst [vmem:[#allocation167_spill] sm:$0xff] %v6131_v62  ;;  %v6143_v30 = vadd.f32 %v9587_v39, %v9586_v16  ;;  %v9589_v59 = vld [vmem:[#allocation58_spill] sm:$0xff]  ;;  %v9593_v43 = vld [vmem:[#allocation184_spill] sm:$0xff]  ;;  %v9599_v15 = vld [vmem:[#allocation197_spill] sm:$0xff] }
  0xf7   : > { %9582 = vst [vmem:[#allocation168_spill] sm:$0xff] %v6135_v27  ;;  %9585 = vst [vmem:[#allocation175_spill] sm:$0xff] %v6139_v63  ;;  %v9590_v25 = vld [vmem:[#allocation182_spill] sm:$0xff]  ;;  %v6151_v24 = vadd.f32 %v9593_v43, %v9592_v19  ;;  %v9595_v62 = vld [vmem:[#allocation60_spill] sm:$0xff] }
  0xf8   : > { %9588 = vst [vmem:[#allocation181_spill] sm:$0xff] %v6143_v30  ;;  %v6147_v33 = vadd.f32 %v9590_v25, %v9589_v59  ;;  %v9596_v57 = vld [vmem:[#allocation196_spill] sm:$0xff]  ;;  %v9598_v27 = vld [vmem:[#allocation49_spill] sm:$0xff]  ;;  %v9602_v58 = vld [vmem:[#allocation202_spill] sm:$0xff] }
  0xf9   : > { %9594 = vst [vmem:[#allocation184_spill] sm:$0xff] %v6151_v24  ;;  %v6155_v42 = vadd.f32 %v9596_v57, %v9595_v62  ;;  %v6159_v22 = vadd.f32 %v9599_v15, %v9598_v27  ;;  %v9601_v63 = vld [vmem:[#allocation61_spill] sm:$0xff]  ;;  %v9604_v30 = vld [vmem:[#allocation50_spill] sm:$0xff]  ;;  %v9605_v16 = vld [vmem:[#allocation203_spill] sm:$0xff] }
  0xfa   : > { %9591 = vst [vmem:[#allocation182_spill] sm:$0xff] %v6147_v33  ;;  %v6163_v39 = vadd.f32 %v9602_v58, %v9601_v63  ;;  %v6167_v25 = vadd.f32 %v9605_v16, %v9604_v30  ;;  %v9607_v33 = vld [vmem:[#allocation63_spill] sm:$0xff]  ;;  %v9608_v59 = vld [vmem:[#allocation205_spill] sm:$0xff]  ;;  %v9611_v19 = vld [vmem:[#allocation206_spill] sm:$0xff] }
  0xfb   : > { %9597 = vst [vmem:[#allocation196_spill] sm:$0xff] %v6155_v42  ;;  %9600 = vst [vmem:[#allocation197_spill] sm:$0xff] %v6159_v22  ;;  %v6171_v43 = vadd.f32 %v9608_v59, %v9607_v33  ;;  %v9610_v24 = vld [vmem:[#allocation51_spill] sm:$0xff]  ;;  %v9613_v42 = vld [vmem:[#allocation64_spill] sm:$0xff] }
  0xfc   : > { %9603 = vst [vmem:[#allocation202_spill] sm:$0xff] %v6163_v39  ;;  %9606 = vst [vmem:[#allocation203_spill] sm:$0xff] %v6167_v25  ;;  %v6175_v57 = vadd.f32 %v9611_v19, %v9610_v24  ;;  %v9614_v62 = vld [vmem:[#allocation209_spill] sm:$0xff]  ;;  %v9616_v22 = vld [vmem:[#allocation52_spill] sm:$0xff] }
  0xfd   : > { %9609 = vst [vmem:[#allocation205_spill] sm:$0xff] %v6171_v43  ;;  %v6179_v15 = vadd.f32 %v9614_v62, %v9613_v42  ;;  %v9617_v27 = vld [vmem:[#allocation210_spill] sm:$0xff]  ;;  %v9619_v39 = vld [vmem:[#allocation65_spill] sm:$0xff]  ;;  %v9620_v63 = vld [vmem:[#allocation28_spill] sm:$0xff] }
  0xfe   : > { %9612 = vst [vmem:[#allocation206_spill] sm:$0xff] %v6175_v57  ;;  %v6183_v58 = vadd.f32 %v9617_v27, %v9616_v22  ;;  %v6187_v16 = vadd.f32 %v9620_v63, %v9619_v39  ;;  %v9622_v25 = vld [vmem:[#allocation55_spill] sm:$0xff]  ;;  %v9625_v43 = vld [vmem:[#allocation66_spill] sm:$0xff]  ;;  %v9629_v24 = vld [vmem:[#allocation40_spill] sm:$0xff] }
  0xff   : > { %9615 = vst [vmem:[#allocation209_spill] sm:$0xff] %v6179_v15  ;;  %v9623_v30 = vld [vmem:[#allocation39_spill] sm:$0xff]  ;;  %v9626_v33 = vld [vmem:[#allocation30_spill] sm:$0xff]  ;;  %v9635_v22 = vld [vmem:[#allocation41_spill] sm:$0xff] }
 0x100   : > { %9618 = vst [vmem:[#allocation210_spill] sm:$0xff] %v6183_v58  ;;  %9621 = vst [vmem:[#allocation28_spill] sm:$0xff] %v6187_v16  ;;  %v6191_v59 = vadd.f32 %v9623_v30, %v9622_v25  ;;  %v6195_v19 = vadd.f32 %v9626_v33, %v9625_v43  ;;  %v9628_v57 = vld [vmem:[#allocation75_spill] sm:$0xff]  ;;  %v9634_v58 = vld [vmem:[#allocation76_spill] sm:$0xff] }
 0x101   : > { %v6199_v62 = vadd.f32 %v9629_v24, %v9628_v57  ;;  %v9631_v15 = vld [vmem:[#allocation87_spill] sm:$0xff]  ;;  %v6207_v63 = vadd.f32 %v9635_v22, %v9634_v58  ;;  %v9637_v16 = vld [vmem:[#allocation88_spill] sm:$0xff]  ;;  %v9638_v39 = vld [vmem:[#allocation37_spill] sm:$0xff] }
 0x102   : > { %9624 = vst [vmem:[#allocation39_spill] sm:$0xff] %v6191_v59  ;;  %9627 = vst [vmem:[#allocation30_spill] sm:$0xff] %v6195_v19  ;;  %v9632_v42 = vld [vmem:[#allocation31_spill] sm:$0xff]  ;;  %v6211_v30 = vadd.f32 %v9638_v39, %v9637_v16  ;;  %v9640_v59 = vld [vmem:[#allocation77_spill] sm:$0xff] }
 0x103   : > { %9630 = vst [vmem:[#allocation40_spill] sm:$0xff] %v6199_v62  ;;  %v6203_v27 = vadd.f32 %v9632_v42, %v9631_v15  ;;  %9636 = vst [vmem:[#allocation41_spill] sm:$0xff] %v6207_v63  ;;  %v9641_v25 = vld [vmem:[#allocation47_spill] sm:$0xff]  ;;  %v9643_v19 = vld [vmem:[#allocation89_spill] sm:$0xff] }
 0x104   : > { %9639 = vst [vmem:[#allocation37_spill] sm:$0xff] %v6211_v30  ;;  %v6215_v33 = vadd.f32 %v9641_v25, %v9640_v59  ;;  %v9644_v43 = vld [vmem:[#allocation42_spill] sm:$0xff]  ;;  %v9647_v57 = vld [vmem:[#allocation53_spill] sm:$0xff]  ;;  %v9650_v15 = vld [vmem:[#allocation43_spill] sm:$0xff] }
 0x105   : > { %9633 = vst [vmem:[#allocation31_spill] sm:$0xff] %v6203_v27  ;;  %v6219_v24 = vadd.f32 %v9644_v43, %v9643_v19  ;;  %v9646_v62 = vld [vmem:[#allocation78_spill] sm:$0xff]  ;;  %v9652_v63 = vld [vmem:[#allocation81_spill] sm:$0xff]  ;;  %v9655_v30 = vld [vmem:[#allocation92_spill] sm:$0xff] }
 0x106   : > { %9642 = vst [vmem:[#allocation47_spill] sm:$0xff] %v6215_v33  ;;  %v6223_v42 = vadd.f32 %v9647_v57, %v9646_v62  ;;  %v9649_v27 = vld [vmem:[#allocation90_spill] sm:$0xff]  ;;  %v9656_v16 = vld [vmem:[#allocation44_spill] sm:$0xff]  ;;  %v9662_v19 = vld [vmem:[#allocation59_spill] sm:$0xff] }
 0x107   : > { %9645 = vst [vmem:[#allocation42_spill] sm:$0xff] %v6219_v24  ;;  %v6227_v22 = vadd.f32 %v9650_v15, %v9649_v27  ;;  %v9653_v58 = vld [vmem:[#allocation54_spill] sm:$0xff]  ;;  %v6235_v25 = vadd.f32 %v9656_v16, %v9655_v30  ;;  %v9658_v33 = vld [vmem:[#allocation84_spill] sm:$0xff]  ;;  %v9661_v24 = vld [vmem:[#allocation95_spill] sm:$0xff] }
 0x108   : > { %9648 = vst [vmem:[#allocation53_spill] sm:$0xff] %v6223_v42  ;;  %v6231_v39 = vadd.f32 %v9653_v58, %v9652_v63  ;;  %v9659_v59 = vld [vmem:[#allocation56_spill] sm:$0xff]  ;;  %v6243_v57 = vadd.f32 %v9662_v19, %v9661_v24  ;;  %v9664_v42 = vld [vmem:[#allocation91_spill] sm:$0xff]  ;;  %v9665_v62 = vld [vmem:[#allocation69_spill] sm:$0xff] }
 0x109   : > { %9651 = vst [vmem:[#allocation43_spill] sm:$0xff] %v6227_v22  ;;  %9657 = vst [vmem:[#allocation44_spill] sm:$0xff] %v6235_v25  ;;  %v6239_v43 = vadd.f32 %v9659_v59, %v9658_v33  ;;  %v6247_v15 = vadd.f32 %v9665_v62, %v9664_v42  ;;  %v9667_v22 = vld [vmem:[#allocation101_spill] sm:$0xff]  ;;  %v9668_v27 = vld [vmem:[#allocation62_spill] sm:$0xff] }
 0x10a   : > { %9654 = vst [vmem:[#allocation54_spill] sm:$0xff] %v6231_v39  ;;  %9663 = vst [vmem:[#allocation59_spill] sm:$0xff] %v6243_v57  ;;  %v6251_v58 = vadd.f32 %v9668_v27, %v9667_v22  ;;  %v9670_v39 = vld [vmem:[#allocation93_spill] sm:$0xff]  ;;  %v9671_v63 = vld [vmem:[#allocation72_spill] sm:$0xff] }
 0x10b   : > { %9660 = vst [vmem:[#allocation56_spill] sm:$0xff] %v6239_v43  ;;  %9666 = vst [vmem:[#allocation69_spill] sm:$0xff] %v6247_v15  ;;  %v6255_v16 = vadd.f32 %v9671_v63, %v9670_v39  ;;  %v9673_v25 = vld [vmem:[#allocation104_spill] sm:$0xff]  ;;  %v9674_v30 = vld [vmem:[#allocation67_spill] sm:$0xff] }
 0x10c   : > { %9669 = vst [vmem:[#allocation62_spill] sm:$0xff] %v6251_v58  ;;  %v6259_v59 = vadd.f32 %v9674_v30, %v9673_v25  ;;  %v9676_v43 = vld [vmem:[#allocation106_spill] sm:$0xff]  ;;  %v9677_v33 = vld [vmem:[#allocation79_spill] sm:$0xff]  ;;  %v9679_v57 = vld [vmem:[#allocation117_spill] sm:$0xff] }
 0x10d   : > { %9672 = vst [vmem:[#allocation72_spill] sm:$0xff] %v6255_v16  ;;  %v6263_v19 = vadd.f32 %v9677_v33, %v9676_v43  ;;  %v9680_v24 = vld [vmem:[#allocation68_spill] sm:$0xff]  ;;  %v9682_v15 = vld [vmem:[#allocation107_spill] sm:$0xff]  ;;  %v9685_v58 = vld [vmem:[#allocation118_spill] sm:$0xff] }
 0x10e   : > { %9675 = vst [vmem:[#allocation67_spill] sm:$0xff] %v6259_v59  ;;  %v6267_v62 = vadd.f32 %v9680_v24, %v9679_v57  ;;  %v9683_v42 = vld [vmem:[#allocation80_spill] sm:$0xff]  ;;  %v9686_v22 = vld [vmem:[#allocation70_spill] sm:$0xff]  ;;  %v9692_v25 = vld [vmem:[#allocation71_spill] sm:$0xff] }
 0x10f   : > { %9678 = vst [vmem:[#allocation79_spill] sm:$0xff] %v6263_v19  ;;  %v6271_v27 = vadd.f32 %v9683_v42, %v9682_v15  ;;  %v6275_v63 = vadd.f32 %v9686_v22, %v9685_v58  ;;  %v9688_v16 = vld [vmem:[#allocation110_spill] sm:$0xff]  ;;  %v9691_v59 = vld [vmem:[#allocation120_spill] sm:$0xff]  ;;  %v9695_v43 = vld [vmem:[#allocation83_spill] sm:$0xff] }
 0x110   : > { %9681 = vst [vmem:[#allocation68_spill] sm:$0xff] %v6267_v62  ;;  %v9689_v39 = vld [vmem:[#allocation82_spill] sm:$0xff]  ;;  %v6283_v33 = vadd.f32 %v9692_v25, %v9691_v59  ;;  %v9694_v19 = vld [vmem:[#allocation116_spill] sm:$0xff]  ;;  %v9697_v62 = vld [vmem:[#allocation127_spill] sm:$0xff] }
 0x111   : > { %9684 = vst [vmem:[#allocation80_spill] sm:$0xff] %v6271_v27  ;;  %9687 = vst [vmem:[#allocation70_spill] sm:$0xff] %v6275_v63  ;;  %v6279_v30 = vadd.f32 %v9689_v39, %v9688_v16  ;;  %v6287_v24 = vadd.f32 %v9695_v43, %v9694_v19  ;;  %v9698_v57 = vld [vmem:[#allocation73_spill] sm:$0xff]  ;;  %v9700_v27 = vld [vmem:[#allocation119_spill] sm:$0xff] }
 0x112   : > { %9693 = vst [vmem:[#allocation71_spill] sm:$0xff] %v6283_v33  ;;  %v6291_v42 = vadd.f32 %v9698_v57, %v9697_v62  ;;  %v9701_v15 = vld [vmem:[#allocation85_spill] sm:$0xff]  ;;  %v9703_v63 = vld [vmem:[#allocation130_spill] sm:$0xff]  ;;  %v9716_v62 = vld [vmem:[#allocation96_spill] sm:$0xff] }
 0x113   : > { %9690 = vst [vmem:[#allocation82_spill] sm:$0xff] %v6279_v30  ;;  %9696 = vst [vmem:[#allocation83_spill] sm:$0xff] %v6287_v24  ;;  %v6295_v22 = vadd.f32 %v9701_v15, %v9700_v27  ;;  %v9704_v58 = vld [vmem:[#allocation74_spill] sm:$0xff]  ;;  %v9706_v30 = vld [vmem:[#allocation121_spill] sm:$0xff] }
 0x114   : > { %9699 = vst [vmem:[#allocation73_spill] sm:$0xff] %v6291_v42  ;;  %v6299_v39 = vadd.f32 %v9704_v58, %v9703_v63  ;;  %v9707_v16 = vld [vmem:[#allocation86_spill] sm:$0xff]  ;;  %v9709_v33 = vld [vmem:[#allocation133_spill] sm:$0xff]  ;;  %v9719_v27 = vld [vmem:[#allocation108_spill] sm:$0xff] }
 0x115   : > { %9702 = vst [vmem:[#allocation85_spill] sm:$0xff] %v6295_v22  ;;  %v6303_v25 = vadd.f32 %v9707_v16, %v9706_v30  ;;  %v9710_v59 = vld [vmem:[#allocation94_spill] sm:$0xff]  ;;  %v9713_v19 = vld [vmem:[#allocation105_spill] sm:$0xff]  ;;  %v9718_v22 = vld [vmem:[#allocation123_spill] sm:$0xff] }
 0x116   : > { %9705 = vst [vmem:[#allocation74_spill] sm:$0xff] %v6299_v39  ;;  %v6307_v43 = vadd.f32 %v9710_v59, %v9709_v33  ;;  %v9712_v24 = vld [vmem:[#allocation122_spill] sm:$0xff]  ;;  %v6319_v58 = vadd.f32 %v9719_v27, %v9718_v22  ;;  %v9721_v39 = vld [vmem:[#allocation135_spill] sm:$0xff]  ;;  %v9722_v63 = vld [vmem:[#allocation97_spill] sm:$0xff] }
 0x117   : > { %9708 = vst [vmem:[#allocation86_spill] sm:$0xff] %v6303_v25  ;;  %v6311_v57 = vadd.f32 %v9713_v19, %v9712_v24  ;;  %v9715_v42 = vld [vmem:[#allocation134_spill] sm:$0xff]  ;;  %v6323_v16 = vadd.f32 %v9722_v63, %v9721_v39  ;;  %v9725_v30 = vld [vmem:[#allocation109_spill] sm:$0xff]  ;;  %v9731_v24 = vld [vmem:[#allocation111_spill] sm:$0xff] }
 0x118   : > { %9711 = vst [vmem:[#allocation94_spill] sm:$0xff] %v6307_v43  ;;  %v6315_v15 = vadd.f32 %v9716_v62, %v9715_v42  ;;  %9720 = vst [vmem:[#allocation108_spill] sm:$0xff] %v6319_v58  ;;  %v9724_v25 = vld [vmem:[#allocation142_spill] sm:$0xff]  ;;  %v9727_v43 = vld [vmem:[#allocation152_spill] sm:$0xff] }
 0x119   : > { %9714 = vst [vmem:[#allocation105_spill] sm:$0xff] %v6311_v57  ;;  %9723 = vst [vmem:[#allocation97_spill] sm:$0xff] %v6323_v16  ;;  %v6327_v59 = vadd.f32 %v9725_v30, %v9724_v25  ;;  %v9728_v33 = vld [vmem:[#allocation98_spill] sm:$0xff]  ;;  %v9730_v57 = vld [vmem:[#allocation145_spill] sm:$0xff] }
 0x11a   : > { %9717 = vst [vmem:[#allocation96_spill] sm:$0xff] %v6315_v15  ;;  %v6331_v19 = vadd.f32 %v9728_v33, %v9727_v43  ;;  %v6335_v62 = vadd.f32 %v9731_v24, %v9730_v57  ;;  %v9733_v15 = vld [vmem:[#allocation156_spill] sm:$0xff]  ;;  %v9734_v42 = vld [vmem:[#allocation99_spill] sm:$0xff]  ;;  %v9736_v58 = vld [vmem:[#allocation146_spill] sm:$0xff] }
 0x11b   : > { %9726 = vst [vmem:[#allocation109_spill] sm:$0xff] %v6327_v59  ;;  %v6339_v27 = vadd.f32 %v9734_v42, %v9733_v15  ;;  %v9737_v22 = vld [vmem:[#allocation112_spill] sm:$0xff]  ;;  %v9739_v16 = vld [vmem:[#allocation159_spill] sm:$0xff]  ;;  %v9743_v25 = vld [vmem:[#allocation113_spill] sm:$0xff] }
 0x11c   : > { %9729 = vst [vmem:[#allocation98_spill] sm:$0xff] %v6331_v19  ;;  %9732 = vst [vmem:[#allocation111_spill] sm:$0xff] %v6335_v62  ;;  %v6343_v63 = vadd.f32 %v9737_v22, %v9736_v58  ;;  %v9740_v39 = vld [vmem:[#allocation100_spill] sm:$0xff]  ;;  %v9742_v59 = vld [vmem:[#allocation147_spill] sm:$0xff] }
 0x11d   : > { %9735 = vst [vmem:[#allocation99_spill] sm:$0xff] %v6339_v27  ;;  %v6347_v30 = vadd.f32 %v9740_v39, %v9739_v16  ;;  %v6351_v33 = vadd.f32 %v9743_v25, %v9742_v59  ;;  %v9745_v19 = vld [vmem:[#allocation160_spill] sm:$0xff]  ;;  %v9746_v43 = vld [vmem:[#allocation102_spill] sm:$0xff]  ;;  %v9751_v27 = vld [vmem:[#allocation161_spill] sm:$0xff] }
 0x11e   : > { %9738 = vst [vmem:[#allocation112_spill] sm:$0xff] %v6343_v63  ;;  %v6355_v24 = vadd.f32 %v9746_v43, %v9745_v19  ;;  %v9748_v62 = vld [vmem:[#allocation148_spill] sm:$0xff]  ;;  %v9749_v57 = vld [vmem:[#allocation114_spill] sm:$0xff]  ;;  %v9752_v15 = vld [vmem:[#allocation103_spill] sm:$0xff] }
 0x11f   : > { %9741 = vst [vmem:[#allocation100_spill] sm:$0xff] %v6347_v30  ;;  %9744 = vst [vmem:[#allocation113_spill] sm:$0xff] %v6351_v33  ;;  %v6359_v42 = vadd.f32 %v9749_v57, %v9748_v62  ;;  %v6363_v22 = vadd.f32 %v9752_v15, %v9751_v27  ;;  %v9754_v63 = vld [vmem:[#allocation150_spill] sm:$0xff]  ;;  %v9757_v16 = vld [vmem:[#allocation115_spill] sm:$0xff] }
 0x120   : > { %9747 = vst [vmem:[#allocation102_spill] sm:$0xff] %v6355_v24  ;;  %v6367_v39 = vadd.f32 %v5818_v9, %v9754_v63  ;;  %v9756_v30 = vld [vmem:[#allocation162_spill] sm:$0xff]  ;;  %v9759_v33 = vld [vmem:[#allocation151_spill] sm:$0xff]  ;;  %v9760_v59 = vld [vmem:[#allocation124_spill] sm:$0xff] }
 0x121   : > { %9750 = vst [vmem:[#allocation114_spill] sm:$0xff] %v6359_v42  ;;  %9753 = vst [vmem:[#allocation103_spill] sm:$0xff] %v6363_v22  ;;  %v6371_v25 = vadd.f32 %v9757_v16, %v9756_v30  ;;  %v6375_v43 = vadd.f32 %v9760_v59, %v9759_v33  ;;  %v9762_v24 = vld [vmem:[#allocation163_spill] sm:$0xff]  ;;  %v9763_v19 = vld [vmem:[#allocation136_spill] sm:$0xff] }
 0x122   : > { %9755 = vst [vmem:[#allocation222_spill] sm:$0xff] %v6367_v39  ;;  %v6379_v57 = vadd.f32 %v9763_v19, %v9762_v24  ;;  %v9765_v42 = vld [vmem:[#allocation153_spill] sm:$0xff]  ;;  %v9776_v33 = vld [vmem:[#allocation126_spill] sm:$0xff]  ;;  %v9904_v20 = vld [vmem:[#allocation156_spill] sm:$0xff] }
 0x123   : > { %9758 = vst [vmem:[#allocation115_spill] sm:$0xff] %v6371_v25  ;;  %9761 = vst [vmem:[#allocation124_spill] sm:$0xff] %v6375_v43  ;;  %v6383_v15 = vadd.f32 %v5838_v40, %v9765_v42  ;;  %v9767_v22 = vld [vmem:[#allocation165_spill] sm:$0xff]  ;;  %v9775_v43 = vld [vmem:[#allocation174_spill] sm:$0xff] }
 0x124   : > { %9764 = vst [vmem:[#allocation136_spill] sm:$0xff] %v6379_v57  ;;  %v9768_v27 = vld [vmem:[#allocation125_spill] sm:$0xff]  ;;  %v6399_v19 = vadd.f32 %v9776_v33, %v9775_v43  ;;  %v9778_v57 = vld [vmem:[#allocation186_spill] sm:$0xff]  ;;  %v9905_v17 = vld [vmem:[#allocation159_spill] sm:$0xff] }
 0x125   : > { %9766 = vst [vmem:[#allocation223_spill] sm:$0xff] %v6383_v15  ;;  %v6387_v9 = vadd.f32 %v9768_v27, %v9767_v22  ;;  %v9770_v39 = vld [vmem:[#allocation173_spill] sm:$0xff]  ;;  %v9779_v24 = vld [vmem:[#allocation138_spill] sm:$0xff]  ;;  %v9781_v15 = vld [vmem:[#allocation176_spill] sm:$0xff] }
 0x126   : > { %v6391_v16 = vadd.f32 %v5848_v41, %v9770_v39  ;;  %v9772_v25 = vld [vmem:[#allocation185_spill] sm:$0xff]  ;;  %9777 = vst [vmem:[#allocation174_spill] sm:$0xff] %v6399_v19  ;;  %v6403_v40 = vadd.f32 %v9779_v24, %v9778_v57  ;;  %v6407_v27 = vadd.f32 %v5868_v45, %v9781_v15  ;;  %v9784_v22 = vld [vmem:[#allocation128_spill] sm:$0xff]  ;;  %v9791_v19 = vld [vmem:[#allocation178_spill] sm:$0xff] }
 0x127   : > { %9769 = vst [vmem:[#allocation125_spill] sm:$0xff] %v6387_v9  ;;  %v9773_v30 = vld [vmem:[#allocation137_spill] sm:$0xff]  ;;  %v9783_v9 = vld [vmem:[#allocation188_spill] sm:$0xff]  ;;  %v6423_v24 = vadd.f32 %v5888_v6, %v9791_v19  ;;  %v9898_v38 = vld [vmem:[#allocation134_spill] sm:$0xff] }
 0x128   : > { %9771 = vst [vmem:[#allocation173_spill] sm:$0xff] %v6391_v16  ;;  %v6395_v59 = vadd.f32 %v9773_v30, %v9772_v25  ;;  %9780 = vst [vmem:[#allocation126_spill] sm:$0xff] %v6403_v40  ;;  %v6411_v41 = vadd.f32 %v9784_v22, %v9783_v9  ;;  %v9786_v16 = vld [vmem:[#allocation177_spill] sm:$0xff]  ;;  %v9789_v25 = vld [vmem:[#allocation140_spill] sm:$0xff] }
 0x129   : > { %9782 = vst [vmem:[#allocation138_spill] sm:$0xff] %v6407_v27  ;;  %v6415_v30 = vadd.f32 %v5878_v3, %v9786_v16  ;;  %9792 = vst [vmem:[#allocation140_spill] sm:$0xff] %v6423_v24  ;;  %v9793_v40 = vld [vmem:[#allocation191_spill] sm:$0xff]  ;;  %v9794_v57 = vld [vmem:[#allocation129_spill] sm:$0xff] }
 0x12a   : > { %9774 = vst [vmem:[#allocation137_spill] sm:$0xff] %v6395_v59  ;;  %9785 = vst [vmem:[#allocation176_spill] sm:$0xff] %v6411_v41  ;;  %v9788_v59 = vld [vmem:[#allocation189_spill] sm:$0xff]  ;;  %v6427_v45 = vadd.f32 %v9794_v57, %v9793_v40  ;;  %v9796_v27 = vld [vmem:[#allocation179_spill] sm:$0xff] }
 0x12b   : > { %9787 = vst [vmem:[#allocation128_spill] sm:$0xff] %v6415_v30  ;;  %v6419_v33 = vadd.f32 %v9789_v25, %v9788_v59  ;;  %v6431_v22 = vadd.f32 %v5898_v23, %v9796_v27  ;;  %v9798_v41 = vld [vmem:[#allocation192_spill] sm:$0xff]  ;;  %v9799_v9 = vld [vmem:[#allocation141_spill] sm:$0xff]  ;;  %v9804_v59 = vld [vmem:[#allocation131_spill] sm:$0xff] }
 0x12c   : > { %9795 = vst [vmem:[#allocation178_spill] sm:$0xff] %v6427_v45  ;;  %v6435_v3 = vadd.f32 %v9799_v9, %v9798_v41  ;;  %v9801_v30 = vld [vmem:[#allocation180_spill] sm:$0xff]  ;;  %v9806_v24 = vld [vmem:[#allocation183_spill] sm:$0xff]  ;;  %v9808_v45 = vld [vmem:[#allocation194_spill] sm:$0xff] }
 0x12d   : > { %9790 = vst [vmem:[#allocation177_spill] sm:$0xff] %v6419_v33  ;;  %9797 = vst [vmem:[#allocation129_spill] sm:$0xff] %v6431_v22  ;;  %v6439_v25 = vadd.f32 %v5908_v31, %v9801_v30  ;;  %v9803_v33 = vld [vmem:[#allocation193_spill] sm:$0xff]  ;;  %v6447_v57 = vadd.f32 %v5918_v50, %v9806_v24  ;;  %v9809_v40 = vld [vmem:[#allocation143_spill] sm:$0xff] }
 0x12e   : > { %9800 = vst [vmem:[#allocation192_spill] sm:$0xff] %v6435_v3  ;;  %v6443_v6 = vadd.f32 %v9804_v59, %v9803_v33  ;;  %v6451_v23 = vadd.f32 %v9809_v40, %v9808_v45  ;;  %v9811_v22 = vld [vmem:[#allocation198_spill] sm:$0xff]  ;;  %v9813_v3 = vld [vmem:[#allocation211_spill] sm:$0xff]  ;;  %v9907_v21 = vld [vmem:[#allocation160_spill] sm:$0xff] }
 0x12f   : > { %9802 = vst [vmem:[#allocation141_spill] sm:$0xff] %v6439_v25  ;;  %9807 = vst [vmem:[#allocation131_spill] sm:$0xff] %v6447_v57  ;;  %v6455_v9 = vadd.f32 %v5928_v48, %v9811_v22  ;;  %v6459_v31 = vadd.f32 %v5933_v14, %v9813_v3  ;;  %v9815_v25 = vld [vmem:[#allocation199_spill] sm:$0xff]  ;;  %v9819_v57 = vld [vmem:[#allocation200_spill] sm:$0xff] }
 0x130   : > { %9805 = vst [vmem:[#allocation193_spill] sm:$0xff] %v6443_v6  ;;  %9810 = vst [vmem:[#allocation183_spill] sm:$0xff] %v6451_v23  ;;  %v6463_v59 = vadd.f32 %v5938_v56, %v9815_v25  ;;  %v9817_v6 = vld [vmem:[#allocation213_spill] sm:$0xff]  ;;  %v6471_v40 = vadd.f32 %v5948_v54, %v9819_v57  ;;  %v9821_v23 = vld [vmem:[#allocation214_spill] sm:$0xff] }
 0x131   : > { %9812 = vst [vmem:[#allocation194_spill] sm:$0xff] %v6455_v9  ;;  %9814 = vst [vmem:[#allocation143_spill] sm:$0xff] %v6459_v31  ;;  %v6467_v50 = vadd.f32 %v5943_v36, %v9817_v6  ;;  %v6475_v48 = vadd.f32 %v5953_v61, %v9821_v23  ;;  %v9823_v9 = vld [vmem:[#allocation201_spill] sm:$0xff]  ;;  %v9825_v31 = vld [vmem:[#allocation215_spill] sm:$0xff] }
 0x132   : > { %9816 = vst [vmem:[#allocation198_spill] sm:$0xff] %v6463_v59  ;;  %9820 = vst [vmem:[#allocation199_spill] sm:$0xff] %v6471_v40  ;;  %v6479_v14 = vadd.f32 %v5958_v7, %v9823_v9  ;;  %v6483_v56 = vadd.f32 %v5963_v12, %v9825_v31  ;;  %v9827_v59 = vld [vmem:[#allocation204_spill] sm:$0xff]  ;;  %v9831_v40 = vld [vmem:[#allocation207_spill] sm:$0xff] }
 0x133   : > { %9818 = vst [vmem:[#allocation211_spill] sm:$0xff] %v6467_v50  ;;  %9822 = vst [vmem:[#allocation213_spill] sm:$0xff] %v6475_v48  ;;  %v6487_v36 = vadd.f32 %v5968_v2, %v9827_v59  ;;  %v9829_v50 = vld [vmem:[#allocation216_spill] sm:$0xff]  ;;  %v6495_v61 = vadd.f32 %v5978_v10, %v9831_v40  ;;  %v9833_v48 = vld [vmem:[#allocation217_spill] sm:$0xff] }
 0x134   : > { %9824 = vst [vmem:[#allocation200_spill] sm:$0xff] %v6479_v14  ;;  %9826 = vst [vmem:[#allocation201_spill] sm:$0xff] %v6483_v56  ;;  %v6491_v54 = vadd.f32 %v5973_v8, %v9829_v50  ;;  %v9834_v23 = vld [vmem:[#allocation132_spill] sm:$0xff]  ;;  %v9838_v56 = vld [vmem:[#allocation218_spill] sm:$0xff] }
 0x135   : > { %9828 = vst [vmem:[#allocation204_spill] sm:$0xff] %v6487_v36  ;;  %9832 = vst [vmem:[#allocation207_spill] sm:$0xff] %v6495_v61  ;;  %v6499_v7 = vadd.f32 %v9834_v23, %v9833_v48  ;;  %v9836_v14 = vld [vmem:[#allocation208_spill] sm:$0xff]  ;;  %v9908_v18 = vld [vmem:[#allocation161_spill] sm:$0xff]  ;;  %v9923_v23 = vrot.slane %v9516_v35, 9  ;;  %v9931_v35 = vrot.slane %v9524_v51, 9 }
 0x136   : > { %9830 = vst [vmem:[#allocation224_spill] sm:$0xff] %v6491_v54  ;;  %v6503_v12 = vadd.f32 %v5988_v4, %v9836_v14  ;;  %v9839_v31 = vld [vmem:[#allocation144_spill] sm:$0xff]  ;;  %v9843_v54 = vld [vmem:[#allocation219_spill] sm:$0xff]  ;;  %v9909_v1 = vld [vmem:[#allocation162_spill] sm:$0xff]  ;;  %v9925_v4 = vrot.slane %v9518_v55, 9  ;;  %v9933_v55 = vrot.slane %v9526_v52, 9 }
 0x137   : > { %9835 = vst [vmem:[#allocation217_spill] sm:$0xff] %v6499_v7  ;;  %v6507_v2 = vadd.f32 %v9839_v31, %v9838_v56  ;;  %v9841_v36 = vld [vmem:[#allocation212_spill] sm:$0xff]  ;;  %v6515_v10 = vadd.f32 %v6003_v29, %v9843_v54  ;;  %v9912_v58 = vld [vmem:[#allocation165_spill] sm:$0xff]  ;;  %v9914_v62 = vld [vmem:[#allocation186_spill] sm:$0xff]  ;;  %v9939_v51 = vrot.slane %v9532_v47, 9  ;;  %v9942_v52 = vrot.slane %v9534_v46, 9 }
 0x138   : > { %9837 = vst [vmem:[#allocation132_spill] sm:$0xff] %v6503_v12  ;;  %v6511_v8 = vadd.f32 %v5998_v34, %v9841_v36  ;;  %v9913_v32 = vld [vmem:[#allocation185_spill] sm:$0xff]  ;;  %v9915_v63 = vld [vmem:[#allocation188_spill] sm:$0xff]  ;;  %v9917_v42 = vld [vmem:[#allocation191_spill] sm:$0xff]  ;;  %v9951_v47 = vrot.slane %v9540_v44, 9 }
 0x139   : > { %9840 = vst [vmem:[#allocation208_spill] sm:$0xff] %v6507_v2  ;;  %9844 = vst [vmem:[#allocation144_spill] sm:$0xff] %v6515_v10  ;;  %v9900_v10 = vld [vmem:[#allocation135_spill] sm:$0xff]  ;;  %v9916_v13 = vld [vmem:[#allocation189_spill] sm:$0xff]  ;;  %v9927_v2 = vrot.slane %v9520_v11, 9  ;;  %v9935_v11 = vrot.slane %v9528_v26, 9 }
 0x13a   : > { %9842 = vst [vmem:[#allocation218_spill] sm:$0xff] %v6511_v8  ;;  %v9919_v30 = vld [vmem:[#allocation215_spill] sm:$0xff]  ;;  %v9921_v8 = vrot.slane %v9514_v5, 9  ;;  %v9922_v61 = vld [vmem:[#allocation154_spill] sm:$0xff]  ;;  %v9928_v34 = vld [vmem:[#allocation157_spill] sm:$0xff]  ;;  %v9929_v5 = vrot.slane %v9522_v53, 9 }
 0x13b   : > { %v9920_v27 = vld [vmem:[#allocation139_spill] sm:$0xff]  ;;  %v6653_v50 = vadd.f32 %v9923_v23, %v9922_v61  ;;  %v9924_v7 = vld [vmem:[#allocation166_spill] sm:$0xff]  ;;  %v9932_v23 = vld [vmem:[#allocation169_spill] sm:$0xff]  ;;  %v9937_v53 = vrot.slane %v9530_v0, 9  ;;  %v9945_v26 = vrot.slane %v9536_v49, 9  ;;  %v9948_v0 = vrot.slane %v9538_v60, 9 }
 0x13c   : > { %v6648_v29 = vadd.f32 %v9921_v8, %v9920_v27  ;;  %v6658_v12 = vadd.f32 %v9925_v4, %v9924_v7  ;;  %v9926_v31 = vld [vmem:[#allocation155_spill] sm:$0xff]  ;;  %v6668_v27 = vadd.f32 %v9929_v5, %v9928_v34  ;;  %v9930_v8 = vld [vmem:[#allocation158_spill] sm:$0xff]  ;;  %v6678_v7 = vadd.f32 %v9933_v55, %v9932_v23  ;;  %v9934_v4 = vld [vmem:[#allocation164_spill] sm:$0xff] }
 0x13d   : > { %v6663_v36 = vadd.f32 %v9927_v2, %v9926_v31  ;;  %v6673_v61 = vadd.f32 %v9931_v35, %v9930_v8  ;;  %v6683_v2 = vadd.f32 %v9935_v11, %v9934_v4  ;;  %v9936_v31 = vld [vmem:[#allocation170_spill] sm:$0xff]  ;;  %v9938_v5 = vld [vmem:[#allocation171_spill] sm:$0xff]  ;;  %v9941_v35 = vld [vmem:[#allocation172_spill] sm:$0xff] }
 0x13e   : > { %v6688_v34 = vadd.f32 %v9937_v53, %v9936_v31  ;;  %v6693_v8 = vadd.f32 %v9939_v51, %v9938_v5  ;;  %v6698_v23 = vadd.f32 %v9942_v52, %v9941_v35  ;;  %v9944_v55 = vld [vmem:[#allocation187_spill] sm:$0xff]  ;;  %v9947_v11 = vld [vmem:[#allocation190_spill] sm:$0xff] }
 0x13f   : > { %v6703_v4 = vadd.f32 %v9945_v26, %v9944_v55  ;;  %v6708_v31 = vadd.f32 %v9948_v0, %v9947_v11  ;;  %v9950_v53 = vld [vmem:[#allocation195_spill] sm:$0xff]  ;;  %v9961_v26 = vld [vmem:[#allocation5_spill] sm:$0xff] }
 0x140   : > { %9940 = vst [vmem:[#allocation219_spill] sm:$0xff] %v6693_v8  ;;  %9943 = vst [vmem:[#allocation130_spill] sm:$0xff] %v6698_v23  ;;  %v6713_v5 = vadd.f32 %v9951_v47, %v9950_v53  ;;  %v9953_v51 = vld [vmem:[#allocation3_spill] sm:$0xff]  ;;  %v9954_v8 = vld [vmem:[#allocation13_spill] sm:$0xff] }
 0x141   : > { %9946 = vst [vmem:[#allocation134_spill] sm:$0xff] %v6703_v4  ;;  %9949 = vst [vmem:[#allocation135_spill] sm:$0xff] %v6708_v31  ;;  %v9955_v46 = vrot.slane %v9954_v8, 9  ;;  %v9957_v52 = vld [vmem:[#allocation7_spill] sm:$0xff]  ;;  %v9958_v23 = vld [vmem:[#allocation18_spill] sm:$0xff] }
 0x142   : > { %9952 = vst [vmem:[#allocation156_spill] sm:$0xff] %v6713_v5  ;;  %v9959_v49 = vrot.slane %v9958_v23, 9  ;;  %v9962_v4 = vld [vmem:[#allocation19_spill] sm:$0xff]  ;;  %v9966_v31 = vld [vmem:[#allocation26_spill] sm:$0xff]  ;;  %v9969_v47 = vld [vmem:[#allocation4_spill] sm:$0xff] }
 0x143   : > { %v6718_v35 = vadd.f32 %v9955_v46, %v9953_v51  ;;  %v9963_v60 = vrot.slane %v9962_v4, 9  ;;  %v9965_v0 = vld [vmem:[#allocation11_spill] sm:$0xff]  ;;  %v9967_v44 = vrot.slane %v9966_v31, 9  ;;  %v9970_v5 = vld [vmem:[#allocation20_spill] sm:$0xff]  ;;  %v9973_v46 = vld [vmem:[#allocation9_spill] sm:$0xff] }
 0x144   : > { %v6723_v55 = vadd.f32 %v9959_v49, %v9957_v52  ;;  %v9971_v8 = vrot.slane %v9970_v5, 9  ;;  %v9977_v49 = vld [vmem:[#allocation8_spill] sm:$0xff] }
 0x145   : > { %9956 = vst [vmem:[#allocation159_spill] sm:$0xff] %v6718_v35  ;;  %v6728_v11 = vadd.f32 %v9963_v60, %v9961_v26  ;;  %v6733_v53 = vadd.f32 %v9967_v44, %v9965_v0  ;;  %v9974_v35 = vld [vmem:[#allocation29_spill] sm:$0xff]  ;;  %v9981_v60 = vld [vmem:[#allocation15_spill] sm:$0xff]  ;;  %v9985_v44 = vld [vmem:[#allocation6_spill] sm:$0xff] }
 0x146   : > { %9960 = vst [vmem:[#allocation160_spill] sm:$0xff] %v6723_v55  ;;  %v6738_v51 = vadd.f32 %v9971_v8, %v9969_v47  ;;  %v9975_v23 = vrot.slane %v9974_v35, 9  ;;  %v9978_v55 = vld [vmem:[#allocation21_spill] sm:$0xff]  ;;  %v9989_v8 = vld [vmem:[#allocation14_spill] sm:$0xff] }
 0x147   : > { %9964 = vst [vmem:[#allocation161_spill] sm:$0xff] %v6728_v11  ;;  %9968 = vst [vmem:[#allocation162_spill] sm:$0xff] %v6733_v53  ;;  %v9979_v4 = vrot.slane %v9978_v55, 9  ;;  %v9982_v11 = vld [vmem:[#allocation32_spill] sm:$0xff]  ;;  %v9986_v53 = vld [vmem:[#allocation22_spill] sm:$0xff] }
 0x148   : > { %9972 = vst [vmem:[#allocation163_spill] sm:$0xff] %v6738_v51  ;;  %v6743_v52 = vadd.f32 %v9975_v23, %v9973_v46  ;;  %v9983_v31 = vrot.slane %v9982_v11, 9  ;;  %v9987_v5 = vrot.slane %v9986_v53, 9  ;;  %v9990_v51 = vld [vmem:[#allocation33_spill] sm:$0xff]  ;;  %v9993_v23 = vld [vmem:[#allocation12_spill] sm:$0xff] }
 0x149   : > { %v6748_v26 = vadd.f32 %v9979_v4, %v9977_v49  ;;  %v9991_v35 = vrot.slane %v9990_v51, 9  ;;  %v9997_v4 = vld [vmem:[#allocation16_spill] sm:$0xff] }
 0x14a   : > { %9976 = vst [vmem:[#allocation165_spill] sm:$0xff] %v6743_v52  ;;  %v6753_v0 = vadd.f32 %v9983_v31, %v9981_v60  ;;  %v6758_v47 = vadd.f32 %v9987_v5, %v9985_v44  ;;  %v9994_v52 = vld [vmem:[#allocation23_spill] sm:$0xff]  ;;  %v10001_v31 = vld [vmem:[#allocation10_spill] sm:$0xff]  ;;  %v10005_v5 = vld [vmem:[#allocation17_spill] sm:$0xff] }
 0x14b   : > { %9980 = vst [vmem:[#allocation185_spill] sm:$0xff] %v6748_v26  ;;  %v6763_v46 = vadd.f32 %v9991_v35, %v9989_v8  ;;  %v9995_v55 = vrot.slane %v9994_v52, 9  ;;  %v9998_v26 = vld [vmem:[#allocation34_spill] sm:$0xff]  ;;  %v10009_v35 = vld [vmem:[#allocation220_spill] sm:$0xff] }
 0x14c   : > { %9984 = vst [vmem:[#allocation186_spill] sm:$0xff] %v6753_v0  ;;  %9988 = vst [vmem:[#allocation188_spill] sm:$0xff] %v6758_v47  ;;  %v9999_v11 = vrot.slane %v9998_v26, 9  ;;  %v10002_v0 = vld [vmem:[#allocation24_spill] sm:$0xff]  ;;  %v10006_v47 = vld [vmem:[#allocation35_spill] sm:$0xff] }
 0x14d   : > { %9992 = vst [vmem:[#allocation189_spill] sm:$0xff] %v6763_v46  ;;  %v6768_v49 = vadd.f32 %v9995_v55, %v9993_v23  ;;  %v10003_v53 = vrot.slane %v10002_v0, 9  ;;  %v10007_v51 = vrot.slane %v10006_v47, 9  ;;  %v10010_v46 = vld [vmem:[#allocation25_spill] sm:$0xff] }
 0x14e   : > { %v6773_v60 = vadd.f32 %v9999_v11, %v9997_v4  ;;  %v10011_v52 = vrot.slane %v10010_v46, 9  ;;  %v10013_v55 = vld [vmem:[#allocation221_spill] sm:$0xff] }
 0x14f   : > { %9996 = vst [vmem:[#allocation191_spill] sm:$0xff] %v6768_v49  ;;  %v6778_v44 = vadd.f32 %v10003_v53, %v10001_v31  ;;  %v6783_v8 = vadd.f32 %v10007_v51, %v10005_v5  ;;  %v10014_v49 = vld [vmem:[#allocation36_spill] sm:$0xff]  ;;  %v10017_v11 = vld [vmem:[#allocation149_spill] sm:$0xff]  ;;  %v10021_v53 = vld [vmem:[#allocation167_spill] sm:$0xff] }
 0x150   : > { %10000 = vst [vmem:[#allocation215_spill] sm:$0xff] %v6773_v60  ;;  %v6788_v23 = vadd.f32 %v10011_v52, %v10009_v35  ;;  %v10015_v26 = vrot.slane %v10014_v49, 9  ;;  %v10018_v60 = vld [vmem:[#allocation27_spill] sm:$0xff]  ;;  %v10025_v51 = vld [vmem:[#allocation168_spill] sm:$0xff] }
 0x151   : > { %10004 = vst [vmem:[#allocation139_spill] sm:$0xff] %v6778_v44  ;;  %10008 = vst [vmem:[#allocation154_spill] sm:$0xff] %v6783_v8  ;;  %v10019_v0 = vrot.slane %v10018_v60, 9  ;;  %v10022_v44 = vld [vmem:[#allocation38_spill] sm:$0xff]  ;;  %v10026_v8 = vld [vmem:[#allocation45_spill] sm:$0xff] }
 0x152   : > { %10012 = vst [vmem:[#allocation166_spill] sm:$0xff] %v6788_v23  ;;  %v6793_v4 = vadd.f32 %v10015_v26, %v10013_v55  ;;  %v10023_v47 = vrot.slane %v10022_v44, 9  ;;  %v10027_v46 = vrot.slane %v10026_v8, 9  ;;  %v10029_v52 = vld [vmem:[#allocation175_spill] sm:$0xff]  ;;  %v10030_v23 = vld [vmem:[#allocation57_spill] sm:$0xff] }
 0x153   : > { %v6798_v31 = vadd.f32 %v10019_v0, %v10017_v11  ;;  %v10031_v49 = vrot.slane %v10030_v23, 9  ;;  %v10033_v26 = vld [vmem:[#allocation181_spill] sm:$0xff]  ;;  %v10037_v0 = vld [vmem:[#allocation182_spill] sm:$0xff] }
 0x154   : > { %10016 = vst [vmem:[#allocation155_spill] sm:$0xff] %v6793_v4  ;;  %v6803_v5 = vadd.f32 %v10023_v47, %v10021_v53  ;;  %v6808_v35 = vadd.f32 %v10027_v46, %v10025_v51  ;;  %v10034_v4 = vld [vmem:[#allocation46_spill] sm:$0xff]  ;;  %v10041_v47 = vld [vmem:[#allocation184_spill] sm:$0xff] }
 0x155   : > { %10020 = vst [vmem:[#allocation157_spill] sm:$0xff] %v6798_v31  ;;  %v6813_v55 = vadd.f32 %v10031_v49, %v10029_v52  ;;  %v10035_v60 = vrot.slane %v10034_v4, 9  ;;  %v10038_v31 = vld [vmem:[#allocation58_spill] sm:$0xff]  ;;  %v10045_v46 = vld [vmem:[#allocation196_spill] sm:$0xff]  ;;  %v10049_v49 = vld [vmem:[#allocation197_spill] sm:$0xff] }
 0x156   : > { %10024 = vst [vmem:[#allocation158_spill] sm:$0xff] %v6803_v5  ;;  %10028 = vst [vmem:[#allocation169_spill] sm:$0xff] %v6808_v35  ;;  %v10039_v44 = vrot.slane %v10038_v31, 9  ;;  %v10042_v5 = vld [vmem:[#allocation48_spill] sm:$0xff] }
 0x157   : > { %10032 = vst [vmem:[#allocation164_spill] sm:$0xff] %v6813_v55  ;;  %v6818_v11 = vadd.f32 %v10035_v60, %v10033_v26  ;;  %v10043_v8 = vrot.slane %v10042_v5, 9  ;;  %v10046_v35 = vld [vmem:[#allocation60_spill] sm:$0xff]  ;;  %v10050_v55 = vld [vmem:[#allocation49_spill] sm:$0xff]  ;;  %v10053_v60 = vld [vmem:[#allocation202_spill] sm:$0xff] }
 0x158   : > { %v6823_v53 = vadd.f32 %v10039_v44, %v10037_v0  ;;  %v10047_v23 = vrot.slane %v10046_v35, 9  ;;  %v10051_v4 = vrot.slane %v10050_v55, 9  ;;  %v10057_v44 = vld [vmem:[#allocation203_spill] sm:$0xff] }
 0x159   : > { %10036 = vst [vmem:[#allocation170_spill] sm:$0xff] %v6818_v11  ;;  %v6828_v51 = vadd.f32 %v10043_v8, %v10041_v47  ;;  %v10054_v11 = vld [vmem:[#allocation61_spill] sm:$0xff] }
 0x15a   : > { %10040 = vst [vmem:[#allocation171_spill] sm:$0xff] %v6823_v53  ;;  %v6833_v52 = vadd.f32 %v10047_v23, %v10045_v46  ;;  %v6838_v26 = vadd.f32 %v10051_v4, %v10049_v49  ;;  %v10055_v31 = vrot.slane %v10054_v11, 9  ;;  %v10058_v53 = vld [vmem:[#allocation50_spill] sm:$0xff]  ;;  %v10061_v8 = vld [vmem:[#allocation205_spill] sm:$0xff] }
 0x15b   : > { %10044 = vst [vmem:[#allocation172_spill] sm:$0xff] %v6828_v51  ;;  %v10059_v5 = vrot.slane %v10058_v53, 9  ;;  %v10062_v51 = vld [vmem:[#allocation63_spill] sm:$0xff]  ;;  %v10065_v23 = vld [vmem:[#allocation206_spill] sm:$0xff]  ;;  %v10069_v4 = vld [vmem:[#allocation209_spill] sm:$0xff] }
 0x15c   : > { %10048 = vst [vmem:[#allocation187_spill] sm:$0xff] %v6833_v52  ;;  %10052 = vst [vmem:[#allocation190_spill] sm:$0xff] %v6838_v26  ;;  %v6843_v0 = vadd.f32 %v10055_v31, %v10053_v60  ;;  %v10063_v35 = vrot.slane %v10062_v51, 9  ;;  %v10066_v52 = vld [vmem:[#allocation51_spill] sm:$0xff]  ;;  %v10070_v26 = vld [vmem:[#allocation64_spill] sm:$0xff] }
 0x15d   : > { %v6848_v47 = vadd.f32 %v10059_v5, %v10057_v44  ;;  %v10067_v55 = vrot.slane %v10066_v52, 9  ;;  %v10071_v11 = vrot.slane %v10070_v26, 9  ;;  %v10073_v31 = vld [vmem:[#allocation210_spill] sm:$0xff]  ;;  %v10077_v5 = vld [vmem:[#allocation28_spill] sm:$0xff] }
 0x15e   : > { %10056 = vst [vmem:[#allocation195_spill] sm:$0xff] %v6843_v0  ;;  %v6853_v46 = vadd.f32 %v10063_v35, %v10061_v8  ;;  %v10074_v0 = vld [vmem:[#allocation52_spill] sm:$0xff]  ;;  %v10081_v35 = vld [vmem:[#allocation39_spill] sm:$0xff] }
 0x15f   : > { %10060 = vst [vmem:[#allocation3_spill] sm:$0xff] %v6848_v47  ;;  %v6858_v49 = vadd.f32 %v10067_v55, %v10065_v23  ;;  %v6863_v60 = vadd.f32 %v10071_v11, %v10069_v4  ;;  %v10075_v53 = vrot.slane %v10074_v0, 9  ;;  %v10078_v47 = vld [vmem:[#allocation65_spill] sm:$0xff]  ;;  %v10085_v55 = vld [vmem:[#allocation30_spill] sm:$0xff]  ;;  %v10089_v11 = vld [vmem:[#allocation40_spill] sm:$0xff] }
 0x160   : > { %10064 = vst [vmem:[#allocation13_spill] sm:$0xff] %v6853_v46  ;;  %v10079_v51 = vrot.slane %v10078_v47, 9  ;;  %v10082_v46 = vld [vmem:[#allocation55_spill] sm:$0xff] }
 0x161   : > { %10068 = vst [vmem:[#allocation7_spill] sm:$0xff] %v6858_v49  ;;  %10072 = vst [vmem:[#allocation18_spill] sm:$0xff] %v6863_v60  ;;  %v6868_v44 = vadd.f32 %v10075_v53, %v10073_v31  ;;  %v10083_v52 = vrot.slane %v10082_v46, 9  ;;  %v10086_v49 = vld [vmem:[#allocation66_spill] sm:$0xff]  ;;  %v10090_v60 = vld [vmem:[#allocation75_spill] sm:$0xff] }
 0x162   : > { %v6873_v8 = vadd.f32 %v10079_v51, %v10077_v5  ;;  %v10087_v26 = vrot.slane %v10086_v49, 9  ;;  %v10091_v0 = vrot.slane %v10090_v60, 9  ;;  %v10093_v53 = vld [vmem:[#allocation31_spill] sm:$0xff]  ;;  %v10097_v51 = vld [vmem:[#allocation41_spill] sm:$0xff] }
 0x163   : > { %10076 = vst [vmem:[#allocation5_spill] sm:$0xff] %v6868_v44  ;;  %v6878_v23 = vadd.f32 %v10083_v52, %v10081_v35  ;;  %v10094_v44 = vld [vmem:[#allocation87_spill] sm:$0xff]  ;;  %v10101_v52 = vld [vmem:[#allocation37_spill] sm:$0xff] }
 0x164   : > { %10080 = vst [vmem:[#allocation19_spill] sm:$0xff] %v6873_v8  ;;  %v6883_v4 = vadd.f32 %v10087_v26, %v10085_v55  ;;  %v6888_v31 = vadd.f32 %v10091_v0, %v10089_v11  ;;  %v10095_v47 = vrot.slane %v10094_v44, 9  ;;  %v10098_v8 = vld [vmem:[#allocation76_spill] sm:$0xff]  ;;  %v10105_v26 = vld [vmem:[#allocation47_spill] sm:$0xff]  ;;  %v10109_v0 = vld [vmem:[#allocation42_spill] sm:$0xff] }
 0x165   : > { %10084 = vst [vmem:[#allocation11_spill] sm:$0xff] %v6878_v23  ;;  %v10099_v46 = vrot.slane %v10098_v8, 9  ;;  %v10102_v23 = vld [vmem:[#allocation88_spill] sm:$0xff] }
 0x166   : > { %10088 = vst [vmem:[#allocation26_spill] sm:$0xff] %v6883_v4  ;;  %10092 = vst [vmem:[#allocation4_spill] sm:$0xff] %v6888_v31  ;;  %v6893_v5 = vadd.f32 %v10095_v47, %v10093_v53  ;;  %v10103_v49 = vrot.slane %v10102_v23, 9  ;;  %v10106_v4 = vld [vmem:[#allocation77_spill] sm:$0xff] }
 0x167   : > { %v6898_v35 = vadd.f32 %v10099_v46, %v10097_v51  ;;  %v10107_v60 = vrot.slane %v10106_v4, 9  ;;  %v10110_v31 = vld [vmem:[#allocation89_spill] sm:$0xff]  ;;  %v10117_v46 = vld [vmem:[#allocation43_spill] sm:$0xff] }
 0x168   : > { %10096 = vst [vmem:[#allocation20_spill] sm:$0xff] %v6893_v5  ;;  %v6903_v55 = vadd.f32 %v10103_v49, %v10101_v52  ;;  %v10111_v44 = vrot.slane %v10110_v31, 9  ;;  %v10113_v47 = vld [vmem:[#allocation53_spill] sm:$0xff]  ;;  %v10114_v5 = vld [vmem:[#allocation78_spill] sm:$0xff] }
 0x169   : > { %10100 = vst [vmem:[#allocation9_spill] sm:$0xff] %v6898_v35  ;;  %v6908_v11 = vadd.f32 %v10107_v60, %v10105_v26  ;;  %v10115_v8 = vrot.slane %v10114_v5, 9  ;;  %v10118_v35 = vld [vmem:[#allocation90_spill] sm:$0xff]  ;;  %v10125_v60 = vld [vmem:[#allocation44_spill] sm:$0xff] }
 0x16a   : > { %10104 = vst [vmem:[#allocation29_spill] sm:$0xff] %v6903_v55  ;;  %v6913_v53 = vadd.f32 %v10111_v44, %v10109_v0  ;;  %v10119_v23 = vrot.slane %v10118_v35, 9  ;;  %v10121_v49 = vld [vmem:[#allocation54_spill] sm:$0xff]  ;;  %v10122_v55 = vld [vmem:[#allocation81_spill] sm:$0xff]  ;;  %v10129_v44 = vld [vmem:[#allocation56_spill] sm:$0xff] }
 0x16b   : > { %10108 = vst [vmem:[#allocation8_spill] sm:$0xff] %v6908_v11  ;;  %v6918_v51 = vadd.f32 %v10115_v8, %v10113_v47  ;;  %v10123_v4 = vrot.slane %v10122_v55, 9  ;;  %v10126_v11 = vld [vmem:[#allocation92_spill] sm:$0xff]  ;;  %v10133_v8 = vld [vmem:[#allocation59_spill] sm:$0xff] }
 0x16c   : > { %10112 = vst [vmem:[#allocation21_spill] sm:$0xff] %v6913_v53  ;;  %v6923_v52 = vadd.f32 %v10119_v23, %v10117_v46  ;;  %v10127_v31 = vrot.slane %v10126_v11, 9  ;;  %v10130_v53 = vld [vmem:[#allocation84_spill] sm:$0xff]  ;;  %v10137_v23 = vld [vmem:[#allocation69_spill] sm:$0xff] }
 0x16d   : > { %10116 = vst [vmem:[#allocation15_spill] sm:$0xff] %v6918_v51  ;;  %v6928_v26 = vadd.f32 %v10123_v4, %v10121_v49  ;;  %v10131_v5 = vrot.slane %v10130_v53, 9  ;;  %v10134_v51 = vld [vmem:[#allocation95_spill] sm:$0xff]  ;;  %v10141_v4 = vld [vmem:[#allocation62_spill] sm:$0xff] }
 0x16e   : > { %10120 = vst [vmem:[#allocation32_spill] sm:$0xff] %v6923_v52  ;;  %v6933_v0 = vadd.f32 %v10127_v31, %v10125_v60  ;;  %v10135_v35 = vrot.slane %v10134_v51, 9  ;;  %v10138_v52 = vld [vmem:[#allocation91_spill] sm:$0xff]  ;;  %v10145_v31 = vld [vmem:[#allocation72_spill] sm:$0xff] }
 0x16f   : > { %10124 = vst [vmem:[#allocation6_spill] sm:$0xff] %v6928_v26  ;;  %v6938_v47 = vadd.f32 %v10131_v5, %v10129_v44  ;;  %v10139_v55 = vrot.slane %v10138_v52, 9  ;;  %v10142_v26 = vld [vmem:[#allocation101_spill] sm:$0xff]  ;;  %v10149_v5 = vld [vmem:[#allocation67_spill] sm:$0xff] }
 0x170   : > { %10128 = vst [vmem:[#allocation22_spill] sm:$0xff] %v6933_v0  ;;  %v6943_v46 = vadd.f32 %v10135_v35, %v10133_v8  ;;  %v10143_v11 = vrot.slane %v10142_v26, 9  ;;  %v10146_v0 = vld [vmem:[#allocation93_spill] sm:$0xff]  ;;  %v10153_v35 = vld [vmem:[#allocation79_spill] sm:$0xff] }
 0x171   : > { %10132 = vst [vmem:[#allocation14_spill] sm:$0xff] %v6938_v47  ;;  %v6948_v49 = vadd.f32 %v10139_v55, %v10137_v23  ;;  %v10147_v53 = vrot.slane %v10146_v0, 9  ;;  %v10150_v47 = vld [vmem:[#allocation104_spill] sm:$0xff] }
 0x172   : > { %10136 = vst [vmem:[#allocation33_spill] sm:$0xff] %v6943_v46  ;;  %v6953_v60 = vadd.f32 %v10143_v11, %v10141_v4  ;;  %v10151_v51 = vrot.slane %v10150_v47, 9  ;;  %v10154_v46 = vld [vmem:[#allocation106_spill] sm:$0xff]  ;;  %v10157_v55 = vld [vmem:[#allocation68_spill] sm:$0xff] }
 0x173   : > { %10140 = vst [vmem:[#allocation12_spill] sm:$0xff] %v6948_v49  ;;  %v6958_v44 = vadd.f32 %v10147_v53, %v10145_v31  ;;  %v10155_v52 = vrot.slane %v10154_v46, 9  ;;  %v10158_v49 = vld [vmem:[#allocation117_spill] sm:$0xff]  ;;  %v10161_v11 = vld [vmem:[#allocation80_spill] sm:$0xff]  ;;  %v10165_v53 = vld [vmem:[#allocation70_spill] sm:$0xff] }
 0x174   : > { %10144 = vst [vmem:[#allocation23_spill] sm:$0xff] %v6953_v60  ;;  %v6963_v8 = vadd.f32 %v10151_v51, %v10149_v5  ;;  %v10159_v26 = vrot.slane %v10158_v49, 9  ;;  %v10162_v60 = vld [vmem:[#allocation107_spill] sm:$0xff]  ;;  %v10169_v51 = vld [vmem:[#allocation82_spill] sm:$0xff] }
 0x175   : > { %10148 = vst [vmem:[#allocation16_spill] sm:$0xff] %v6958_v44  ;;  %v6968_v23 = vadd.f32 %v10155_v52, %v10153_v35  ;;  %v10163_v0 = vrot.slane %v10162_v60, 9  ;;  %v10166_v44 = vld [vmem:[#allocation118_spill] sm:$0xff]  ;;  %v10172_v52 = vld [vmem:[#allocation71_spill] sm:$0xff] }
 0x176   : > { %10152 = vst [vmem:[#allocation34_spill] sm:$0xff] %v6963_v8  ;;  %v6973_v4 = vadd.f32 %v10159_v26, %v10157_v55  ;;  %v10167_v47 = vrot.slane %v10166_v44, 9  ;;  %v10170_v8 = vld [vmem:[#allocation110_spill] sm:$0xff]  ;;  %v10176_v26 = vld [vmem:[#allocation83_spill] sm:$0xff] }
 0x177   : > { %10156 = vst [vmem:[#allocation10_spill] sm:$0xff] %v6968_v23  ;;  %v6978_v31 = vadd.f32 %v10163_v0, %v10161_v11  ;;  %v10171_v46 = vrot.slane %v10170_v8, 9  ;;  %v10173_v23 = vld [vmem:[#allocation120_spill] sm:$0xff]  ;;  %v10180_v0 = vld [vmem:[#allocation73_spill] sm:$0xff] }
 0x178   : > { %10160 = vst [vmem:[#allocation24_spill] sm:$0xff] %v6973_v4  ;;  %v6983_v5 = vadd.f32 %v10167_v47, %v10165_v53  ;;  %v10174_v49 = vrot.slane %v10173_v23, 9  ;;  %v10177_v4 = vld [vmem:[#allocation116_spill] sm:$0xff]  ;;  %v10184_v47 = vld [vmem:[#allocation85_spill] sm:$0xff]  ;;  %v10188_v23 = vrot.slane %v9894_v37, 9  ;;  %v10202_v37 = vrot.slane %v9898_v38, 9 }
 0x179   : > { %10164 = vst [vmem:[#allocation17_spill] sm:$0xff] %v6978_v31  ;;  %v6988_v35 = vadd.f32 %v10171_v46, %v10169_v51  ;;  %v10178_v60 = vrot.slane %v10177_v4, 9  ;;  %v10181_v31 = vld [vmem:[#allocation127_spill] sm:$0xff]  ;;  %v10187_v46 = vld [vmem:[#allocation74_spill] sm:$0xff] }
 0x17a   : > { %10168 = vst [vmem:[#allocation35_spill] sm:$0xff] %v6983_v5  ;;  %v6993_v55 = vadd.f32 %v10174_v49, %v10172_v52  ;;  %v10182_v44 = vrot.slane %v10181_v31, 9  ;;  %v10185_v5 = vld [vmem:[#allocation119_spill] sm:$0xff]  ;;  %v7013_v52 = vadd.f32 %v10188_v23, %v10187_v46  ;;  %v10190_v49 = vld [vmem:[#allocation86_spill] sm:$0xff]  ;;  %v10204_v23 = vld [vmem:[#allocation108_spill] sm:$0xff] }
 0x17b   : > { %v6998_v11 = vadd.f32 %v10178_v60, %v10176_v26  ;;  %v10186_v8 = vrot.slane %v10185_v5, 9  ;;  %v10193_v60 = vld [vmem:[#allocation94_spill] sm:$0xff] }
 0x17c   : > { %10175 = vst [vmem:[#allocation220_spill] sm:$0xff] %v6993_v55  ;;  %v7003_v53 = vadd.f32 %v10182_v44, %v10180_v0  ;;  %10189 = vst [vmem:[#allocation36_spill] sm:$0xff] %v7013_v52  ;;  %v10191_v55 = vld [vmem:[#allocation121_spill] sm:$0xff]  ;;  %v10205_v52 = vld [vmem:[#allocation123_spill] sm:$0xff] }
 0x17d   : > { %10179 = vst [vmem:[#allocation25_spill] sm:$0xff] %v6998_v11  ;;  %v7008_v51 = vadd.f32 %v10186_v8, %v10184_v47  ;;  %v10192_v4 = vrot.slane %v10191_v55, 9  ;;  %v10194_v11 = vld [vmem:[#allocation133_spill] sm:$0xff]  ;;  %v10201_v8 = vld [vmem:[#allocation96_spill] sm:$0xff]  ;;  %v10206_v55 = vrot.slane %v10205_v52, 9 }
 0x17e   : > { %10183 = vst [vmem:[#allocation221_spill] sm:$0xff] %v7003_v53  ;;  %v10195_v31 = vrot.slane %v10194_v11, 9  ;;  %v10197_v44 = vld [vmem:[#allocation105_spill] sm:$0xff]  ;;  %v10198_v53 = vld [vmem:[#allocation122_spill] sm:$0xff]  ;;  %v7033_v46 = vadd.f32 %v10202_v37, %v10201_v8  ;;  %v10208_v11 = vrot.slane %v9900_v10, 9  ;;  %v10217_v37 = vld [vmem:[#allocation111_spill] sm:$0xff] }
 0x17f   : > { %v7018_v26 = vadd.f32 %v10192_v4, %v10190_v49  ;;  %v10199_v5 = vrot.slane %v10198_v53, 9  ;;  %v7038_v49 = vadd.f32 %v10206_v55, %v10204_v23  ;;  %v10207_v4 = vld [vmem:[#allocation97_spill] sm:$0xff]  ;;  %v10220_v55 = vld [vmem:[#allocation99_spill] sm:$0xff]  ;;  %v10221_v10 = vrot.slane %v9904_v20, 9 }
 0x180   : > { %v7023_v0 = vadd.f32 %v10195_v31, %v10193_v60  ;;  %10203 = vst [vmem:[#allocation167_spill] sm:$0xff] %v7033_v46  ;;  %v7043_v60 = vadd.f32 %v10208_v11, %v10207_v4  ;;  %v10210_v31 = vld [vmem:[#allocation109_spill] sm:$0xff]  ;;  %v10223_v11 = vld [vmem:[#allocation112_spill] sm:$0xff]  ;;  %v10233_v20 = vrot.slane %v9907_v21, 9  ;;  %v10245_v21 = vrot.slane %v9909_v1, 9 }
 0x181   : > { %v7028_v47 = vadd.f32 %v10199_v5, %v10197_v44  ;;  %v10213_v5 = vld [vmem:[#allocation98_spill] sm:$0xff]  ;;  %v10218_v46 = vld [vmem:[#allocation145_spill] sm:$0xff]  ;;  %v7063_v4 = vadd.f32 %v10221_v10, %v10220_v55  ;;  %v10255_v1 = vrot.slane %v9912_v58, 9  ;;  %v10263_v58 = vrot.slane %v9914_v62, 9 }
 0x182   : > { %10196 = vst [vmem:[#allocation149_spill] sm:$0xff] %v7023_v0  ;;  %10209 = vst [vmem:[#allocation38_spill] sm:$0xff] %v7043_v60  ;;  %v10211_v0 = vld [vmem:[#allocation142_spill] sm:$0xff]  ;;  %v10219_v52 = vrot.slane %v10218_v46, 9  ;;  %v10272_v62 = vrot.slane %v9916_v13, 9  ;;  %v10282_v13 = vrot.slane %v9798_v41, 9 }
 0x183   : > { %10200 = vst [vmem:[#allocation27_spill] sm:$0xff] %v7028_v47  ;;  %v10212_v53 = vrot.slane %v10211_v0, 9  ;;  %v10214_v47 = vld [vmem:[#allocation152_spill] sm:$0xff]  ;;  %10222 = vst [vmem:[#allocation45_spill] sm:$0xff] %v7063_v4  ;;  %v10224_v60 = vld [vmem:[#allocation146_spill] sm:$0xff]  ;;  %v10291_v41 = vrot.slane %v9808_v45, 9 }
 0x184   : > { %v10215_v38 = vrot.slane %v10214_v47, 9  ;;  %v7058_v23 = vadd.f32 %v10219_v52, %v10217_v37  ;;  %v10225_v0 = vrot.slane %v10224_v60, 9  ;;  %v10227_v47 = vrot.slane %v9905_v17, 9  ;;  %v10232_v52 = vld [vmem:[#allocation102_spill] sm:$0xff]  ;;  %v10236_v4 = vld [vmem:[#allocation148_spill] sm:$0xff] }
 0x185   : > { %v7048_v44 = vadd.f32 %v10212_v53, %v10210_v31  ;;  %v10226_v53 = vld [vmem:[#allocation100_spill] sm:$0xff]  ;;  %v7083_v55 = vadd.f32 %v10233_v20, %v10232_v52  ;;  %v10235_v10 = vld [vmem:[#allocation114_spill] sm:$0xff]  ;;  %v10237_v60 = vrot.slane %v10236_v4, 9  ;;  %v10239_v17 = vrot.slane %v9908_v18, 9 }
 0x186   : > { %v7053_v8 = vadd.f32 %v10215_v38, %v10213_v5  ;;  %v7068_v31 = vadd.f32 %v10225_v0, %v10223_v11  ;;  %v7073_v5 = vadd.f32 %v10227_v47, %v10226_v53  ;;  %v10229_v38 = vld [vmem:[#allocation113_spill] sm:$0xff]  ;;  %v10238_v0 = vld [vmem:[#allocation103_spill] sm:$0xff]  ;;  %v10241_v47 = vld [vmem:[#allocation222_spill] sm:$0xff]  ;;  %v10250_v18 = vrot.slane %v9911_v28, 9 }
 0x187   : > { %10234 = vst [vmem:[#allocation57_spill] sm:$0xff] %v7083_v55  ;;  %v7088_v11 = vadd.f32 %v10237_v60, %v10235_v10  ;;  %v7093_v53 = vadd.f32 %v10239_v17, %v10238_v0  ;;  %v10246_v20 = vld [vmem:[#allocation124_spill] sm:$0xff]  ;;  %v10247_v55 = vld [vmem:[#allocation151_spill] sm:$0xff]  ;;  %v10259_v28 = vrot.slane %v9913_v32, 9  ;;  %v10267_v32 = vrot.slane %v9915_v63, 9 }
 0x188   : > { %10216 = vst [vmem:[#allocation168_spill] sm:$0xff] %v7053_v8  ;;  %10228 = vst [vmem:[#allocation175_spill] sm:$0xff] %v7073_v5  ;;  %v10230_v8 = vld [vmem:[#allocation147_spill] sm:$0xff]  ;;  %v10242_v5 = vld [vmem:[#allocation150_spill] sm:$0xff]  ;;  %v10248_v4 = vrot.slane %v10247_v55, 9  ;;  %v10257_v55 = vrot.slane %v9770_v39, 9 }
 0x189   : > { %v10231_v46 = vrot.slane %v10230_v8, 9  ;;  %10240 = vst [vmem:[#allocation181_spill] sm:$0xff] %v7093_v53  ;;  %v10243_v8 = vrot.slane %v10242_v5, 9  ;;  %v10249_v60 = vld [vmem:[#allocation136_spill] sm:$0xff]  ;;  %v10251_v17 = vld [vmem:[#allocation223_spill] sm:$0xff]  ;;  %v10252_v53 = vld [vmem:[#allocation153_spill] sm:$0xff] }
 0x18a   : > { %v7108_v10 = vadd.f32 %v10248_v4, %v10246_v20  ;;  %v7113_v0 = vadd.f32 %v10250_v18, %v10249_v60  ;;  %v10253_v5 = vrot.slane %v10252_v53, 9  ;;  %v10258_v4 = vld [vmem:[#allocation137_spill] sm:$0xff]  ;;  %v10260_v18 = vld [vmem:[#allocation174_spill] sm:$0xff]  ;;  %v10261_v53 = vrot.slane %v9775_v43, 9 }
 0x18b   : > { %v7078_v37 = vadd.f32 %v10231_v46, %v10229_v38  ;;  %v7098_v38 = vadd.f32 %v10243_v8, %v10241_v47  ;;  %v10244_v46 = vld [vmem:[#allocation115_spill] sm:$0xff]  ;;  %v10254_v8 = vld [vmem:[#allocation125_spill] sm:$0xff]  ;;  %v7133_v60 = vadd.f32 %v10259_v28, %v10258_v4  ;;  %v10265_v39 = vrot.slane %v9781_v15, 9  ;;  %v10269_v28 = vld [vmem:[#allocation128_spill] sm:$0xff] }
 0x18c   : > { %v7103_v52 = vadd.f32 %v10245_v21, %v10244_v46  ;;  %v7118_v47 = vadd.f32 %v10253_v5, %v10251_v17  ;;  %v7123_v46 = vadd.f32 %v10255_v1, %v10254_v8  ;;  %v10256_v21 = vld [vmem:[#allocation173_spill] sm:$0xff]  ;;  %v7138_v17 = vadd.f32 %v10261_v53, %v10260_v18  ;;  %v10262_v5 = vld [vmem:[#allocation126_spill] sm:$0xff] }
 0x18d   : > { %v7128_v20 = vadd.f32 %v10257_v55, %v10256_v21  ;;  %v7143_v8 = vadd.f32 %v10263_v58, %v10262_v5  ;;  %v10264_v1 = vld [vmem:[#allocation138_spill] sm:$0xff]  ;;  %v10266_v55 = vld [vmem:[#allocation176_spill] sm:$0xff]  ;;  %v10270_v43 = vrot.slane %v9786_v16, 9  ;;  %v10271_v53 = vld [vmem:[#allocation177_spill] sm:$0xff]  ;;  %v10275_v15 = vrot.slane %v9791_v19, 9 }
 0x18e   : > { %v7148_v21 = vadd.f32 %v10265_v39, %v10264_v1  ;;  %v7153_v4 = vadd.f32 %v10267_v32, %v10266_v55  ;;  %v7163_v5 = vadd.f32 %v10272_v62, %v10271_v53  ;;  %v10274_v58 = vld [vmem:[#allocation140_spill] sm:$0xff]  ;;  %v10276_v39 = vld [vmem:[#allocation178_spill] sm:$0xff]  ;;  %v10277_v63 = vrot.slane %v9917_v42, 9  ;;  %v10278_v32 = vld [vmem:[#allocation129_spill] sm:$0xff] }
 0x18f   : > { %v7158_v18 = vadd.f32 %v10270_v43, %v10269_v28  ;;  %v7168_v1 = vadd.f32 %v10275_v15, %v10274_v58  ;;  %v10281_v43 = vld [vmem:[#allocation192_spill] sm:$0xff]  ;;  %v10283_v62 = vld [vmem:[#allocation141_spill] sm:$0xff]  ;;  %v10287_v42 = vrot.slane %v9803_v33, 9  ;;  %v10296_v33 = vrot.slane %v9813_v3, 9 }
 0x190   : > { %10268 = vst [vmem:[#allocation46_spill] sm:$0xff] %v7153_v4  ;;  %10273 = vst [vmem:[#allocation182_spill] sm:$0xff] %v7163_v5  ;;  %v7173_v55 = vadd.f32 %v10277_v63, %v10276_v39  ;;  %v10279_v4 = vld [vmem:[#allocation179_spill] sm:$0xff]  ;;  %v7183_v53 = vadd.f32 %v10282_v13, %v10281_v43  ;;  %v10284_v5 = vld [vmem:[#allocation180_spill] sm:$0xff]  ;;  %v10300_v45 = vrot.slane %v9817_v6, 9  ;;  %v10310_v6 = vrot.slane %v9919_v30, 9 }
 0x191   : > { %v10280_v16 = vrot.slane %v10279_v4, 9  ;;  %v10285_v19 = vrot.slane %v10284_v5, 9  ;;  %v10286_v15 = vld [vmem:[#allocation193_spill] sm:$0xff]  ;;  %v10288_v63 = vld [vmem:[#allocation131_spill] sm:$0xff]  ;;  %v10289_v4 = vrot.slane %v9806_v24, 9  ;;  %v10292_v13 = vld [vmem:[#allocation194_spill] sm:$0xff] }
 0x192   : > { %v7193_v39 = vadd.f32 %v10287_v42, %v10286_v15  ;;  %v10293_v5 = vrot.slane %v9811_v22, 9  ;;  %v10297_v42 = vld [vmem:[#allocation198_spill] sm:$0xff]  ;;  %v10298_v24 = vrot.slane %v9815_v25, 9  ;;  %v10302_v22 = vrot.slane %v9819_v57, 9 }
 0x193   : > { %v7178_v28 = vadd.f32 %v10280_v16, %v10278_v32  ;;  %v7188_v58 = vadd.f32 %v10285_v19, %v10283_v62  ;;  %v7198_v32 = vadd.f32 %v10289_v4, %v10288_v63  ;;  %v10290_v16 = vld [vmem:[#allocation183_spill] sm:$0xff]  ;;  %v10308_v25 = vrot.slane %v9823_v9, 9 }
 0x194   : > { %v7203_v43 = vadd.f32 %v10291_v41, %v10290_v16  ;;  %v7208_v62 = vadd.f32 %v10293_v5, %v10292_v13  ;;  %v10295_v19 = vld [vmem:[#allocation143_spill] sm:$0xff]  ;;  %v7218_v63 = vadd.f32 %v10298_v24, %v10297_v42  ;;  %v10304_v5 = vld [vmem:[#allocation213_spill] sm:$0xff]  ;;  %v10312_v57 = vrot.slane %v9827_v59, 9 }
 0x195   : > { %v7213_v15 = vadd.f32 %v10296_v33, %v10295_v19  ;;  %v10299_v4 = vld [vmem:[#allocation211_spill] sm:$0xff]  ;;  %v10307_v33 = vld [vmem:[#allocation200_spill] sm:$0xff]  ;;  %v10309_v24 = vld [vmem:[#allocation201_spill] sm:$0xff]  ;;  %v10318_v9 = vrot.slane %v9831_v40, 9  ;;  %v10320_v30 = vrot.slane %v9833_v48, 9  ;;  %v10322_v59 = vrot.slane %v9836_v14, 9 }
 0x196   : > { %10294 = vst [vmem:[#allocation58_spill] sm:$0xff] %v7208_v62  ;;  %v7223_v16 = vadd.f32 %v10300_v45, %v10299_v4  ;;  %v10301_v41 = vld [vmem:[#allocation199_spill] sm:$0xff]  ;;  %v10305_v62 = vld [vmem:[#allocation214_spill] sm:$0xff]  ;;  %v7238_v42 = vadd.f32 %v10308_v25, %v10307_v33  ;;  %v7243_v4 = vadd.f32 %v10310_v6, %v10309_v24  ;;  %v10311_v45 = vld [vmem:[#allocation204_spill] sm:$0xff]  ;;  %v10329_v48 = vrot.slane %v9843_v54, 9 }
 0x197   : > { %v7228_v13 = vadd.f32 %v10302_v22, %v10301_v41  ;;  %v10306_v3 = vrot.slane %v10305_v62, 9  ;;  %v7248_v41 = vadd.f32 %v10312_v57, %v10311_v45  ;;  %v10313_v22 = vld [vmem:[#allocation224_spill] sm:$0xff]  ;;  %v10319_v25 = vld [vmem:[#allocation217_spill] sm:$0xff]  ;;  %v7289_v14 = vmul.f32 0.25, %v6653_v50 }
 0x198   : > { %v7263_v24 = vadd.f32 %v10320_v30, %v10319_v25  ;;  %v10321_v6 = vld [vmem:[#allocation132_spill] sm:$0xff]  ;;  %v7286_v30 = vmul.f32 0.25, %v6648_v29  ;;  %v7304_v54 = vmul.f32 0.25, %v6678_v7  ;;  %v7307_v29 = vmul.f32 0.25, %v6683_v2  ;;  %v10348_v2 = vld [vmem:[#allocation159_spill] sm:$0xff] }
 0x199   : > { %10303 = vst [vmem:[#allocation184_spill] sm:$0xff] %v7228_v13  ;;  %v7233_v19 = vadd.f32 %v10306_v3, %v10304_v5  ;;  %v10314_v13 = vld [vmem:[#allocation216_spill] sm:$0xff]  ;;  %v10317_v3 = vld [vmem:[#allocation207_spill] sm:$0xff]  ;;  %v7268_v45 = vadd.f32 %v10322_v59, %v10321_v6  ;;  %10330 = vst [vmem:[#allocation196_spill] sm:$0xff] %v7289_v14  ;;  %v7295_v6 = vmul.f32 0.25, %v6663_v36  ;;  %v7301_v59 = vmul.f32 0.25, %v6673_v61 }
 0x19a   : > { %v10315_v62 = vrot.slane %v10314_v13, 9  ;;  %v7258_v33 = vadd.f32 %v10318_v9, %v10317_v3  ;;  %v10323_v57 = vld [vmem:[#allocation208_spill] sm:$0xff]  ;;  %v10324_v13 = vrot.slane %v9838_v56, 9  ;;  %v7292_v56 = vmul.f32 0.25, %v6658_v12  ;;  %10335 = vst [vmem:[#allocation61_spill] sm:$0xff] %v7304_v54  ;;  %10336 = vst [vmem:[#allocation203_spill] sm:$0xff] %v7307_v29 }
 0x19b   : > { %v10328_v9 = vld [vmem:[#allocation144_spill] sm:$0xff]  ;;  %10332 = vst [vmem:[#allocation197_spill] sm:$0xff] %v7295_v6  ;;  %10334 = vst [vmem:[#allocation202_spill] sm:$0xff] %v7301_v59  ;;  %v7310_v50 = vmul.f32 0.25, %v6688_v34  ;;  %v10338_v12 = vld [vmem:[#allocation219_spill] sm:$0xff] }
 0x19c   : > { %v7253_v5 = vadd.f32 %v10315_v62, %v10313_v22  ;;  %v7273_v22 = vadd.f32 %v10324_v13, %v10323_v57  ;;  %v10325_v62 = vld [vmem:[#allocation218_spill] sm:$0xff]  ;;  %v7283_v25 = vadd.f32 %v10329_v48, %v10328_v9  ;;  %10331 = vst [vmem:[#allocation60_spill] sm:$0xff] %v7292_v56  ;;  %v7313_v57 = vmul.f32 0.25, %v10338_v12  ;;  %v10344_v61 = vld [vmem:[#allocation135_spill] sm:$0xff]  ;;  %v10346_v7 = vld [vmem:[#allocation156_spill] sm:$0xff] }
 0x19d   : > { %10337 = vst [vmem:[#allocation50_spill] sm:$0xff] %v7310_v50  ;;  %v10340_v36 = vld [vmem:[#allocation130_spill] sm:$0xff]  ;;  %v7325_v9 = vmul.f32 0.25, %v10346_v7  ;;  %v7328_v48 = vmul.f32 0.25, %v10348_v2  ;;  %v10350_v34 = vld [vmem:[#allocation160_spill] sm:$0xff]  ;;  %v10352_v12 = vld [vmem:[#allocation161_spill] sm:$0xff] }
 0x19e   : > { %10316 = vst [vmem:[#allocation48_spill] sm:$0xff] %v7253_v5  ;;  %v10326_v5 = vld [vmem:[#allocation212_spill] sm:$0xff]  ;;  %10339 = vst [vmem:[#allocation205_spill] sm:$0xff] %v7313_v57  ;;  %v7316_v13 = vmul.f32 0.25, %v10340_v36  ;;  %v7331_v50 = vmul.f32 0.25, %v10350_v34  ;;  %v7334_v57 = vmul.f32 0.25, %v10352_v12 }
 0x19f   : > { %v10327_v40 = vrot.slane %v10326_v5, 9  ;;  %v7298_v5 = vmul.f32 0.25, %v6668_v27  ;;  %v10342_v27 = vld [vmem:[#allocation134_spill] sm:$0xff]  ;;  %10347 = vst [vmem:[#allocation209_spill] sm:$0xff] %v7325_v9  ;;  %10349 = vst [vmem:[#allocation64_spill] sm:$0xff] %v7328_v48  ;;  %v10360_v7 = vld [vmem:[#allocation185_spill] sm:$0xff] }
 0x1a0   : > { %10341 = vst [vmem:[#allocation63_spill] sm:$0xff] %v7316_v13  ;;  %10351 = vst [vmem:[#allocation210_spill] sm:$0xff] %v7331_v50  ;;  %v10354_v36 = vld [vmem:[#allocation162_spill] sm:$0xff]  ;;  %v7346_v9 = vmul.f32 0.25, %v10360_v7  ;;  %v10364_v34 = vld [vmem:[#allocation188_spill] sm:$0xff] }
 0x1a1   : > { %v7278_v3 = vadd.f32 %v10327_v40, %v10325_v62  ;;  %10333 = vst [vmem:[#allocation49_spill] sm:$0xff] %v7298_v5  ;;  %v7319_v62 = vmul.f32 0.25, %v10342_v27  ;;  %v7322_v40 = vmul.f32 0.25, %v10344_v61  ;;  %10353 = vst [vmem:[#allocation52_spill] sm:$0xff] %v7334_v57  ;;  %v7337_v13 = vmul.f32 0.25, %v10354_v36  ;;  %v10356_v27 = vld [vmem:[#allocation163_spill] sm:$0xff] }
 0x1a2   : > { %v10358_v61 = vld [vmem:[#allocation165_spill] sm:$0xff]  ;;  %10361 = vst [vmem:[#allocation55_spill] sm:$0xff] %v7346_v9  ;;  %v10362_v2 = vld [vmem:[#allocation186_spill] sm:$0xff]  ;;  %v7352_v50 = vmul.f32 0.25, %v10364_v34  ;;  %v10368_v36 = vld [vmem:[#allocation191_spill] sm:$0xff] }
 0x1a3   : > { %10343 = vst [vmem:[#allocation206_spill] sm:$0xff] %v7319_v62  ;;  %10345 = vst [vmem:[#allocation51_spill] sm:$0xff] %v7322_v40  ;;  %v7340_v62 = vmul.f32 0.25, %v10356_v27  ;;  %v7343_v40 = vmul.f32 0.25, %v10358_v61  ;;  %v7349_v48 = vmul.f32 0.25, %v10362_v2  ;;  %v10366_v12 = vld [vmem:[#allocation189_spill] sm:$0xff] }
 0x1a4   : > { %10355 = vst [vmem:[#allocation28_spill] sm:$0xff] %v7337_v13  ;;  %10365 = vst [vmem:[#allocation66_spill] sm:$0xff] %v7352_v50  ;;  %v7355_v57 = vmul.f32 0.25, %v10366_v12  ;;  %v7358_v13 = vmul.f32 0.25, %v10368_v36  ;;  %v10370_v27 = vld [vmem:[#allocation215_spill] sm:$0xff]  ;;  %v10374_v7 = vld [vmem:[#allocation154_spill] sm:$0xff] }
 0x1a5   : > { %10357 = vst [vmem:[#allocation65_spill] sm:$0xff] %v7340_v62  ;;  %10359 = vst [vmem:[#allocation39_spill] sm:$0xff] %v7343_v40  ;;  %v7361_v62 = vmul.f32 0.25, %v10370_v27  ;;  %v10372_v61 = vld [vmem:[#allocation139_spill] sm:$0xff]  ;;  %v7367_v9 = vmul.f32 0.25, %v10374_v7  ;;  %v10376_v2 = vld [vmem:[#allocation166_spill] sm:$0xff] }
 0x1a6   : > { %10363 = vst [vmem:[#allocation30_spill] sm:$0xff] %v7349_v48  ;;  %10367 = vst [vmem:[#allocation40_spill] sm:$0xff] %v7355_v57  ;;  %v7364_v40 = vmul.f32 0.25, %v10372_v61  ;;  %v7370_v48 = vmul.f32 0.25, %v10376_v2  ;;  %v10378_v34 = vld [vmem:[#allocation155_spill] sm:$0xff]  ;;  %v10380_v12 = vld [vmem:[#allocation157_spill] sm:$0xff] }
 0x1a7   : > { %10369 = vst [vmem:[#allocation75_spill] sm:$0xff] %v7358_v13  ;;  %10371 = vst [vmem:[#allocation31_spill] sm:$0xff] %v7361_v62  ;;  %v7373_v50 = vmul.f32 0.25, %v10378_v34  ;;  %v7376_v57 = vmul.f32 0.25, %v10380_v12  ;;  %v10382_v36 = vld [vmem:[#allocation158_spill] sm:$0xff]  ;;  %v10384_v27 = vld [vmem:[#allocation169_spill] sm:$0xff] }
 0x1a8   : > { %10373 = vst [vmem:[#allocation87_spill] sm:$0xff] %v7364_v40  ;;  %10375 = vst [vmem:[#allocation41_spill] sm:$0xff] %v7367_v9  ;;  %v7379_v13 = vmul.f32 0.25, %v10382_v36  ;;  %v7382_v62 = vmul.f32 0.25, %v10384_v27  ;;  %v10386_v61 = vld [vmem:[#allocation164_spill] sm:$0xff]  ;;  %v10388_v7 = vld [vmem:[#allocation170_spill] sm:$0xff] }
 0x1a9   : > { %10377 = vst [vmem:[#allocation76_spill] sm:$0xff] %v7370_v48  ;;  %10379 = vst [vmem:[#allocation37_spill] sm:$0xff] %v7373_v50  ;;  %v7385_v40 = vmul.f32 0.25, %v10386_v61  ;;  %v7388_v9 = vmul.f32 0.25, %v10388_v7  ;;  %v10390_v2 = vld [vmem:[#allocation171_spill] sm:$0xff]  ;;  %v10392_v34 = vld [vmem:[#allocation172_spill] sm:$0xff] }
 0x1aa   : > { %10381 = vst [vmem:[#allocation88_spill] sm:$0xff] %v7376_v57  ;;  %10383 = vst [vmem:[#allocation47_spill] sm:$0xff] %v7379_v13  ;;  %v7391_v48 = vmul.f32 0.25, %v10390_v2  ;;  %v7394_v50 = vmul.f32 0.25, %v10392_v34  ;;  %v10394_v12 = vld [vmem:[#allocation187_spill] sm:$0xff]  ;;  %v10396_v36 = vld [vmem:[#allocation190_spill] sm:$0xff] }
 0x1ab   : > { %10385 = vst [vmem:[#allocation77_spill] sm:$0xff] %v7382_v62  ;;  %10387 = vst [vmem:[#allocation42_spill] sm:$0xff] %v7385_v40  ;;  %v7397_v57 = vmul.f32 0.25, %v10394_v12  ;;  %v7400_v13 = vmul.f32 0.25, %v10396_v36  ;;  %v10398_v27 = vld [vmem:[#allocation195_spill] sm:$0xff]  ;;  %v10402_v7 = vld [vmem:[#allocation13_spill] sm:$0xff] }
 0x1ac   : > { %10389 = vst [vmem:[#allocation89_spill] sm:$0xff] %v7388_v9  ;;  %10391 = vst [vmem:[#allocation53_spill] sm:$0xff] %v7391_v48  ;;  %v7403_v62 = vmul.f32 0.25, %v10398_v27  ;;  %v10400_v61 = vld [vmem:[#allocation3_spill] sm:$0xff]  ;;  %v7409_v9 = vmul.f32 0.25, %v10402_v7  ;;  %v10406_v34 = vld [vmem:[#allocation18_spill] sm:$0xff] }
 0x1ad   : > { %10393 = vst [vmem:[#allocation78_spill] sm:$0xff] %v7394_v50  ;;  %10395 = vst [vmem:[#allocation43_spill] sm:$0xff] %v7397_v57  ;;  %v7406_v40 = vmul.f32 0.25, %v10400_v61  ;;  %v10404_v2 = vld [vmem:[#allocation7_spill] sm:$0xff]  ;;  %v7415_v50 = vmul.f32 0.25, %v10406_v34  ;;  %v10408_v12 = vld [vmem:[#allocation5_spill] sm:$0xff] }
 0x1ae   : > { %10397 = vst [vmem:[#allocation90_spill] sm:$0xff] %v7400_v13  ;;  %10399 = vst [vmem:[#allocation54_spill] sm:$0xff] %v7403_v62  ;;  %v7412_v48 = vmul.f32 0.25, %v10404_v2  ;;  %v7418_v57 = vmul.f32 0.25, %v10408_v12  ;;  %v10410_v36 = vld [vmem:[#allocation19_spill] sm:$0xff]  ;;  %v10414_v61 = vld [vmem:[#allocation26_spill] sm:$0xff] }
 0x1af   : > { %10401 = vst [vmem:[#allocation81_spill] sm:$0xff] %v7406_v40  ;;  %10403 = vst [vmem:[#allocation44_spill] sm:$0xff] %v7409_v9  ;;  %v7421_v13 = vmul.f32 0.25, %v10410_v36  ;;  %v10412_v27 = vld [vmem:[#allocation11_spill] sm:$0xff]  ;;  %v7427_v40 = vmul.f32 0.25, %v10414_v61  ;;  %v10416_v7 = vld [vmem:[#allocation4_spill] sm:$0xff] }
 0x1b0   : > { %10405 = vst [vmem:[#allocation92_spill] sm:$0xff] %v7412_v48  ;;  %10407 = vst [vmem:[#allocation56_spill] sm:$0xff] %v7415_v50  ;;  %v7424_v62 = vmul.f32 0.25, %v10412_v27  ;;  %v7430_v9 = vmul.f32 0.25, %v10416_v7  ;;  %v10418_v2 = vld [vmem:[#allocation20_spill] sm:$0xff]  ;;  %v10420_v34 = vld [vmem:[#allocation9_spill] sm:$0xff] }
 0x1b1   : > { %10409 = vst [vmem:[#allocation84_spill] sm:$0xff] %v7418_v57  ;;  %10411 = vst [vmem:[#allocation59_spill] sm:$0xff] %v7421_v13  ;;  %v7433_v48 = vmul.f32 0.25, %v10418_v2  ;;  %v7436_v50 = vmul.f32 0.25, %v10420_v34  ;;  %v10422_v12 = vld [vmem:[#allocation29_spill] sm:$0xff]  ;;  %v10424_v36 = vld [vmem:[#allocation8_spill] sm:$0xff] }
 0x1b2   : > { %10413 = vst [vmem:[#allocation95_spill] sm:$0xff] %v7424_v62  ;;  %10415 = vst [vmem:[#allocation69_spill] sm:$0xff] %v7427_v40  ;;  %v7439_v57 = vmul.f32 0.25, %v10422_v12  ;;  %v7442_v13 = vmul.f32 0.25, %v10424_v36  ;;  %v10426_v27 = vld [vmem:[#allocation21_spill] sm:$0xff]  ;;  %v10428_v61 = vld [vmem:[#allocation15_spill] sm:$0xff] }
 0x1b3   : > { %10417 = vst [vmem:[#allocation91_spill] sm:$0xff] %v7430_v9  ;;  %10419 = vst [vmem:[#allocation62_spill] sm:$0xff] %v7433_v48  ;;  %v7445_v62 = vmul.f32 0.25, %v10426_v27  ;;  %v7448_v40 = vmul.f32 0.25, %v10428_v61  ;;  %v10430_v7 = vld [vmem:[#allocation32_spill] sm:$0xff]  ;;  %v10432_v2 = vld [vmem:[#allocation6_spill] sm:$0xff] }
 0x1b4   : > { %10421 = vst [vmem:[#allocation101_spill] sm:$0xff] %v7436_v50  ;;  %10423 = vst [vmem:[#allocation72_spill] sm:$0xff] %v7439_v57  ;;  %v7451_v9 = vmul.f32 0.25, %v10430_v7  ;;  %v7454_v48 = vmul.f32 0.25, %v10432_v2  ;;  %v10434_v34 = vld [vmem:[#allocation22_spill] sm:$0xff]  ;;  %v10438_v36 = vld [vmem:[#allocation33_spill] sm:$0xff] }
 0x1b5   : > { %10425 = vst [vmem:[#allocation93_spill] sm:$0xff] %v7442_v13  ;;  %10427 = vst [vmem:[#allocation67_spill] sm:$0xff] %v7445_v62  ;;  %v7457_v50 = vmul.f32 0.25, %v10434_v34  ;;  %v10436_v12 = vld [vmem:[#allocation14_spill] sm:$0xff]  ;;  %v7463_v13 = vmul.f32 0.25, %v10438_v36  ;;  %v10440_v27 = vld [vmem:[#allocation12_spill] sm:$0xff] }
 0x1b6   : > { %10429 = vst [vmem:[#allocation104_spill] sm:$0xff] %v7448_v40  ;;  %10431 = vst [vmem:[#allocation79_spill] sm:$0xff] %v7451_v9  ;;  %v7460_v57 = vmul.f32 0.25, %v10436_v12  ;;  %v7466_v62 = vmul.f32 0.25, %v10440_v27  ;;  %v10442_v61 = vld [vmem:[#allocation23_spill] sm:$0xff]  ;;  %v10444_v7 = vld [vmem:[#allocation16_spill] sm:$0xff] }
 0x1b7   : > { %10433 = vst [vmem:[#allocation106_spill] sm:$0xff] %v7454_v48  ;;  %10435 = vst [vmem:[#allocation68_spill] sm:$0xff] %v7457_v50  ;;  %v7469_v40 = vmul.f32 0.25, %v10442_v61  ;;  %v7472_v9 = vmul.f32 0.25, %v10444_v7  ;;  %v10446_v2 = vld [vmem:[#allocation34_spill] sm:$0xff]  ;;  %v10450_v12 = vld [vmem:[#allocation24_spill] sm:$0xff] }
 0x1b8   : > { %10437 = vst [vmem:[#allocation117_spill] sm:$0xff] %v7460_v57  ;;  %10439 = vst [vmem:[#allocation80_spill] sm:$0xff] %v7463_v13  ;;  %v7475_v48 = vmul.f32 0.25, %v10446_v2  ;;  %v10448_v34 = vld [vmem:[#allocation10_spill] sm:$0xff]  ;;  %v7481_v57 = vmul.f32 0.25, %v10450_v12  ;;  %v10452_v36 = vld [vmem:[#allocation17_spill] sm:$0xff] }
 0x1b9   : > { %10441 = vst [vmem:[#allocation107_spill] sm:$0xff] %v7466_v62  ;;  %10443 = vst [vmem:[#allocation70_spill] sm:$0xff] %v7469_v40  ;;  %v7478_v50 = vmul.f32 0.25, %v10448_v34  ;;  %v7484_v13 = vmul.f32 0.25, %v10452_v36  ;;  %v10454_v27 = vld [vmem:[#allocation35_spill] sm:$0xff]  ;;  %v7490_v61 = vmul.f32 0.25, %v6988_v35 }
 0x1ba   : > { %10445 = vst [vmem:[#allocation118_spill] sm:$0xff] %v7472_v9  ;;  %10447 = vst [vmem:[#allocation82_spill] sm:$0xff] %v7475_v48  ;;  %v7487_v62 = vmul.f32 0.25, %v10454_v27  ;;  %v10457_v7 = vld [vmem:[#allocation220_spill] sm:$0xff]  ;;  %v10459_v2 = vld [vmem:[#allocation25_spill] sm:$0xff]  ;;  %v7502_v12 = vmul.f32 0.25, %v7008_v51 }
 0x1bb   : > { %10449 = vst [vmem:[#allocation110_spill] sm:$0xff] %v7478_v50  ;;  %10451 = vst [vmem:[#allocation71_spill] sm:$0xff] %v7481_v57  ;;  %v7493_v9 = vmul.f32 0.25, %v10457_v7  ;;  %v7496_v48 = vmul.f32 0.25, %v10459_v2  ;;  %v10461_v34 = vld [vmem:[#allocation221_spill] sm:$0xff]  ;;  %v10464_v36 = vld [vmem:[#allocation36_spill] sm:$0xff] }
 0x1bc   : > { %10453 = vst [vmem:[#allocation120_spill] sm:$0xff] %v7484_v13  ;;  %10455 = vst [vmem:[#allocation83_spill] sm:$0xff] %v7487_v62  ;;  %v7499_v50 = vmul.f32 0.25, %v10461_v34  ;;  %v7505_v13 = vmul.f32 0.25, %v10464_v36  ;;  %v7508_v27 = vmul.f32 0.25, %v7018_v26  ;;  %v10466_v35 = vld [vmem:[#allocation149_spill] sm:$0xff] }
 0x1bd   : > { %10456 = vst [vmem:[#allocation116_spill] sm:$0xff] %v7490_v61  ;;  %10458 = vst [vmem:[#allocation73_spill] sm:$0xff] %v7493_v9  ;;  %v7511_v61 = vmul.f32 0.25, %v10466_v35  ;;  %v10467_v7 = vld [vmem:[#allocation27_spill] sm:$0xff]  ;;  %v7520_v34 = vmul.f32 0.25, %v7038_v49  ;;  %v10471_v51 = vld [vmem:[#allocation38_spill] sm:$0xff] }
 0x1be   : > { %10460 = vst [vmem:[#allocation127_spill] sm:$0xff] %v7496_v48  ;;  %10462 = vst [vmem:[#allocation85_spill] sm:$0xff] %v7499_v50  ;;  %v7514_v9 = vmul.f32 0.25, %v10467_v7  ;;  %v10469_v2 = vld [vmem:[#allocation167_spill] sm:$0xff]  ;;  %v7526_v36 = vmul.f32 0.25, %v7048_v44  ;;  %v10474_v26 = vld [vmem:[#allocation168_spill] sm:$0xff] }
 0x1bf   : > { %10463 = vst [vmem:[#allocation119_spill] sm:$0xff] %v7502_v12  ;;  %10465 = vst [vmem:[#allocation74_spill] sm:$0xff] %v7508_v27  ;;  %v7517_v48 = vmul.f32 0.25, %v10469_v2  ;;  %v7523_v12 = vmul.f32 0.25, %v10471_v51  ;;  %v7529_v27 = vmul.f32 0.25, %v10474_v26  ;;  %v7532_v35 = vmul.f32 0.25, %v7058_v23 }
 0x1c0   : > { %10468 = vst [vmem:[#allocation86_spill] sm:$0xff] %v7514_v9  ;;  %10470 = vst [vmem:[#allocation121_spill] sm:$0xff] %v7520_v34  ;;  %v10476_v7 = vld [vmem:[#allocation45_spill] sm:$0xff]  ;;  %v7538_v2 = vmul.f32 0.25, %v7068_v31  ;;  %v10477_v49 = vld [vmem:[#allocation175_spill] sm:$0xff]  ;;  %v7544_v51 = vmul.f32 0.25, %v7078_v37 }
 0x1c1   : > { %10472 = vst [vmem:[#allocation94_spill] sm:$0xff] %v7523_v12  ;;  %10473 = vst [vmem:[#allocation133_spill] sm:$0xff] %v7526_v36  ;;  %v7535_v9 = vmul.f32 0.25, %v10476_v7  ;;  %v7541_v34 = vmul.f32 0.25, %v10477_v49  ;;  %v10478_v44 = vld [vmem:[#allocation57_spill] sm:$0xff]  ;;  %v7550_v26 = vmul.f32 0.25, %v7088_v11 }
 0x1c2   : > { %10475 = vst [vmem:[#allocation105_spill] sm:$0xff] %v7532_v35  ;;  %v7547_v36 = vmul.f32 0.25, %v10478_v44  ;;  %v10480_v23 = vld [vmem:[#allocation181_spill] sm:$0xff]  ;;  %v7556_v7 = vmul.f32 0.25, %v7098_v38  ;;  %v7559_v31 = vmul.f32 0.25, %v7103_v52  ;;  %v7562_v49 = vmul.f32 0.25, %v7108_v10 }
 0x1c3   : > { %v7553_v35 = vmul.f32 0.25, %v10480_v23  ;;  %v7565_v37 = vmul.f32 0.25, %v7113_v0  ;;  %v7568_v44 = vmul.f32 0.25, %v7118_v47  ;;  %v7571_v11 = vmul.f32 0.25, %v7123_v46  ;;  %v10484_v47 = vld [vmem:[#allocation46_spill] sm:$0xff]  ;;  %v10554_v56 = vld [vmem:[#allocation117_spill] sm:$0xff] }
 0x1c4   : > { %10479 = vst [vmem:[#allocation122_spill] sm:$0xff] %v7547_v36  ;;  %v7574_v23 = vmul.f32 0.25, %v7128_v20  ;;  %v7577_v38 = vmul.f32 0.25, %v7133_v60  ;;  %v7580_v52 = vmul.f32 0.25, %v7138_v17  ;;  %v7583_v10 = vmul.f32 0.25, %v7143_v8  ;;  %v10487_v20 = vld [vmem:[#allocation182_spill] sm:$0xff] }
 0x1c5   : > { %10481 = vst [vmem:[#allocation96_spill] sm:$0xff] %v7568_v44  ;;  %v7586_v0 = vmul.f32 0.25, %v7148_v21  ;;  %v7589_v44 = vmul.f32 0.25, %v10484_v47  ;;  %v7592_v46 = vmul.f32 0.25, %v7158_v18  ;;  %v7598_v60 = vmul.f32 0.25, %v7168_v1  ;;  %v10556_v5 = vld [vmem:[#allocation107_spill] sm:$0xff] }
 0x1c6   : > { %10482 = vst [vmem:[#allocation108_spill] sm:$0xff] %v7574_v23  ;;  %10483 = vst [vmem:[#allocation123_spill] sm:$0xff] %v7583_v10  ;;  %v7595_v23 = vmul.f32 0.25, %v10487_v20  ;;  %v7601_v17 = vmul.f32 0.25, %v7173_v55  ;;  %v7604_v8 = vmul.f32 0.25, %v7178_v28  ;;  %v7607_v21 = vmul.f32 0.25, %v7183_v53 }
 0x1c7   : > { %10485 = vst [vmem:[#allocation97_spill] sm:$0xff] %v7589_v44  ;;  %10486 = vst [vmem:[#allocation109_spill] sm:$0xff] %v7592_v46  ;;  %v7610_v47 = vmul.f32 0.25, %v7188_v58  ;;  %v7613_v18 = vmul.f32 0.25, %v7193_v39  ;;  %v7616_v20 = vmul.f32 0.25, %v7198_v32  ;;  %v7619_v1 = vmul.f32 0.25, %v7203_v43 }
 0x1c8   : > { %10488 = vst [vmem:[#allocation142_spill] sm:$0xff] %v7595_v23  ;;  %10489 = vst [vmem:[#allocation98_spill] sm:$0xff] %v7601_v17  ;;  %v10493_v55 = vld [vmem:[#allocation58_spill] sm:$0xff]  ;;  %v7625_v28 = vmul.f32 0.25, %v7213_v15  ;;  %v7628_v53 = vmul.f32 0.25, %v7218_v63  ;;  %v7631_v58 = vmul.f32 0.25, %v7223_v16 }
 0x1c9   : > { %10490 = vst [vmem:[#allocation152_spill] sm:$0xff] %v7613_v18  ;;  %10491 = vst [vmem:[#allocation111_spill] sm:$0xff] %v7616_v20  ;;  %v7622_v17 = vmul.f32 0.25, %v10493_v55  ;;  %v10495_v39 = vld [vmem:[#allocation184_spill] sm:$0xff]  ;;  %v7637_v32 = vmul.f32 0.25, %v7233_v19  ;;  %v7640_v43 = vmul.f32 0.25, %v7238_v42 }
 0x1ca   : > { %10492 = vst [vmem:[#allocation145_spill] sm:$0xff] %v7619_v1  ;;  %10494 = vst [vmem:[#allocation99_spill] sm:$0xff] %v7628_v53  ;;  %v7634_v18 = vmul.f32 0.25, %v10495_v39  ;;  %v7643_v55 = vmul.f32 0.25, %v7243_v4  ;;  %v7646_v15 = vmul.f32 0.25, %v7248_v41  ;;  %v10499_v63 = vld [vmem:[#allocation48_spill] sm:$0xff] }
 0x1cb   : > { %10496 = vst [vmem:[#allocation112_spill] sm:$0xff] %v7637_v32  ;;  %10497 = vst [vmem:[#allocation146_spill] sm:$0xff] %v7640_v43  ;;  %v7649_v53 = vmul.f32 0.25, %v10499_v63  ;;  %v7652_v16 = vmul.f32 0.25, %v7258_v33  ;;  %v7655_v39 = vmul.f32 0.25, %v7263_v24  ;;  %v10500_v19 = vld [vmem:[#allocation2_spill] sm:$0xff] }
 0x1cc   : > { %10498 = vst [vmem:[#allocation100_spill] sm:$0xff] %v7643_v55  ;;  %v7658_v32 = vsub.s32 0, %v10500_v19  ;;  %v7661_v42 = vmul.f32 0.25, %v7268_v45  ;;  %v7664_v4 = vmul.f32 0.25, %v7273_v22  ;;  %v7667_v41 = vmul.f32 0.25, %v7278_v3  ;;  %v10552_v33 = vld [vmem:[#allocation106_spill] sm:$0xff] }
 0x1cd   : > { %v7670_v63 = vmul.f32 0.25, %v7283_v25  ;;  %v10559_v24 = vld [vmem:[#allocation110_spill] sm:$0xff]  ;;  %v10560_v45 = vld [vmem:[#allocation120_spill] sm:$0xff]  ;;  %v10564_v19 = vld [vmem:[#allocation119_spill] sm:$0xff] }
 0x1ce   : > { %10501 = vst [vmem:[#allocation113_spill] sm:$0xff] %v7664_v4  ;;  %10502 = vst [vmem:[#allocation147_spill] sm:$0xff] %v7667_v41  ;;  %v10565_v22 = vld [vmem:[#allocation74_spill] sm:$0xff]  ;;  %v10567_v14 = vld [vmem:[#allocation121_spill] sm:$0xff]  ;;  %v10576_v46 = vrot.slane %v7286_v30, %v7658_v32 }
 0x1cf   : > { %10503 = vst [vmem:[#allocation102_spill] sm:$0xff] %v7670_v63  ;;  %v10566_v54 = vld [vmem:[#allocation86_spill] sm:$0xff]  ;;  %v10568_v6 = vld [vmem:[#allocation133_spill] sm:$0xff]  ;;  %v10570_v50 = vld [vmem:[#allocation96_spill] sm:$0xff] }
 0x1d0   : > { %v10569_v40 = vld [vmem:[#allocation105_spill] sm:$0xff]  ;;  %v10571_v59 = vld [vmem:[#allocation108_spill] sm:$0xff]  ;;  %v10572_v29 = vld [vmem:[#allocation98_spill] sm:$0xff] }
 0x1d1   : > { %v10574_v57 = vld [vmem:[#allocation99_spill] sm:$0xff]  ;;  %v10577_v55 = vld [vmem:[#allocation196_spill] sm:$0xff]  ;;  %v10579_v1 = vld [vmem:[#allocation50_spill] sm:$0xff] }
 0x1d2   : > { %v10578_v3 = vrot.slane %v10577_v55, %v7658_v32  ;;  %v10580_v20 = vrot.slane %v10579_v1, %v7658_v32  ;;  %v10581_v43 = vld [vmem:[#allocation205_spill] sm:$0xff]  ;;  %v10583_v10 = vld [vmem:[#allocation52_spill] sm:$0xff]  ;;  %v10587_v23 = vld [vmem:[#allocation75_spill] sm:$0xff] }
 0x1d3   : > { %v10582_v12 = vrot.slane %v10581_v43, %v7658_v32  ;;  %v10584_v41 = vrot.slane %v10583_v10, %v7658_v32  ;;  %v10585_v36 = vld [vmem:[#allocation28_spill] sm:$0xff]  ;;  %v10588_v55 = vrot.slane %v10587_v23, %v7658_v32  ;;  %v10595_v44 = vld [vmem:[#allocation65_spill] sm:$0xff] }
 0x1d4   : > { %v3554_v25 = vsel %vm3553_vm0, %v10578_v3, %v10576_v46  ;;  %v10586_v63 = vrot.slane %v10585_v36, %v7658_v32  ;;  %v10589_v46 = vld [vmem:[#allocation31_spill] sm:$0xff]  ;;  %v10591_v62 = vld [vmem:[#allocation60_spill] sm:$0xff] }
 0x1d5   : > { %v3567_v4 = vsel %vm3553_vm0, %v10582_v12, %v10580_v20  ;;  %v10590_v3 = vrot.slane %v10589_v46, %v7658_v32  ;;  %v10592_v43 = vrot.slane %v10591_v62, %v7658_v32  ;;  %v10593_v20 = vld [vmem:[#allocation63_spill] sm:$0xff] }
 0x1d6   : > { %v3574_v30 = vsel %vm3553_vm0, %v10586_v63, %v10584_v41  ;;  %v10594_v10 = vrot.slane %v10593_v20, %v7658_v32  ;;  %v10596_v41 = vrot.slane %v10595_v44, %v7658_v32  ;;  %v10597_v63 = vld [vmem:[#allocation87_spill] sm:$0xff] }
 0x1d7   : > { %v3581_v1 = vsel %vm3553_vm0, %v10590_v3, %v10588_v55  ;;  %v3556_v12 = vsel %vm3555_vm1, %v10592_v43, %v3554_v25  ;;  %v10598_v46 = vrot.slane %v10597_v63, %v7658_v32  ;;  %v10599_v3 = vld [vmem:[#allocation197_spill] sm:$0xff]  ;;  %v10601_v43 = vld [vmem:[#allocation206_spill] sm:$0xff] }
 0x1d8   : > { %v3568_v36 = vsel %vm3555_vm1, %v10594_v10, %v3567_v4  ;;  %v3575_v23 = vsel %vm3555_vm1, %v10596_v41, %v3574_v30  ;;  %v10600_v62 = vrot.slane %v10599_v3, %v7658_v32  ;;  %v10602_v20 = vrot.slane %v10601_v43, %v7658_v32  ;;  %v10603_v10 = vld [vmem:[#allocation39_spill] sm:$0xff]  ;;  %v10605_v41 = vld [vmem:[#allocation41_spill] sm:$0xff] }
 0x1d9   : > { %v3582_v55 = vsel %vm3555_vm1, %v10598_v46, %v3581_v1  ;;  %v10604_v44 = vrot.slane %v10603_v10, %v7658_v32  ;;  %v10606_v63 = vrot.slane %v10605_v41, %v7658_v32  ;;  %v10607_v46 = vld [vmem:[#allocation49_spill] sm:$0xff] }
 0x1da   : > { %v3558_v25 = vsel %vm3557_vm2, %v10600_v62, %v3556_v12  ;;  %v3569_v4 = vsel %vm3557_vm2, %v10602_v20, %v3568_v36  ;;  %v10608_v3 = vrot.slane %v10607_v46, %v7658_v32  ;;  %v10609_v62 = vld [vmem:[#allocation51_spill] sm:$0xff] }
 0x1db   : > { %v3576_v30 = vsel %vm3557_vm2, %v10604_v44, %v3575_v23  ;;  %v3583_v1 = vsel %vm3557_vm2, %v10606_v63, %v3582_v55  ;;  %v10610_v43 = vrot.slane %v10609_v62, %v7658_v32  ;;  %v10611_v20 = vld [vmem:[#allocation55_spill] sm:$0xff]  ;;  %v10613_v44 = vld [vmem:[#allocation76_spill] sm:$0xff]  ;;  %v10615_v63 = vld [vmem:[#allocation202_spill] sm:$0xff] }
 0x1dc   : > { %v3560_v12 = vsel %vm3559_vm3, %v10608_v3, %v3558_v25  ;;  %v10612_v10 = vrot.slane %v10611_v20, %v7658_v32  ;;  %v10614_v41 = vrot.slane %v10613_v44, %v7658_v32  ;;  %v10616_v46 = vrot.slane %v10615_v63, %v7658_v32  ;;  %v10617_v3 = vld [vmem:[#allocation209_spill] sm:$0xff] }
 0x1dd   : > { %v3570_v36 = vsel %vm3559_vm3, %v10610_v43, %v3569_v4  ;;  %v10618_v62 = vrot.slane %v10617_v3, %v7658_v32  ;;  %v10619_v43 = vld [vmem:[#allocation30_spill] sm:$0xff] }
 0x1de   : > { %v3577_v23 = vsel %vm3559_vm3, %v10612_v10, %v3576_v30  ;;  %v3584_v55 = vsel %vm3559_vm3, %v10614_v41, %v3583_v1  ;;  %v3562_v25 = vsel %vm3561_vm4, %v10616_v46, %v3560_v12  ;;  %v10620_v20 = vrot.slane %v10619_v43, %v7658_v32  ;;  %v10621_v10 = vld [vmem:[#allocation37_spill] sm:$0xff]  ;;  %v10625_v46 = vld [vmem:[#allocation64_spill] sm:$0xff] }
 0x1df   : > { %v3571_v4 = vsel %vm3561_vm4, %v10618_v62, %v3570_v36  ;;  %v10622_v44 = vrot.slane %v10621_v10, %v7658_v32  ;;  %v10623_v41 = vld [vmem:[#allocation61_spill] sm:$0xff]  ;;  %v10626_v3 = vrot.slane %v10625_v46, %v7658_v32  ;;  %v10627_v62 = vld [vmem:[#allocation66_spill] sm:$0xff] }
 0x1e0   : > { %v3578_v30 = vsel %vm3561_vm4, %v10620_v20, %v3577_v23  ;;  %v10624_v63 = vrot.slane %v10623_v41, %v7658_v32  ;;  %v10628_v43 = vrot.slane %v10627_v62, %v7658_v32  ;;  %v10629_v20 = vld [vmem:[#allocation88_spill] sm:$0xff] }
 0x1e1   : > { %v3585_v1 = vsel %vm3561_vm4, %v10622_v44, %v3584_v55  ;;  %v3572_v36 = vsel %vm3563_vm5, %v10626_v3, %v3571_v4  ;;  %v10630_v10 = vrot.slane %v10629_v20, %v7658_v32  ;;  %v10631_v44 = vld [vmem:[#allocation203_spill] sm:$0xff]  ;;  %v10636_v3 = vld [vmem:[#allocation40_spill] sm:$0xff] }
 0x1e2   : > { %v3564_v12 = vsel %vm3563_vm5, %v10624_v63, %v3562_v25  ;;  %v3579_v23 = vsel %vm3563_vm5, %v10628_v43, %v3578_v30  ;;  %v10632_v25 = vrot.slane %v10631_v44, %v7658_v32  ;;  %v10633_v63 = vld [vmem:[#allocation210_spill] sm:$0xff]  ;;  %v10637_v30 = vrot.slane %v10636_v3, %v7658_v32  ;;  %v10648_v3 = vld [vmem:[#allocation44_spill] sm:$0xff] }
 0x1e3   : > { %v3586_v55 = vsel %vm3563_vm5, %v10630_v10, %v3585_v1  ;;  %v10634_v4 = vrot.slane %v10633_v63, %v7658_v32  ;;  %v10639_v1 = vld [vmem:[#allocation47_spill] sm:$0xff]  ;;  %v10644_v44 = vld [vmem:[#allocation42_spill] sm:$0xff]  ;;  %v10646_v63 = vld [vmem:[#allocation81_spill] sm:$0xff] }
 0x1e4   : > { %v8041_v41 = vsel %vm3565_vm6, %v10632_v25, %v3564_v12  ;;  %v8053_v62 = vsel %vm3565_vm6, %v10637_v30, %v3579_v23  ;;  %v10640_v43 = vrot.slane %v10639_v1, %v7658_v32  ;;  %v10642_v12 = vld [vmem:[#allocation77_spill] sm:$0xff]  ;;  %v10645_v25 = vrot.slane %v10644_v44, %v7658_v32  ;;  %v10650_v1 = vld [vmem:[#allocation91_spill] sm:$0xff] }
 0x1e5   : > { %v8047_v46 = vsel %vm3565_vm6, %v10634_v4, %v3572_v36  ;;  %10638 = vst [vmem:[#allocation148_spill] sm:$0xff] %v8053_v62  ;;  %v10643_v10 = vrot.slane %v10642_v12, %v7658_v32  ;;  %v10647_v4 = vrot.slane %v10646_v63, %v7658_v32  ;;  %v10649_v23 = vrot.slane %v10648_v3, %v7658_v32  ;;  %v10657_v62 = vld [vmem:[#allocation89_spill] sm:$0xff] }
 0x1e6   : > { %10635 = vst [vmem:[#allocation114_spill] sm:$0xff] %v8047_v46  ;;  %v8059_v20 = vsel %vm3565_vm6, %v10640_v43, %v3586_v55  ;;  %v10651_v55 = vrot.slane %v10650_v1, %v7658_v32  ;;  %v10652_v43 = vld [vmem:[#allocation62_spill] sm:$0xff]  ;;  %v10654_v44 = vrot.slane %v10552_v33, %v7658_v32  ;;  %v10658_v3 = vrot.slane %v10657_v62, %v7658_v32  ;;  %v10661_v46 = vld [vmem:[#allocation101_spill] sm:$0xff] }
 0x1e7   : > { %10641 = vst [vmem:[#allocation103_spill] sm:$0xff] %v8059_v20  ;;  %v3588_v36 = vsel %vm3553_vm0, %v10645_v25, %v10643_v10  ;;  %v3595_v30 = vsel %vm3553_vm0, %v10649_v23, %v10647_v4  ;;  %v10653_v20 = vrot.slane %v10652_v43, %v7658_v32  ;;  %v10655_v10 = vld [vmem:[#allocation68_spill] sm:$0xff]  ;;  %v10665_v62 = vld [vmem:[#allocation53_spill] sm:$0xff]  ;;  %3689 = vst.msk [vmem:[%s159_s29] sm:$0xff] %vm3688_vm7, %v8041_v41 }
 0x1e8   : > { %v10656_v25 = vrot.slane %v10655_v10, %v7658_v32  ;;  %v3589_v4 = vsel %vm3555_vm1, %v10658_v3, %v3588_v36  ;;  %v10659_v23 = vld [vmem:[#allocation92_spill] sm:$0xff]  ;;  %v10666_v36 = vrot.slane %v10665_v62, %v7658_v32 }
 0x1e9   : > { %v3602_v12 = vsel %vm3553_vm0, %v10653_v20, %v10651_v55  ;;  %v10660_v1 = vrot.slane %v10659_v23, %v7658_v32  ;;  %v10662_v20 = vrot.slane %v10661_v46, %v7658_v32  ;;  %v10663_v55 = vrot.slane %v10554_v56, %v7658_v32  ;;  %v10667_v10 = vld [vmem:[#allocation56_spill] sm:$0xff] }
 0x1ea   : > { %v3609_v63 = vsel %vm3553_vm0, %v10656_v25, %v10654_v44  ;;  %v10668_v46 = vrot.slane %v10667_v10, %v7658_v32  ;;  %v10669_v56 = vld [vmem:[#allocation72_spill] sm:$0xff]  ;;  %v10677_v10 = vld [vmem:[#allocation93_spill] sm:$0xff] }
 0x1eb   : > { %v3596_v43 = vsel %vm3555_vm1, %v10660_v1, %v3595_v30  ;;  %v3603_v33 = vsel %vm3555_vm1, %v10662_v20, %v3602_v12  ;;  %v3610_v44 = vsel %vm3555_vm1, %v10663_v55, %v3609_v63  ;;  %v3590_v30 = vsel %vm3557_vm2, %v10666_v36, %v3589_v4  ;;  %v10671_v3 = vld [vmem:[#allocation80_spill] sm:$0xff]  ;;  %v10673_v20 = vld [vmem:[#allocation78_spill] sm:$0xff] }
 0x1ec   : > { %v3597_v12 = vsel %vm3557_vm2, %v10668_v46, %v3596_v43  ;;  %v10670_v25 = vrot.slane %v10669_v56, %v7658_v32  ;;  %v10672_v23 = vrot.slane %v10671_v3, %v7658_v32  ;;  %v10674_v4 = vrot.slane %v10673_v20, %v7658_v32  ;;  %v10675_v62 = vld [vmem:[#allocation84_spill] sm:$0xff] }
 0x1ed   : > { %v10676_v36 = vrot.slane %v10675_v62, %v7658_v32  ;;  %v10678_v46 = vrot.slane %v10677_v10, %v7658_v32  ;;  %v10679_v56 = vrot.slane %v10556_v5, %v7658_v32  ;;  %v10688_v10 = vld [vmem:[#allocation90_spill] sm:$0xff] }
 0x1ee   : > { %v3604_v63 = vsel %vm3557_vm2, %v10670_v25, %v3603_v33  ;;  %v3611_v1 = vsel %vm3557_vm2, %v10672_v23, %v3610_v44  ;;  %v3591_v55 = vsel %vm3559_vm3, %v10674_v4, %v3590_v30  ;;  %v10680_v25 = vld [vmem:[#allocation43_spill] sm:$0xff] }
 0x1ef   : > { %v3598_v43 = vsel %vm3559_vm3, %v10676_v36, %v3597_v12  ;;  %v3605_v33 = vsel %vm3559_vm3, %v10678_v46, %v3604_v63  ;;  %v3612_v44 = vsel %vm3559_vm3, %v10679_v56, %v3611_v1  ;;  %v10681_v3 = vrot.slane %v10680_v25, %v7658_v32  ;;  %v10682_v23 = vld [vmem:[#allocation59_spill] sm:$0xff]  ;;  %v10686_v36 = vld [vmem:[#allocation70_spill] sm:$0xff] }
 0x1f0   : > { %v10683_v20 = vrot.slane %v10682_v23, %v7658_v32  ;;  %v10684_v4 = vld [vmem:[#allocation67_spill] sm:$0xff]  ;;  %v10687_v5 = vrot.slane %v10686_v36, %v7658_v32  ;;  %v10689_v46 = vrot.slane %v10688_v10, %v7658_v32 }
 0x1f1   : > { %v3592_v30 = vsel %vm3561_vm4, %v10681_v3, %v3591_v55  ;;  %v10685_v62 = vrot.slane %v10684_v4, %v7658_v32  ;;  %v10690_v56 = vld [vmem:[#allocation95_spill] sm:$0xff]  ;;  %v10692_v3 = vld [vmem:[#allocation104_spill] sm:$0xff] }
 0x1f2   : > { %v3599_v12 = vsel %vm3561_vm4, %v10683_v20, %v3598_v43  ;;  %v3613_v1 = vsel %vm3561_vm4, %v10687_v5, %v3612_v44  ;;  %v3593_v55 = vsel %vm3563_vm5, %v10689_v46, %v3592_v30  ;;  %v10691_v25 = vrot.slane %v10690_v56, %v7658_v32  ;;  %v10694_v20 = vld [vmem:[#allocation118_spill] sm:$0xff]  ;;  %v10700_v10 = vld [vmem:[#allocation79_spill] sm:$0xff] }
 0x1f3   : > { %v3606_v63 = vsel %vm3561_vm4, %v10685_v62, %v3605_v33  ;;  %v10693_v23 = vrot.slane %v10692_v3, %v7658_v32  ;;  %v10695_v4 = vrot.slane %v10694_v20, %v7658_v32  ;;  %v10696_v30 = vld [vmem:[#allocation54_spill] sm:$0xff]  ;;  %v10704_v3 = vrot.slane %v10559_v24, %v7658_v32 }
 0x1f4   : > { %v3600_v43 = vsel %vm3563_vm5, %v10691_v25, %v3599_v12  ;;  %v10697_v62 = vrot.slane %v10696_v30, %v7658_v32  ;;  %v10698_v12 = vld [vmem:[#allocation69_spill] sm:$0xff]  ;;  %v10702_v56 = vld [vmem:[#allocation82_spill] sm:$0xff] }
 0x1f5   : > { %v3607_v33 = vsel %vm3563_vm5, %v10693_v23, %v3606_v63  ;;  %v3614_v44 = vsel %vm3563_vm5, %v10695_v4, %v3613_v1  ;;  %v10699_v5 = vrot.slane %v10698_v12, %v7658_v32  ;;  %v10701_v1 = vrot.slane %v10700_v10, %v7658_v32  ;;  %v10705_v23 = vld [vmem:[#allocation71_spill] sm:$0xff] }
 0x1f6   : > { %v8185_v36 = vsel %vm3565_vm6, %v10697_v62, %v3593_v55  ;;  %v10703_v25 = vrot.slane %v10702_v56, %v7658_v32  ;;  %v10707_v4 = vrot.slane %v10564_v19, %v7658_v32  ;;  %v10710_v62 = vrot.slane %v7529_v27, %v7658_v32 }
 0x1f7   : > { %v8191_v63 = vsel %vm3565_vm6, %v10699_v5, %v3600_v43  ;;  %v8197_v46 = vsel %vm3565_vm6, %v10701_v1, %v3607_v33  ;;  %v10706_v43 = vrot.slane %v10705_v23, %v7658_v32  ;;  %v10708_v33 = vrot.slane %v7505_v13, %v7658_v32  ;;  %3693 = vst.msk [vmem:[%s159_s29 + $0x20] sm:$0xff] %vm3688_vm7, %v8185_v36 }
 0x1f8   : > { %v8203_v55 = vsel %vm3565_vm6, %v10703_v25, %v3614_v44  ;;  %v10709_v44 = vrot.slane %v10568_v6, %v7658_v32  ;;  %v10711_v12 = vrot.slane %v7550_v26, %v7658_v32  ;;  %v10712_v5 = vrot.slane %v7553_v35, %v7658_v32  ;;  %v10717_v25 = vld [vmem:[#allocation83_spill] sm:$0xff]  ;;  %3694 = vst.msk [vmem:[%s159_s29 + $0x28] sm:$0xff] %vm3688_vm7, %v8191_v63 }
 0x1f9   : > { %v3616_v20 = vsel %vm3553_vm0, %v10706_v43, %v10704_v3  ;;  %v3623_v30 = vsel %vm3553_vm0, %v10708_v33, %v10707_v4  ;;  %v10713_v13 = vrot.slane %v10560_v45, %v7658_v32  ;;  %v10714_v6 = vrot.slane %v10565_v22, %v7658_v32  ;;  %v10722_v4 = vld [vmem:[#allocation116_spill] sm:$0xff]  ;;  %3695 = vst.msk [vmem:[%s159_s29 + $0x30] sm:$0xff] %vm3688_vm7, %v8197_v46 }
 0x1fa   : > { %v3630_v24 = vsel %vm3553_vm0, %v10710_v62, %v10709_v44  ;;  %v3637_v19 = vsel %vm3553_vm0, %v10712_v5, %v10711_v12  ;;  %v10715_v1 = vrot.slane %v10569_v40, %v7658_v32  ;;  %v10716_v35 = vrot.slane %v7556_v7, %v7658_v32  ;;  %v10727_v12 = vld [vmem:[#allocation73_spill] sm:$0xff]  ;;  %3696 = vst.msk [vmem:[%s159_s29 + $0x38] sm:$0xff] %vm3688_vm7, %v8203_v55 }
 0x1fb   : > { %v3617_v10 = vsel %vm3555_vm1, %v10713_v13, %v3616_v20  ;;  %v3624_v27 = vsel %vm3555_vm1, %v10714_v6, %v3623_v30  ;;  %v10718_v45 = vrot.slane %v10717_v25, %v7658_v32  ;;  %v10719_v22 = vrot.slane %v7511_v61, %v7658_v32 }
 0x1fc   : > { %v3631_v26 = vsel %vm3555_vm1, %v10715_v1, %v3630_v24  ;;  %v3638_v56 = vsel %vm3555_vm1, %v10716_v35, %v3637_v19  ;;  %v10720_v40 = vrot.slane %v7535_v9, %v7658_v32  ;;  %v10721_v7 = vrot.slane %v7559_v31, %v7658_v32 }
 0x1fd   : > { %v3618_v3 = vsel %vm3557_vm2, %v10718_v45, %v3617_v10  ;;  %v3625_v23 = vsel %vm3557_vm2, %v10719_v22, %v3624_v27  ;;  %v10723_v33 = vrot.slane %v10722_v4, %v7658_v32  ;;  %v10724_v61 = vrot.slane %v10566_v54, %v7658_v32  ;;  %v10732_v27 = vld [vmem:[#allocation127_spill] sm:$0xff]  ;;  %v10737_v45 = vld [vmem:[#allocation85_spill] sm:$0xff] }
 0x1fe   : > { %v3632_v43 = vsel %vm3557_vm2, %v10720_v40, %v3631_v26  ;;  %v3639_v20 = vsel %vm3557_vm2, %v10721_v7, %v3638_v56  ;;  %v10725_v9 = vrot.slane %v7538_v2, %v7658_v32  ;;  %v10726_v31 = vrot.slane %v7562_v49, %v7658_v32 }
 0x1ff   : > { %v3619_v30 = vsel %vm3559_vm3, %v10723_v33, %v3618_v3  ;;  %v3626_v44 = vsel %vm3559_vm3, %v10724_v61, %v3625_v23  ;;  %v10728_v5 = vrot.slane %v10727_v12, %v7658_v32  ;;  %v10729_v54 = vrot.slane %v7517_v48, %v7658_v32  ;;  %v10739_v23 = vld [vmem:[#allocation94_spill] sm:$0xff] }
 0x200   : > { %v3633_v62 = vsel %vm3559_vm3, %v10725_v9, %v3632_v43  ;;  %v3640_v24 = vsel %vm3559_vm3, %v10726_v31, %v3639_v20  ;;  %v10730_v2 = vrot.slane %v7541_v34, %v7658_v32  ;;  %v10731_v49 = vrot.slane %v7565_v37, %v7658_v32  ;;  %v10741_v43 = vld [vmem:[#allocation122_spill] sm:$0xff] }
 0x201   : > { %v3620_v19 = vsel %vm3561_vm4, %v10728_v5, %v3619_v30  ;;  %v3627_v13 = vsel %vm3561_vm4, %v10729_v54, %v3626_v44  ;;  %v10733_v1 = vrot.slane %v10732_v27, %v7658_v32  ;;  %v10734_v48 = vrot.slane %v10567_v14, %v7658_v32 }
 0x202   : > { %v3634_v10 = vsel %vm3561_vm4, %v10730_v2, %v3633_v62  ;;  %v3641_v6 = vsel %vm3561_vm4, %v10731_v49, %v3640_v24  ;;  %v10735_v34 = vrot.slane %v7544_v51, %v7658_v32  ;;  %v10736_v37 = vrot.slane %v10570_v50, %v7658_v32 }
 0x203   : > { %v3621_v26 = vsel %vm3563_vm5, %v10733_v1, %v3620_v19  ;;  %v3628_v35 = vsel %vm3563_vm5, %v10734_v48, %v3627_v13  ;;  %v10738_v3 = vrot.slane %v10737_v45, %v7658_v32  ;;  %v10740_v14 = vrot.slane %v10739_v23, %v7658_v32  ;;  %v10756_v19 = vld [vmem:[#allocation123_spill] sm:$0xff]  ;;  %v10765_v48 = vld [vmem:[#allocation97_spill] sm:$0xff] }
 0x204   : > { %v3635_v56 = vsel %vm3563_vm5, %v10735_v34, %v3634_v10  ;;  %v3642_v25 = vsel %vm3563_vm5, %v10736_v37, %v3641_v6  ;;  %v10742_v51 = vrot.slane %v10741_v43, %v7658_v32  ;;  %v10743_v50 = vrot.slane %v7571_v11, %v7658_v32  ;;  %v10767_v34 = vld [vmem:[#allocation152_spill] sm:$0xff]  ;;  %v10771_v45 = vld [vmem:[#allocation113_spill] sm:$0xff] }
 0x205   : > { %v3622_v22 = vsel %vm3565_vm6, %v10738_v3, %v3621_v26  ;;  %v3629_v40 = vsel %vm3565_vm6, %v10740_v14, %v3628_v35  ;;  %v10744_v4 = vrot.slane %v10571_v59, %v7658_v32  ;;  %v10745_v33 = vrot.slane %v7577_v38, %v7658_v32  ;;  %v10769_v37 = vld [vmem:[#allocation112_spill] sm:$0xff]  ;;  %v10773_v23 = vld [vmem:[#allocation109_spill] sm:$0xff] }
 0x206   : > { %v3636_v7 = vsel %vm3565_vm6, %v10742_v51, %v3635_v56  ;;  %v3643_v20 = vsel %vm3565_vm6, %v10743_v50, %v3642_v25  ;;  %v10746_v61 = vrot.slane %v7598_v60, %v7658_v32  ;;  %v10747_v44 = vrot.slane %v10572_v29, %v7658_v32  ;;  %v10775_v51 = vld [vmem:[#allocation111_spill] sm:$0xff]  ;;  %3697 = vst.msk [vmem:[%s159_s29 + $0x40] sm:$0xff] %vm3688_vm7, %v3622_v22 }
 0x207   : > { %v3644_v30 = vsel %vm3553_vm0, %v10745_v33, %v10744_v4  ;;  %v10748_v11 = vrot.slane %v7622_v17, %v7658_v32  ;;  %v10749_v62 = vrot.slane %v7625_v28, %v7658_v32  ;;  %v10750_v38 = vrot.slane %v7646_v15, %v7658_v32  ;;  %v10777_v33 = vld [vmem:[#allocation146_spill] sm:$0xff]  ;;  %3698 = vst.msk [vmem:[%s159_s29 + $0x48] sm:$0xff] %vm3688_vm7, %v3629_v40 }
 0x208   : > { %v3651_v9 = vsel %vm3553_vm0, %v10747_v44, %v10746_v61  ;;  %v10751_v31 = vrot.slane %v7649_v53, %v7658_v32  ;;  %v10752_v29 = vrot.slane %v7580_v52, %v7658_v32  ;;  %v10753_v17 = vrot.slane %v7604_v8, %v7658_v32  ;;  %v10779_v44 = vld [vmem:[#allocation147_spill] sm:$0xff]  ;;  %3699 = vst.msk [vmem:[%s159_s29 + $0x50] sm:$0xff] %vm3688_vm7, %v3636_v7 }
 0x209   : > { %v3658_v59 = vsel %vm3553_vm0, %v10749_v62, %v10748_v11  ;;  %v10754_v12 = vrot.slane %v10574_v57, %v7658_v32  ;;  %v10755_v53 = vrot.slane %v7652_v16, %v7658_v32  ;;  %v10757_v52 = vrot.slane %v10756_v19, %v7658_v32  ;;  %v10781_v62 = vld [vmem:[#allocation142_spill] sm:$0xff]  ;;  %v10790_v19 = vld [vmem:[#allocation148_spill] sm:$0xff]  ;;  %3700 = vst.msk [vmem:[%s159_s29 + $0x58] sm:$0xff] %vm3688_vm7, %v3643_v20 }
 0x20a   : > { %v3665_v60 = vsel %vm3553_vm0, %v10751_v31, %v10750_v38  ;;  %v3645_v24 = vsel %vm3555_vm1, %v10752_v29, %v3644_v30  ;;  %v3652_v28 = vsel %vm3555_vm1, %v10753_v17, %v3651_v9  ;;  %v10758_v8 = vrot.slane %v7607_v21, %v7658_v32  ;;  %v10783_v31 = vld [vmem:[#allocation145_spill] sm:$0xff]  ;;  %3691 = vst.msk [vmem:[%s159_s29 + $0x10] sm:$0xff] %vm3688_vm7, %v10790_v19 }
 0x20b   : > { %v3659_v15 = vsel %vm3555_vm1, %v10754_v12, %v3658_v59  ;;  %v3666_v5 = vsel %vm3555_vm1, %v10755_v53, %v3665_v60  ;;  %v3646_v54 = vsel %vm3557_vm2, %v10757_v52, %v3645_v24  ;;  %v10759_v57 = vrot.slane %v7631_v58, %v7658_v32  ;;  %v10785_v24 = vld [vmem:[#allocation100_spill] sm:$0xff]  ;;  %v10787_v12 = vld [vmem:[#allocation102_spill] sm:$0xff]  ;;  %v10791_v52 = vld [vmem:[#allocation103_spill] sm:$0xff] }
 0x20c   : > { %v3653_v13 = vsel %vm3557_vm2, %v10758_v8, %v3652_v28  ;;  %v10760_v16 = vrot.slane %v7655_v39, %v7658_v32  ;;  %v10761_v49 = vrot.slane %v7586_v0, %v7658_v32  ;;  %v10762_v21 = vrot.slane %v7610_v47, %v7658_v32  ;;  %3692 = vst.msk [vmem:[%s159_s29 + $0x18] sm:$0xff] %vm3688_vm7, %v10791_v52 }
 0x20d   : > { %v3660_v2 = vsel %vm3557_vm2, %v10759_v57, %v3659_v15  ;;  %v10763_v58 = vrot.slane %v7634_v18, %v7658_v32  ;;  %v10764_v39 = vrot.slane %v7661_v42, %v7658_v32  ;;  %v10766_v0 = vrot.slane %v10765_v48, %v7658_v32 }
 0x20e   : > { %v3667_v10 = vsel %vm3557_vm2, %v10760_v16, %v3666_v5  ;;  %v3647_v6 = vsel %vm3559_vm3, %v10761_v49, %v3646_v54  ;;  %v3654_v27 = vsel %vm3559_vm3, %v10762_v21, %v3653_v13  ;;  %v10768_v47 = vrot.slane %v10767_v34, %v7658_v32  ;;  %v10789_v5 = vld [vmem:[#allocation114_spill] sm:$0xff] }
 0x20f   : > { %v3661_v1 = vsel %vm3559_vm3, %v10763_v58, %v3660_v2  ;;  %v3668_v26 = vsel %vm3559_vm3, %v10764_v39, %v3667_v10  ;;  %v3648_v35 = vsel %vm3561_vm4, %v10766_v0, %v3647_v6  ;;  %v10770_v18 = vrot.slane %v10769_v37, %v7658_v32  ;;  %3690 = vst.msk [vmem:[%s159_s29 + $0x8] sm:$0xff] %vm3688_vm7, %v10789_v5 }
 0x210   : > { %v3655_v56 = vsel %vm3561_vm4, %v10768_v47, %v3654_v27  ;;  %v10772_v42 = vrot.slane %v10771_v45, %v7658_v32  ;;  %v10774_v14 = vrot.slane %v10773_v23, %v7658_v32  ;;  %v10776_v50 = vrot.slane %v10775_v51, %v7658_v32 }
 0x211   : > { %v3662_v25 = vsel %vm3561_vm4, %v10770_v18, %v3661_v1  ;;  %v10778_v30 = vrot.slane %v10777_v33, %v7658_v32  ;;  %v10780_v9 = vrot.slane %v10779_v44, %v7658_v32  ;;  %v10782_v59 = vrot.slane %v10781_v62, %v7658_v32 }
 0x212   : > { %v3669_v3 = vsel %vm3561_vm4, %v10772_v42, %v3668_v26  ;;  %v3649_v43 = vsel %vm3563_vm5, %v10774_v14, %v3648_v35  ;;  %v3656_v4 = vsel %vm3563_vm5, %v10776_v50, %v3655_v56  ;;  %v10784_v60 = vrot.slane %v10783_v31, %v7658_v32 }
 0x213   : > { %v3663_v61 = vsel %vm3563_vm5, %v10778_v30, %v3662_v25  ;;  %v3670_v11 = vsel %vm3563_vm5, %v10780_v9, %v3669_v3  ;;  %v3650_v38 = vsel %vm3565_vm6, %v10782_v59, %v3649_v43  ;;  %v10786_v17 = vrot.slane %v10785_v24, %v7658_v32 }
 0x214   : > { %v3657_v29 = vsel %vm3565_vm6, %v10784_v60, %v3656_v4  ;;  %v10788_v15 = vrot.slane %v10787_v12, %v7658_v32  ;;  %3701 = vst.msk [vmem:[%s159_s29 + $0x60] sm:$0xff] %vm3688_vm7, %v3650_v38 }
 0x215   : > { %v3664_v28 = vsel %vm3565_vm6, %v10786_v17, %v3663_v61  ;;  %3702 = vst.msk [vmem:[%s159_s29 + $0x68] sm:$0xff] %vm3688_vm7, %v3657_v29 }
 0x216   : > { %v3671_v53 = vsel %vm3565_vm6, %v10788_v15, %v3670_v11  ;;  %3703 = vst.msk [vmem:[%s159_s29 + $0x70] sm:$0xff] %vm3688_vm7, %v3664_v28 }
 0x217   : > { %3704 = vst.msk [vmem:[%s159_s29 + $0x78] sm:$0xff] %vm3688_vm7, %v3671_v53 }
 0x218 PF: > { %s11_s10 = sadd.s32 1, %s4218_s10   ;;  %s10792_s6 = smov %s4210_s8 }
 0x219   : > { %p8_p8 = scmp.ge.s32.totalorder %s11_s10, 6   ;;  %s10793_s7 = smov %s4214_s9 }
 0x21a   : > { %s10794_s8 = smov %s10797_s11  ;;  %s10795_s9 = smov %s10801_s12 }
 0x21b   :  { %10 = sbr.rel (!%p8_p8) target bundleno = 3 (0x3), region = 54 }

</bundles_post_ra>
